<compile_context>
chip_gen: v7x
topology: tpu7x:2x2x1
jax: 0.10.0
libtpu: 0.0.40
codegen_flags: <defaults>
</compile_context>

<pallas_src>
import functools

import jax
import jax.numpy as jnp
from jax.experimental import pallas as pl
from jax.experimental.pallas import tpu as pltpu

# Accurate f32 matmuls everywhere (wrapper pre-fusion, in-kernel MXU dots and
# the pure-JAX reference) so the allclose(1e-4) comparison is meaningful.
jax.config.update("jax_default_matmul_precision", "highest")


def net_kernel(
    tok_ref,      # (S*B, 1) int32, time-major flattened tokens (row = t*B + b)
    embwx_ref,    # (Vp, 4H) f32, fused table: emb @ [Wii|Wif|Wig|Wio] + [bi|bf|bg|bo]
    whb_ref,      # (2H, 4H) f32, rows [0,H) zero, rows [H,2H) = [Whi|Whf|Whg|Who]
    w1_ref,       # (2H, F1P) f32, rows [0,H) zero, rows [H,2H) = W_fc1 / S, cols padded to 128
    b1_ref,       # (1, F1P) f32
    w2_ref,       # (F1P, CP) f32, zero-padded
    b2_ref,       # (1, CP)  f32
    out_ref,      # (B, CP)  f32
    *, seq_len, batch, hidden,
):
    f32 = jnp.float32
    vp = embwx_ref.shape[0]
    sb = seq_len * batch
    h2 = 2 * hidden          # 128 lanes when hidden == 64

    # Fused embedding lookup + input projection + bias for ALL timesteps:
    # one-hot(tokens) selects rows of the pre-fused table -> ONE MXU call.
    tok = tok_ref[...]                                                    # (S*B, 1)
    onehot = (tok == jax.lax.broadcasted_iota(jnp.int32, (sb, vp), 1)).astype(f32)
    xp = jnp.dot(onehot, embwx_ref[...], preferred_element_type=f32)      # (S*B, 4H)

    whb = whb_ref[...]                                                    # (2H, 4H)
    # Hoisted lane mask (broadcasts are not CSE'd if built inside the loop).
    lo = jax.lax.broadcasted_iota(jnp.int32, (batch, h2), 1) < hidden     # lanes [0,H)

    # Packed state layout (every elementwise op below is whole-vreg for H=64):
    #   h_pk : lanes [H,2H) hold h, lanes [0,H) hold junk (hits only zero weight rows)
    #   c_dup: c duplicated in both halves
    h_pk = jnp.zeros((batch, h2), f32)
    c_dup = jnp.zeros((batch, h2), f32)
    hsum_pk = jnp.zeros((batch, h2), f32)

    # Static unroll: S and H are tiny and known at trace time.
    # (If S or H grow, switch to lax.fori_loop with xp staged in VMEM scratch
    #  to bound live vreg ranges.)
    for t in range(seq_len):
        gates = xp[t * batch:(t + 1) * batch, :] + jnp.dot(
            h_pk, whb, preferred_element_type=f32)                # (B, 4H), order i|f|g|o
        if_act = jax.nn.sigmoid(gates[:, :h2])                    # [sig(i) | sig(f)], whole vreg
        go = gates[:, h2:]                                        # [g | o], whole vreg
        go_act = jnp.where(lo, jnp.tanh(go), jax.nn.sigmoid(go))  # [tanh(g) | sig(o)]
        p2 = jnp.where(lo, go_act, c_dup)                         # [tanh(g) | c]
        prod = if_act * p2                                        # [i*g | f*c]
        c_dup = prod + pltpu.roll(prod, hidden, axis=1)           # both halves = f*c + i*g
        h_pk = go_act * jnp.tanh(c_dup)                           # lanes [H,2H) = o*tanh(c) = h
        hsum_pk = hsum_pk + h_pk

    # fc1 (1/S mean scale pre-folded into w1) -> ReLU -> dropout(identity) -> fc2.
    # TODO(synk): Dropout(p=0.4) stochastic masking omitted (eval() semantics).
    z1 = jnp.dot(hsum_pk, w1_ref[...], preferred_element_type=f32) + b1_ref[...]
    z1 = jnp.maximum(z1, 0.0)
    out_ref[...] = jnp.dot(z1, w2_ref[...], preferred_element_type=f32) + b2_ref[...]


def _round_up(n, m):
    return ((n + m - 1) // m) * m


def net_forward(tokens, params):
    """tokens: (B, S) int32; params: dict of f32 arrays (module layout)."""
    B, S = tokens.shape
    emb = params["embedding"]
    V, E = emb.shape
    H = params["W_hi"].shape[0]
    F1 = params["W_fc1"].shape[1]
    C = params["W_fc2"].shape[1]

    # ---- one-time packing / zero-padding (pure layout glue, no new math) ----
    vp = _round_up(V, 128)
    h2 = 2 * H
    f1p = _round_up(F1, 128)
    cp = _round_up(C, 128)

    emb_p = jnp.pad(emb, ((0, vp - V), (0, 0)))
    # Gate order i|f|g|o so gate vreg 0 = [i|f] (all sigmoid) and vreg 1 = [g|o].
    wx = jnp.concatenate(
        [params["W_ii"], params["W_if"], params["W_ig"], params["W_io"]], axis=1)
    wh = jnp.concatenate(
        [params["W_hi"], params["W_hf"], params["W_hg"], params["W_ho"]], axis=1)
    bg = jnp.concatenate(
        [params["b_i"], params["b_f"], params["b_g"], params["b_o"]], axis=1)

    # Fused table: row v = emb[v] @ wx + b (exact under one-hot row selection).
    emb_wx = jnp.dot(emb_p, wx, preferred_element_type=jnp.float32) + bg   # (Vp, 4H)

    # Hidden weights padded so the packed (B, 2H) state [junk | h] matmuls directly.
    wh_big = jnp.concatenate([jnp.zeros((H, 4 * H), jnp.float32), wh], axis=0)  # (2H, 4H)

    # fc1 with the 1/S mean scale folded in; rows match the packed-state layout.
    w1_big = jnp.zeros((h2, f1p), jnp.float32).at[H:, :F1].set(
        params["W_fc1"] * (1.0 / S))
    b1p = jnp.pad(params["b_fc1"], ((0, 0), (0, f1p - F1)))
    w2p = jnp.pad(params["W_fc2"], ((0, f1p - F1), (0, cp - C)))
    b2p = jnp.pad(params["b_fc2"], ((0, 0), (0, cp - C)))

    # Time-major flatten so timestep t is a contiguous (B, :) sublane slab.
    tok_tm = jnp.transpose(tokens, (1, 0)).reshape(S * B, 1).astype(jnp.int32)

    # Grid-less: everything (<1 MiB) is VMEM-resident. At production batch /
    # vocab sizes, add a leading batch-tile grid axis (dimension_semantics=
    # ("parallel",)) to fill MXU rows and use both v7x TensorCores, and tile
    # the one-hot/embedding path before vocab outgrows VMEM.
    kernel = pl.pallas_call(
        functools.partial(net_kernel, seq_len=S, batch=B, hidden=H),
        out_shape=jax.ShapeDtypeStruct((B, cp), jnp.float32),
        in_specs=[pl.BlockSpec(memory_space=pltpu.MemorySpace.VMEM)] * 7,
        out_specs=pl.BlockSpec(memory_space=pltpu.MemorySpace.VMEM),
    )
    out_p = kernel(tok_tm, emb_wx, wh_big, w1_big, b1p, w2p, b2p)
    return out_p[:, :C]


def init_params(key, vocab_size, embedding_size, hidden_size, num_classes):
    ks = jax.random.split(key, 16)
    E, H = embedding_size, hidden_size
    # Gate weights ~ torch.randn in the module; scaled by 0.1 here so the test
    # does not sit entirely in sigmoid/tanh saturation (forward math unchanged).
    n = lambda k, s: 0.1 * jax.random.normal(k, s, dtype=jnp.float32)
    params = {
        "embedding": jax.random.normal(ks[0], (vocab_size, E), dtype=jnp.float32),
        "W_ii": n(ks[1], (E, H)), "W_hi": n(ks[2], (H, H)), "b_i": jnp.zeros((1, H), jnp.float32),
        "W_if": n(ks[3], (E, H)), "W_hf": n(ks[4], (H, H)), "b_f": jnp.zeros((1, H), jnp.float32),
        "W_io": n(ks[5], (E, H)), "W_ho": n(ks[6], (H, H)), "b_o": jnp.zeros((1, H), jnp.float32),
        "W_ig": n(ks[7], (E, H)), "W_hg": n(ks[8], (H, H)), "b_g": jnp.zeros((1, H), jnp.float32),
    }
    # nn.Linear weights are (out, in); y = x @ W.T + b -> store transposed.
    w1 = (jax.random.uniform(ks[9], (32, H), jnp.float32) - 0.5) * 2.0 / jnp.sqrt(H)
    b1 = (jax.random.uniform(ks[10], (1, 32), jnp.float32) - 0.5) * 2.0 / jnp.sqrt(H)
    w2 = (jax.random.uniform(ks[11], (num_classes, 32), jnp.float32) - 0.5) / jnp.sqrt(32.0) * 2.0
    b2 = (jax.random.uniform(ks[12], (1, num_classes), jnp.float32) - 0.5) / jnp.sqrt(32.0) * 2.0
    params["W_fc1"] = w1.T
    params["b_fc1"] = b1
    params["W_fc2"] = w2.T
    params["b_fc2"] = b2
    return params


def reference_forward(tokens, params):
    """Pure-JAX reference replicating the PyTorch forward (unfused math)."""
    x = jnp.take(params["embedding"], tokens, axis=0)   # (B, S, E)
    x = jnp.transpose(x, (1, 0, 2))                     # (S, B, E), like permute(1,0,2)
    B = x.shape[1]
    H = params["W_hi"].shape[0]
    h = jnp.zeros((B, H), jnp.float32)
    c = jnp.zeros((B, H), jnp.float32)
    hs = []
    for t in range(x.shape[0]):
        x_t = x[t]
        f_t = jax.nn.sigmoid(x_t @ params["W_if"] + h @ params["W_hf"] + params["b_f"])
        i_t = jax.nn.sigmoid(x_t @ params["W_ii"] + h @ params["W_hi"] + params["b_i"])
        g_t = jnp.tanh(x_t @ params["W_ig"] + h @ params["W_hg"] + params["b_g"])
        o_t = jax.nn.sigmoid(x_t @ params["W_io"] + h @ params["W_ho"] + params["b_o"])
        c = f_t * c + i_t * g_t
        h = o_t * jnp.tanh(c)
        hs.append(h)
    hm = jnp.mean(jnp.stack(hs, 0), axis=0)
    z1 = jnp.maximum(hm @ params["W_fc1"] + params["b_fc1"], 0.0)
    return z1 @ params["W_fc2"] + params["b_fc2"]


if __name__ == "__main__":
    VOCAB = 100
    EMB = 64
    HID = 64
    CLASSES = 2
    BATCH = 8
    SEQ = 8

    key = jax.random.PRNGKey(0)
    pkey, tkey = jax.random.split(key)
    params = init_params(pkey, VOCAB, EMB, HID, CLASSES)
    tokens = jax.random.randint(tkey, (BATCH, SEQ), 0, VOCAB, dtype=jnp.int32)

    out = net_forward(tokens, params)
    out = jax.block_until_ready(out)

    ref = reference_forward(tokens, params)
    assert out.shape == (BATCH, CLASSES), out.shape
    assert jnp.allclose(out, ref, atol=1e-4, rtol=1e-4), (out, ref)
    print("KERNEL_OK")
</pallas_src>

<mosaic_0001>
module attributes {stable_mosaic.version = 11 : i64} {
  func.func @net_kernel(%arg0: memref<64x1xi32, #tpu.memory_space<vmem>>, %arg1: memref<128x256xf32, #tpu.memory_space<vmem>>, %arg2: memref<128x256xf32, #tpu.memory_space<vmem>>, %arg3: memref<128x128xf32, #tpu.memory_space<vmem>>, %arg4: memref<1x128xf32, #tpu.memory_space<vmem>>, %arg5: memref<128x128xf32, #tpu.memory_space<vmem>>, %arg6: memref<1x128xf32, #tpu.memory_space<vmem>>, %arg7: memref<8x128xf32, #tpu.memory_space<vmem>>) attributes {dimension_semantics = [], scalar_prefetch = 0 : i64, scratch_operands = 0 : i64, tpu.core_type = #tpu.core_type<tc>} {
    %c0 = arith.constant 0 : index
    %c0_0 = arith.constant 0 : index
    %0 = vector.load %arg0[%c0, %c0_0] : memref<64x1xi32, #tpu.memory_space<vmem>>, vector<64x1xi32>
    %1 = tpu.iota {dimensions = array<i32: 1>} : vector<64x128xi32>
    %2 = vector.broadcast %0 : vector<64x1xi32> to vector<64x128xi32>
    %3 = arith.cmpi eq, %2, %1 : vector<64x128xi32>
    %4 = arith.extui %3 : vector<64x128xi1> to vector<64x128xi32>
    %5 = arith.sitofp %4 : vector<64x128xi32> to vector<64x128xf32>
    %c0_1 = arith.constant 0 : index
    %c0_2 = arith.constant 0 : index
    %6 = vector.load %arg1[%c0_1, %c0_2] : memref<128x256xf32, #tpu.memory_space<vmem>>, vector<128x256xf32>
    %cst = arith.constant dense<0.000000e+00> : vector<64x256xf32>
    %7 = tpu.matmul %5, %6, %cst {dimension_numbers = #tpu.dot_dimension_numbers<[1], [0], [0], [1], [0, 0, 1, 1], [], []>, precision = #tpu.contract_precision<fp32>} : vector<64x128xf32>, vector<128x256xf32>, vector<64x256xf32> -> vector<64x256xf32>
    %c0_3 = arith.constant 0 : index
    %c0_4 = arith.constant 0 : index
    %8 = vector.load %arg2[%c0_3, %c0_4] : memref<128x256xf32, #tpu.memory_space<vmem>>, vector<128x256xf32>
    %9 = tpu.iota {dimensions = array<i32: 1>} : vector<8x128xi32>
    %c64_i32 = arith.constant 64 : i32
    %10 = vector.broadcast %c64_i32 : i32 to vector<8x128xi32>
    %11 = arith.cmpi slt, %9, %10 : vector<8x128xi32>
    %cst_5 = arith.constant 0.000000e+00 : f32
    %12 = vector.broadcast %cst_5 : f32 to vector<8x128xf32>
    %cst_6 = arith.constant 0.000000e+00 : f32
    %13 = vector.broadcast %cst_6 : f32 to vector<8x128xf32>
    %cst_7 = arith.constant 0.000000e+00 : f32
    %14 = vector.broadcast %cst_7 : f32 to vector<8x128xf32>
    %15 = vector.extract_strided_slice %7 {offsets = [0, 0], sizes = [8, 256], strides = [1, 1]} : vector<64x256xf32> to vector<8x256xf32>
    %cst_8 = arith.constant dense<0.000000e+00> : vector<8x256xf32>
    %16 = tpu.matmul %12, %8, %cst_8 {dimension_numbers = #tpu.dot_dimension_numbers<[1], [0], [0], [1], [0, 0, 1, 1], [], []>, precision = #tpu.contract_precision<fp32>} : vector<8x128xf32>, vector<128x256xf32>, vector<8x256xf32> -> vector<8x256xf32>
    %17 = arith.addf %15, %16 : vector<8x256xf32>
    %18 = vector.extract_strided_slice %17 {offsets = [0, 0], sizes = [8, 128], strides = [1, 1]} : vector<8x256xf32> to vector<8x128xf32>
    %19 = arith.negf %18 : vector<8x128xf32>
    %20 = math.exp %19 : vector<8x128xf32>
    %cst_9 = arith.constant 1.000000e+00 : f32
    %21 = vector.broadcast %cst_9 : f32 to vector<8x128xf32>
    %22 = arith.addf %21, %20 : vector<8x128xf32>
    %23 = arith.divf %21, %22 : vector<8x128xf32>
    %24 = vector.extract_strided_slice %17 {offsets = [0, 128], sizes = [8, 128], strides = [1, 1]} : vector<8x256xf32> to vector<8x128xf32>
    %25 = math.tanh %24 : vector<8x128xf32>
    %26 = arith.negf %24 : vector<8x128xf32>
    %27 = math.exp %26 : vector<8x128xf32>
    %cst_10 = arith.constant 1.000000e+00 : f32
    %28 = vector.broadcast %cst_10 : f32 to vector<8x128xf32>
    %29 = arith.addf %28, %27 : vector<8x128xf32>
    %30 = arith.divf %28, %29 : vector<8x128xf32>
    %31 = arith.select %11, %25, %30 : vector<8x128xi1>, vector<8x128xf32>
    %32 = arith.select %11, %31, %13 : vector<8x128xi1>, vector<8x128xf32>
    %33 = arith.mulf %23, %32 : vector<8x128xf32>
    %c64_i32_11 = arith.constant 64 : i32
    %34 = tpu.dynamic_rotate %33 by %c64_i32_11 dim 1 : vector<8x128xf32>, i32 -> vector<8x128xf32>
    %35 = arith.addf %33, %34 : vector<8x128xf32>
    %36 = math.tanh %35 : vector<8x128xf32>
    %37 = arith.mulf %31, %36 : vector<8x128xf32>
    %38 = arith.addf %14, %37 : vector<8x128xf32>
    %39 = vector.extract_strided_slice %7 {offsets = [8, 0], sizes = [8, 256], strides = [1, 1]} : vector<64x256xf32> to vector<8x256xf32>
    %cst_12 = arith.constant dense<0.000000e+00> : vector<8x256xf32>
    %40 = tpu.matmul %37, %8, %cst_12 {dimension_numbers = #tpu.dot_dimension_numbers<[1], [0], [0], [1], [0, 0, 1, 1], [], []>, precision = #tpu.contract_precision<fp32>} : vector<8x128xf32>, vector<128x256xf32>, vector<8x256xf32> -> vector<8x256xf32>
    %41 = arith.addf %39, %40 : vector<8x256xf32>
    %42 = vector.extract_strided_slice %41 {offsets = [0, 0], sizes = [8, 128], strides = [1, 1]} : vector<8x256xf32> to vector<8x128xf32>
    %43 = arith.negf %42 : vector<8x128xf32>
    %44 = math.exp %43 : vector<8x128xf32>
    %cst_13 = arith.constant 1.000000e+00 : f32
    %45 = vector.broadcast %cst_13 : f32 to vector<8x128xf32>
    %46 = arith.addf %45, %44 : vector<8x128xf32>
    %47 = arith.divf %45, %46 : vector<8x128xf32>
    %48 = vector.extract_strided_slice %41 {offsets = [0, 128], sizes = [8, 128], strides = [1, 1]} : vector<8x256xf32> to vector<8x128xf32>
    %49 = math.tanh %48 : vector<8x128xf32>
    %50 = arith.negf %48 : vector<8x128xf32>
    %51 = math.exp %50 : vector<8x128xf32>
    %cst_14 = arith.constant 1.000000e+00 : f32
    %52 = vector.broadcast %cst_14 : f32 to vector<8x128xf32>
    %53 = arith.addf %52, %51 : vector<8x128xf32>
    %54 = arith.divf %52, %53 : vector<8x128xf32>
    %55 = arith.select %11, %49, %54 : vector<8x128xi1>, vector<8x128xf32>
    %56 = arith.select %11, %55, %35 : vector<8x128xi1>, vector<8x128xf32>
    %57 = arith.mulf %47, %56 : vector<8x128xf32>
    %c64_i32_15 = arith.constant 64 : i32
    %58 = tpu.dynamic_rotate %57 by %c64_i32_15 dim 1 : vector<8x128xf32>, i32 -> vector<8x128xf32>
    %59 = arith.addf %57, %58 : vector<8x128xf32>
    %60 = math.tanh %59 : vector<8x128xf32>
    %61 = arith.mulf %55, %60 : vector<8x128xf32>
    %62 = arith.addf %38, %61 : vector<8x128xf32>
    %63 = vector.extract_strided_slice %7 {offsets = [16, 0], sizes = [8, 256], strides = [1, 1]} : vector<64x256xf32> to vector<8x256xf32>
    %cst_16 = arith.constant dense<0.000000e+00> : vector<8x256xf32>
    %64 = tpu.matmul %61, %8, %cst_16 {dimension_numbers = #tpu.dot_dimension_numbers<[1], [0], [0], [1], [0, 0, 1, 1], [], []>, precision = #tpu.contract_precision<fp32>} : vector<8x128xf32>, vector<128x256xf32>, vector<8x256xf32> -> vector<8x256xf32>
    %65 = arith.addf %63, %64 : vector<8x256xf32>
    %66 = vector.extract_strided_slice %65 {offsets = [0, 0], sizes = [8, 128], strides = [1, 1]} : vector<8x256xf32> to vector<8x128xf32>
    %67 = arith.negf %66 : vector<8x128xf32>
    %68 = math.exp %67 : vector<8x128xf32>
    %cst_17 = arith.constant 1.000000e+00 : f32
    %69 = vector.broadcast %cst_17 : f32 to vector<8x128xf32>
    %70 = arith.addf %69, %68 : vector<8x128xf32>
    %71 = arith.divf %69, %70 : vector<8x128xf32>
    %72 = vector.extract_strided_slice %65 {offsets = [0, 128], sizes = [8, 128], strides = [1, 1]} : vector<8x256xf32> to vector<8x128xf32>
    %73 = math.tanh %72 : vector<8x128xf32>
    %74 = arith.negf %72 : vector<8x128xf32>
    %75 = math.exp %74 : vector<8x128xf32>
    %cst_18 = arith.constant 1.000000e+00 : f32
    %76 = vector.broadcast %cst_18 : f32 to vector<8x128xf32>
    %77 = arith.addf %76, %75 : vector<8x128xf32>
    %78 = arith.divf %76, %77 : vector<8x128xf32>
    %79 = arith.select %11, %73, %78 : vector<8x128xi1>, vector<8x128xf32>
    %80 = arith.select %11, %79, %59 : vector<8x128xi1>, vector<8x128xf32>
    %81 = arith.mulf %71, %80 : vector<8x128xf32>
    %c64_i32_19 = arith.constant 64 : i32
    %82 = tpu.dynamic_rotate %81 by %c64_i32_19 dim 1 : vector<8x128xf32>, i32 -> vector<8x128xf32>
    %83 = arith.addf %81, %82 : vector<8x128xf32>
    %84 = math.tanh %83 : vector<8x128xf32>
    %85 = arith.mulf %79, %84 : vector<8x128xf32>
    %86 = arith.addf %62, %85 : vector<8x128xf32>
    %87 = vector.extract_strided_slice %7 {offsets = [24, 0], sizes = [8, 256], strides = [1, 1]} : vector<64x256xf32> to vector<8x256xf32>
    %cst_20 = arith.constant dense<0.000000e+00> : vector<8x256xf32>
    %88 = tpu.matmul %85, %8, %cst_20 {dimension_numbers = #tpu.dot_dimension_numbers<[1], [0], [0], [1], [0, 0, 1, 1], [], []>, precision = #tpu.contract_precision<fp32>} : vector<8x128xf32>, vector<128x256xf32>, vector<8x256xf32> -> vector<8x256xf32>
    %89 = arith.addf %87, %88 : vector<8x256xf32>
    %90 = vector.extract_strided_slice %89 {offsets = [0, 0], sizes = [8, 128], strides = [1, 1]} : vector<8x256xf32> to vector<8x128xf32>
    %91 = arith.negf %90 : vector<8x128xf32>
    %92 = math.exp %91 : vector<8x128xf32>
    %cst_21 = arith.constant 1.000000e+00 : f32
    %93 = vector.broadcast %cst_21 : f32 to vector<8x128xf32>
    %94 = arith.addf %93, %92 : vector<8x128xf32>
    %95 = arith.divf %93, %94 : vector<8x128xf32>
    %96 = vector.extract_strided_slice %89 {offsets = [0, 128], sizes = [8, 128], strides = [1, 1]} : vector<8x256xf32> to vector<8x128xf32>
    %97 = math.tanh %96 : vector<8x128xf32>
    %98 = arith.negf %96 : vector<8x128xf32>
    %99 = math.exp %98 : vector<8x128xf32>
    %cst_22 = arith.constant 1.000000e+00 : f32
    %100 = vector.broadcast %cst_22 : f32 to vector<8x128xf32>
    %101 = arith.addf %100, %99 : vector<8x128xf32>
    %102 = arith.divf %100, %101 : vector<8x128xf32>
    %103 = arith.select %11, %97, %102 : vector<8x128xi1>, vector<8x128xf32>
    %104 = arith.select %11, %103, %83 : vector<8x128xi1>, vector<8x128xf32>
    %105 = arith.mulf %95, %104 : vector<8x128xf32>
    %c64_i32_23 = arith.constant 64 : i32
    %106 = tpu.dynamic_rotate %105 by %c64_i32_23 dim 1 : vector<8x128xf32>, i32 -> vector<8x128xf32>
    %107 = arith.addf %105, %106 : vector<8x128xf32>
    %108 = math.tanh %107 : vector<8x128xf32>
    %109 = arith.mulf %103, %108 : vector<8x128xf32>
    %110 = arith.addf %86, %109 : vector<8x128xf32>
    %111 = vector.extract_strided_slice %7 {offsets = [32, 0], sizes = [8, 256], strides = [1, 1]} : vector<64x256xf32> to vector<8x256xf32>
    %cst_24 = arith.constant dense<0.000000e+00> : vector<8x256xf32>
    %112 = tpu.matmul %109, %8, %cst_24 {dimension_numbers = #tpu.dot_dimension_numbers<[1], [0], [0], [1], [0, 0, 1, 1], [], []>, precision = #tpu.contract_precision<fp32>} : vector<8x128xf32>, vector<128x256xf32>, vector<8x256xf32> -> vector<8x256xf32>
    %113 = arith.addf %111, %112 : vector<8x256xf32>
    %114 = vector.extract_strided_slice %113 {offsets = [0, 0], sizes = [8, 128], strides = [1, 1]} : vector<8x256xf32> to vector<8x128xf32>
    %115 = arith.negf %114 : vector<8x128xf32>
    %116 = math.exp %115 : vector<8x128xf32>
    %cst_25 = arith.constant 1.000000e+00 : f32
    %117 = vector.broadcast %cst_25 : f32 to vector<8x128xf32>
    %118 = arith.addf %117, %116 : vector<8x128xf32>
    %119 = arith.divf %117, %118 : vector<8x128xf32>
    %120 = vector.extract_strided_slice %113 {offsets = [0, 128], sizes = [8, 128], strides = [1, 1]} : vector<8x256xf32> to vector<8x128xf32>
    %121 = math.tanh %120 : vector<8x128xf32>
    %122 = arith.negf %120 : vector<8x128xf32>
    %123 = math.exp %122 : vector<8x128xf32>
    %cst_26 = arith.constant 1.000000e+00 : f32
    %124 = vector.broadcast %cst_26 : f32 to vector<8x128xf32>
    %125 = arith.addf %124, %123 : vector<8x128xf32>
    %126 = arith.divf %124, %125 : vector<8x128xf32>
    %127 = arith.select %11, %121, %126 : vector<8x128xi1>, vector<8x128xf32>
    %128 = arith.select %11, %127, %107 : vector<8x128xi1>, vector<8x128xf32>
    %129 = arith.mulf %119, %128 : vector<8x128xf32>
    %c64_i32_27 = arith.constant 64 : i32
    %130 = tpu.dynamic_rotate %129 by %c64_i32_27 dim 1 : vector<8x128xf32>, i32 -> vector<8x128xf32>
    %131 = arith.addf %129, %130 : vector<8x128xf32>
    %132 = math.tanh %131 : vector<8x128xf32>
    %133 = arith.mulf %127, %132 : vector<8x128xf32>
    %134 = arith.addf %110, %133 : vector<8x128xf32>
    %135 = vector.extract_strided_slice %7 {offsets = [40, 0], sizes = [8, 256], strides = [1, 1]} : vector<64x256xf32> to vector<8x256xf32>
    %cst_28 = arith.constant dense<0.000000e+00> : vector<8x256xf32>
    %136 = tpu.matmul %133, %8, %cst_28 {dimension_numbers = #tpu.dot_dimension_numbers<[1], [0], [0], [1], [0, 0, 1, 1], [], []>, precision = #tpu.contract_precision<fp32>} : vector<8x128xf32>, vector<128x256xf32>, vector<8x256xf32> -> vector<8x256xf32>
    %137 = arith.addf %135, %136 : vector<8x256xf32>
    %138 = vector.extract_strided_slice %137 {offsets = [0, 0], sizes = [8, 128], strides = [1, 1]} : vector<8x256xf32> to vector<8x128xf32>
    %139 = arith.negf %138 : vector<8x128xf32>
    %140 = math.exp %139 : vector<8x128xf32>
    %cst_29 = arith.constant 1.000000e+00 : f32
    %141 = vector.broadcast %cst_29 : f32 to vector<8x128xf32>
    %142 = arith.addf %141, %140 : vector<8x128xf32>
    %143 = arith.divf %141, %142 : vector<8x128xf32>
    %144 = vector.extract_strided_slice %137 {offsets = [0, 128], sizes = [8, 128], strides = [1, 1]} : vector<8x256xf32> to vector<8x128xf32>
    %145 = math.tanh %144 : vector<8x128xf32>
    %146 = arith.negf %144 : vector<8x128xf32>
    %147 = math.exp %146 : vector<8x128xf32>
    %cst_30 = arith.constant 1.000000e+00 : f32
    %148 = vector.broadcast %cst_30 : f32 to vector<8x128xf32>
    %149 = arith.addf %148, %147 : vector<8x128xf32>
    %150 = arith.divf %148, %149 : vector<8x128xf32>
    %151 = arith.select %11, %145, %150 : vector<8x128xi1>, vector<8x128xf32>
    %152 = arith.select %11, %151, %131 : vector<8x128xi1>, vector<8x128xf32>
    %153 = arith.mulf %143, %152 : vector<8x128xf32>
    %c64_i32_31 = arith.constant 64 : i32
    %154 = tpu.dynamic_rotate %153 by %c64_i32_31 dim 1 : vector<8x128xf32>, i32 -> vector<8x128xf32>
    %155 = arith.addf %153, %154 : vector<8x128xf32>
    %156 = math.tanh %155 : vector<8x128xf32>
    %157 = arith.mulf %151, %156 : vector<8x128xf32>
    %158 = arith.addf %134, %157 : vector<8x128xf32>
    %159 = vector.extract_strided_slice %7 {offsets = [48, 0], sizes = [8, 256], strides = [1, 1]} : vector<64x256xf32> to vector<8x256xf32>
    %cst_32 = arith.constant dense<0.000000e+00> : vector<8x256xf32>
    %160 = tpu.matmul %157, %8, %cst_32 {dimension_numbers = #tpu.dot_dimension_numbers<[1], [0], [0], [1], [0, 0, 1, 1], [], []>, precision = #tpu.contract_precision<fp32>} : vector<8x128xf32>, vector<128x256xf32>, vector<8x256xf32> -> vector<8x256xf32>
    %161 = arith.addf %159, %160 : vector<8x256xf32>
    %162 = vector.extract_strided_slice %161 {offsets = [0, 0], sizes = [8, 128], strides = [1, 1]} : vector<8x256xf32> to vector<8x128xf32>
    %163 = arith.negf %162 : vector<8x128xf32>
    %164 = math.exp %163 : vector<8x128xf32>
    %cst_33 = arith.constant 1.000000e+00 : f32
    %165 = vector.broadcast %cst_33 : f32 to vector<8x128xf32>
    %166 = arith.addf %165, %164 : vector<8x128xf32>
    %167 = arith.divf %165, %166 : vector<8x128xf32>
    %168 = vector.extract_strided_slice %161 {offsets = [0, 128], sizes = [8, 128], strides = [1, 1]} : vector<8x256xf32> to vector<8x128xf32>
    %169 = math.tanh %168 : vector<8x128xf32>
    %170 = arith.negf %168 : vector<8x128xf32>
    %171 = math.exp %170 : vector<8x128xf32>
    %cst_34 = arith.constant 1.000000e+00 : f32
    %172 = vector.broadcast %cst_34 : f32 to vector<8x128xf32>
    %173 = arith.addf %172, %171 : vector<8x128xf32>
    %174 = arith.divf %172, %173 : vector<8x128xf32>
    %175 = arith.select %11, %169, %174 : vector<8x128xi1>, vector<8x128xf32>
    %176 = arith.select %11, %175, %155 : vector<8x128xi1>, vector<8x128xf32>
    %177 = arith.mulf %167, %176 : vector<8x128xf32>
    %c64_i32_35 = arith.constant 64 : i32
    %178 = tpu.dynamic_rotate %177 by %c64_i32_35 dim 1 : vector<8x128xf32>, i32 -> vector<8x128xf32>
    %179 = arith.addf %177, %178 : vector<8x128xf32>
    %180 = math.tanh %179 : vector<8x128xf32>
    %181 = arith.mulf %175, %180 : vector<8x128xf32>
    %182 = arith.addf %158, %181 : vector<8x128xf32>
    %183 = vector.extract_strided_slice %7 {offsets = [56, 0], sizes = [8, 256], strides = [1, 1]} : vector<64x256xf32> to vector<8x256xf32>
    %cst_36 = arith.constant dense<0.000000e+00> : vector<8x256xf32>
    %184 = tpu.matmul %181, %8, %cst_36 {dimension_numbers = #tpu.dot_dimension_numbers<[1], [0], [0], [1], [0, 0, 1, 1], [], []>, precision = #tpu.contract_precision<fp32>} : vector<8x128xf32>, vector<128x256xf32>, vector<8x256xf32> -> vector<8x256xf32>
    %185 = arith.addf %183, %184 : vector<8x256xf32>
    %186 = vector.extract_strided_slice %185 {offsets = [0, 0], sizes = [8, 128], strides = [1, 1]} : vector<8x256xf32> to vector<8x128xf32>
    %187 = arith.negf %186 : vector<8x128xf32>
    %188 = math.exp %187 : vector<8x128xf32>
    %cst_37 = arith.constant 1.000000e+00 : f32
    %189 = vector.broadcast %cst_37 : f32 to vector<8x128xf32>
    %190 = arith.addf %189, %188 : vector<8x128xf32>
    %191 = arith.divf %189, %190 : vector<8x128xf32>
    %192 = vector.extract_strided_slice %185 {offsets = [0, 128], sizes = [8, 128], strides = [1, 1]} : vector<8x256xf32> to vector<8x128xf32>
    %193 = math.tanh %192 : vector<8x128xf32>
    %194 = arith.negf %192 : vector<8x128xf32>
    %195 = math.exp %194 : vector<8x128xf32>
    %cst_38 = arith.constant 1.000000e+00 : f32
    %196 = vector.broadcast %cst_38 : f32 to vector<8x128xf32>
    %197 = arith.addf %196, %195 : vector<8x128xf32>
    %198 = arith.divf %196, %197 : vector<8x128xf32>
    %199 = arith.select %11, %193, %198 : vector<8x128xi1>, vector<8x128xf32>
    %200 = arith.select %11, %199, %179 : vector<8x128xi1>, vector<8x128xf32>
    %201 = arith.mulf %191, %200 : vector<8x128xf32>
    %c64_i32_39 = arith.constant 64 : i32
    %202 = tpu.dynamic_rotate %201 by %c64_i32_39 dim 1 : vector<8x128xf32>, i32 -> vector<8x128xf32>
    %203 = arith.addf %201, %202 : vector<8x128xf32>
    %204 = math.tanh %203 : vector<8x128xf32>
    %205 = arith.mulf %199, %204 : vector<8x128xf32>
    %206 = arith.addf %182, %205 : vector<8x128xf32>
    %c0_40 = arith.constant 0 : index
    %c0_41 = arith.constant 0 : index
    %207 = vector.load %arg3[%c0_40, %c0_41] : memref<128x128xf32, #tpu.memory_space<vmem>>, vector<128x128xf32>
    %cst_42 = arith.constant dense<0.000000e+00> : vector<8x128xf32>
    %208 = tpu.matmul %206, %207, %cst_42 {dimension_numbers = #tpu.dot_dimension_numbers<[1], [0], [0], [1], [0, 0, 1, 1], [], []>, precision = #tpu.contract_precision<fp32>} : vector<8x128xf32>, vector<128x128xf32>, vector<8x128xf32> -> vector<8x128xf32>
    %c0_43 = arith.constant 0 : index
    %c0_44 = arith.constant 0 : index
    %209 = vector.load %arg4[%c0_43, %c0_44] : memref<1x128xf32, #tpu.memory_space<vmem>>, vector<1x128xf32>
    %210 = vector.broadcast %209 : vector<1x128xf32> to vector<8x128xf32>
    %211 = arith.addf %208, %210 : vector<8x128xf32>
    %cst_45 = arith.constant 0.000000e+00 : f32
    %212 = vector.broadcast %cst_45 : f32 to vector<8x128xf32>
    %213 = arith.maximumf %211, %212 : vector<8x128xf32>
    %c0_46 = arith.constant 0 : index
    %c0_47 = arith.constant 0 : index
    %214 = vector.load %arg5[%c0_46, %c0_47] : memref<128x128xf32, #tpu.memory_space<vmem>>, vector<128x128xf32>
    %cst_48 = arith.constant dense<0.000000e+00> : vector<8x128xf32>
    %215 = tpu.matmul %213, %214, %cst_48 {dimension_numbers = #tpu.dot_dimension_numbers<[1], [0], [0], [1], [0, 0, 1, 1], [], []>, precision = #tpu.contract_precision<fp32>} : vector<8x128xf32>, vector<128x128xf32>, vector<8x128xf32> -> vector<8x128xf32>
    %c0_49 = arith.constant 0 : index
    %c0_50 = arith.constant 0 : index
    %216 = vector.load %arg6[%c0_49, %c0_50] : memref<1x128xf32, #tpu.memory_space<vmem>>, vector<1x128xf32>
    %217 = vector.broadcast %216 : vector<1x128xf32> to vector<8x128xf32>
    %218 = arith.addf %215, %217 : vector<8x128xf32>
    %c0_51 = arith.constant 0 : index
    %c0_52 = arith.constant 0 : index
    %219 = vector.load %arg7[%c0_51, %c0_52] : memref<8x128xf32, #tpu.memory_space<vmem>>, vector<8x128xf32>
    tpu.vector_store %arg7[%c0_51, %c0_52], %218 {strides = array<i32>} : memref<8x128xf32, #tpu.memory_space<vmem>>, vector<8x128xf32>,
    return
  }
}

</mosaic_0001>

<bundles_post_ra>
// kernel: tpu_custom_call.1
= control target key start
LH: loop header
LB: loop body
LE: loop exit
PB: predicated region body
PF: predicated region fallthrough
CT: control target
= control target key end

     0   :  { %12 = vsyncpa [#allocation3], 0  ;;  %s16068_s0 = inlined_call_operand.vmem [shape: s32[64,1], index: 0, kind: input, shape index: {}]   ;;  %s16069_s1 = inlined_call_operand.hbm [shape: f32[128,256], index: 1, kind: input, shape index: {}]   ;;  %s16070_s2 = inlined_call_operand.hbm [shape: f32[128,256], index: 2, kind: input, shape index: {}]   ;;  %s16071_s3 = inlined_call_operand.hbm [shape: f32[128,128], index: 3, kind: input, shape index: {}]   ;;  %s16072_s4 = inlined_call_operand.vmem [shape: f32[1,128], index: 4, kind: input, shape index: {}]   ;;  %s16073_s5 = inlined_call_operand.hbm [shape: f32[128,128], index: 5, kind: input, shape index: {}]   ;;  %s16074_s6 = inlined_call_operand.vmem [shape: f32[1,128], index: 6, kind: input, shape index: {}]   ;;  %s16075_s7 = inlined_call_operand.hbm [shape: f32[8,128], index: 7, kind: output, shape index: {}]  }
   0x1   :  { %13 = vsyncpa [#allocation6], 0 }
   0x2   :  { %14 = vsyncpa [#allocation9], 0 }
   0x3   :  { %15 = vsyncpa [#allocation4], 0  ;;  %s12888_s24 = smov [#allocation5]   ;;  %s12889_s26 = smov [#allocation2]  }
   0x4   :  { %s35_s25 = sshll.u32 %s12888_s24, 4  ;;  %s23_s27 = sshll.u32 %s12889_s26, 4  ;;  %s36_s25 = int_to_ptr.vmem [resolvable:$true] %s35_s25  ;;  %s12943_s27 = int_to_ptr.vmem [resolvable:$true] %s23_s27 }
   0x5   :  { %s12770_s30 = scalar_lea.hbm %s16070_s2, 4096 }
   0x6   :  { %p12771_p0 = scmp.ne.s32.totalorder %s16070_s2, %s12770_s30  ;;  %p12774_p1 = scmp.lt.u32.totalorder %s12770_s30, %s16070_s2 }
   0x8   :  { %p12776_p2 = pnand %p12774_p1, %p12771_p0 }
   0xa   :  { %12779 = shalt.err (!%p12776_p2)
}
   0xb   :  { %s12780_s12 = scalar_lea.vmem %s36_s25, 4096  ;;  %p12785_p4 = scmp.lt.s32.totalorder %s36_s25, %s36_s25 }
   0xc   :  { %p12781_p3 = scmp.ne.s32.totalorder %s36_s25, %s12780_s12  ;;  %p12786_p5 = scmp.lt.s32.totalorder %s12780_s12, %s12780_s12 }
   0xe   :  { %p12787_p6 = por %p12786_p5, %p12785_p4 }
  0x10   :  { %p12788_p7 = pnand %p12787_p6, %p12781_p3 }
  0x12   :  { %12791 = shalt.err (!%p12788_p7)
}
  0x13   :  { %s12890_s13 = smov 256   ;;  %s12891_s14 = smov 16  }
  0x14   :  { %41 = dma.hbm_to_vmem [thread:$0]  %s16070_s2, 4096, %s36_s25, [#allocation6], %s12890_s13, %s12890_s13, %s12891_s14  }
  0x15   :  { %s12792_s19 = scalar_lea.hbm %s16069_s1, 4096 }
  0x16   :  { %p12793_p8 = scmp.ne.s32.totalorder %s16069_s1, %s12792_s19  ;;  %p12796_p9 = scmp.lt.u32.totalorder %s12792_s19, %s16069_s1 }
  0x18   :  { %p12798_p10 = pnand %p12796_p9, %p12793_p8 }
  0x1a   :  { %12801 = shalt.err (!%p12798_p10)
}
  0x1b   :  { %s12802_s24 = scalar_lea.vmem %s12943_s27, 4096  ;;  %p12807_p12 = scmp.lt.s32.totalorder %s12943_s27, %s12943_s27 }
  0x1c   :  { %p12803_p11 = scmp.ne.s32.totalorder %s12943_s27, %s12802_s24  ;;  %p12808_p13 = scmp.lt.s32.totalorder %s12802_s24, %s12802_s24 }
  0x1e   :  { %p12809_p0 = por %p12808_p13, %p12807_p12 }
  0x20   :  { %p12810_p1 = pnand %p12809_p0, %p12803_p11 }
  0x22   :  { %12813 = shalt.err (!%p12810_p1)
}
  0x23   :  { %29 = dma.hbm_to_vmem [thread:$0]  %s16069_s1, 4096, %s12943_s27, [#allocation3], %s12890_s13, %s12890_s13, %s12891_s14  }
  0x24   :  { %s12892_s26 = smov [#allocation7]   ;;  %s12814_s8 = scalar_lea.hbm %s16071_s3, 2048 }
  0x25   :  { %s47_s28 = sshll.u32 %s12892_s26, 4  ;;  %p12815_p2 = scmp.ne.s32.totalorder %s16071_s3, %s12814_s8  ;;  %s48_s28 = int_to_ptr.vmem [resolvable:$true] %s47_s28 }
  0x26   :  { %p12818_p3 = scmp.lt.u32.totalorder %s12814_s8, %s16071_s3 }
  0x28   :  { %p12820_p4 = pnand %p12818_p3, %p12815_p2 }
  0x2a   :  { %12823 = shalt.err (!%p12820_p4)
}
  0x2b   :  { %s12824_s15 = scalar_lea.vmem %s48_s28, 2048  ;;  %p12829_p6 = scmp.lt.s32.totalorder %s48_s28, %s48_s28 }
  0x2c   :  { %p12825_p5 = scmp.ne.s32.totalorder %s48_s28, %s12824_s15  ;;  %p12830_p7 = scmp.lt.s32.totalorder %s12824_s15, %s12824_s15 }
  0x2e   :  { %p12831_p8 = por %p12830_p7, %p12829_p6 }
  0x30   :  { %p12832_p9 = pnand %p12831_p8, %p12825_p5 }
  0x32   :  { %12835 = shalt.err (!%p12832_p9)
}
  0x33   :  { %s12893_s1 = smov 128   ;;  %s12894_s27 = smov 8  }
  0x34   :  { %53 = dma.hbm_to_vmem [thread:$0]  %s16071_s3, 2048, %s48_s28, [#allocation6], %s12893_s1, %s12893_s1, %s12894_s27  }
  0x35   :  { %s12895_s16 = smov [#allocation8]   ;;  %s12836_s20 = scalar_lea.hbm %s16073_s5, 2048 }
  0x36   :  { %s61_s17 = sshll.u32 %s12895_s16, 4  ;;  %p12837_p10 = scmp.ne.s32.totalorder %s16073_s5, %s12836_s20  ;;  %s62_s17 = int_to_ptr.vmem [resolvable:$true] %s61_s17 }
  0x37   :  { %p12840_p11 = scmp.lt.u32.totalorder %s12836_s20, %s16073_s5 }
  0x39   :  { %p12842_p12 = pnand %p12840_p11, %p12837_p10 }
  0x3b   :  { %12845 = shalt.err (!%p12842_p12)
}
  0x3c   :  { %s12846_s2 = scalar_lea.vmem %s62_s17, 2048  ;;  %p12851_p0 = scmp.lt.s32.totalorder %s62_s17, %s62_s17 }
  0x3d   :  { %p12847_p13 = scmp.ne.s32.totalorder %s62_s17, %s12846_s2  ;;  %p12852_p1 = scmp.lt.s32.totalorder %s12846_s2, %s12846_s2 }
  0x3f   :  { %p12853_p2 = por %p12852_p1, %p12851_p0 }
  0x41   :  { %p12854_p3 = pnand %p12853_p2, %p12847_p13 }
  0x43   :  { %12857 = shalt.err (!%p12854_p3)
}
  0x44   :  { %67 = dma.hbm_to_vmem [thread:$0]  %s16073_s5, 2048, %s62_s17, [#allocation9], %s12893_s1, %s12893_s1, %s12894_s27  }
  0x45   :  { %12880 = dma.done.wait [#allocation3], 4096  }
  0x46   :  { %12881 = vsyncadd [#allocation3], 4294963200 }
  0x47   :  { %12882 = dma.done.wait [#allocation6], 6144  }
  0x48   :  { %12883 = vsyncadd [#allocation6], 4294961152 }
  0x49   :  { %12884 = dma.done.wait [#allocation9], 2048  }
  0x4a   :  { %12885 = vsyncadd [#allocation9], 4294965248  ;;  %v12896_v0 = vmov 0   ;;  %v16079_v1 = vmov 0.0   ;;  %v84_v2 = vld [vmem:[%s16068_s0 + $0x10] sm:$0xff]  ;;  %v82_v3 = vld [vmem:[%s16068_s0] sm:$0xff] }
  0x4b   :  { %12673 = vset.pattern.permute.xlu1 %v12896_v0  ;;  %12672 = vset.pattern.permute.xlu0 %v12896_v0  ;;  %v85_v4 = vld [vmem:[%s16068_s0 + $0x18] sm:$0xff]  ;;  %v83_v5 = vld [vmem:[%s16068_s0 + $0x8] sm:$0xff]  ;;  %v140_v9 = vld [vmem:[#allocation2] sm:$0xff]  ;;  %vm12901_vm9 = vmmov 0   ;;  %s12902_s20 = smov [#allocation10]  }
  0x4c   :  { %268 = vmatprep.mubr.f32.mxu1 %v16079_v1  ;;  %3721 = vmatprep.mubr.f32.mxu0 %v16079_v1  ;;  %v141_v6 = vld [vmem:[#allocation2 + $0x8] sm:$0xff]  ;;  %v143_v7 = vld [vmem:[#allocation2 + $0x18] sm:$0xff]  ;;  %v142_v10 = vld [vmem:[#allocation2 + $0x10] sm:$0xff]  ;;  %v174_v14 = vand.u32 4294901760, %v140_v9  ;;  %s9758_s21 = sshll.u32 %s12902_s20, 4  ;;  %s9759_s21 = int_to_ptr.vmem [resolvable:$true] %s9758_s21 }
  0x4d   :  { %99 = vperm.xlu1 %12673, %v84_v2   ;;  %93 = vperm.xlu0 %12672, %v82_v3   ;;  %v172_v8 = vand.u32 4294901760, %v141_v6  ;;  %v87_v11 = vld [vmem:[%s16068_s0 + $0x28] sm:$0xff]  ;;  %v86_v12 = vld [vmem:[%s16068_s0 + $0x20] sm:$0xff]  ;;  %v176_v13 = vand.u32 4294901760, %v143_v7  ;;  %v178_v15 = vand.u32 4294901760, %v142_v10  ;;  %v147_v17 = vld [vmem:[#allocation2 + $0x38] sm:$0xff]  ;;  %p12863_p5 = scmp.lt.s32.totalorder %s9759_s21, %s9759_s21 }
  0x4e   :  { %v145_v16 = vld [vmem:[#allocation2 + $0x28] sm:$0xff]  ;;  %v144_v18 = vld [vmem:[#allocation2 + $0x20] sm:$0xff]  ;;  %v184_v21 = vand.u32 4294901760, %v147_v17  ;;  %v146_v22 = vld [vmem:[#allocation2 + $0x30] sm:$0xff]  ;;  %v13026_v29 = vsub.f32 %v140_v9, %v174_v14  ;;  %s12858_s22 = scalar_lea.vmem %s9759_s21, 128 }
  0x4f   :  { %v13018_v19 = vsub.f32 %v141_v6, %v172_v8  ;;  %v180_v20 = vand.u32 4294901760, %v145_v16  ;;  %v182_v23 = vand.u32 4294901760, %v144_v18  ;;  %v149_v24 = vld [vmem:[#allocation2 + $0x48] sm:$0xff]  ;;  %v151_v25 = vld [vmem:[#allocation2 + $0x58] sm:$0xff]  ;;  %v13020_v26 = vpack.c.bf16 %v176_v13, %v172_v8  ;;  %v148_v30 = vld [vmem:[#allocation2 + $0x40] sm:$0xff]  ;;  %p12859_p4 = scmp.ne.s32.totalorder %s9759_s21, %s12858_s22  ;;  %p12864_p6 = scmp.lt.s32.totalorder %s12858_s22, %s12858_s22 }
  0x50   :  { %v13022_v27 = vsub.f32 %v143_v7, %v176_v13  ;;  %v13024_v28 = vpack.c.bf16 %v178_v15, %v174_v14  ;;  %v150_v31 = vld [vmem:[#allocation2 + $0x50] sm:$0xff]  ;;  %v153_v32 = vld [vmem:[#allocation2 + $0x68] sm:$0xff]  ;;  %v13028_v33 = vsub.f32 %v142_v10, %v178_v15  ;;  %v13034_v36 = vsub.f32 %v147_v17, %v184_v21  ;;  %v155_v37 = vld [vmem:[#allocation2 + $0x78] sm:$0xff] }
  0x51   :  { %102 = vperm.xlu1 %12673, %v85_v4   ;;  %96 = vperm.xlu0 %12672, %v83_v5   ;;  %16389 = vst [vmem:[#allocation15_spill] sm:$0xff] %v13020_v26  ;;  %v13030_v34 = vpack.c.bf16 %v184_v21, %v180_v20  ;;  %v13032_v35 = vsub.f32 %v145_v16, %v180_v20  ;;  %v89_v38 = vld [vmem:[%s16068_s0 + $0x38] sm:$0xff]  ;;  %v88_v39 = vld [vmem:[%s16068_s0 + $0x30] sm:$0xff]  ;;  %v186_v40 = vand.u32 4294901760, %v146_v22  ;;  %v188_v42 = vand.u32 4294901760, %v149_v24  ;;  %v152_v48 = vld [vmem:[#allocation2 + $0x60] sm:$0xff]  ;;  %p12865_p7 = por %p12864_p6, %p12863_p5 }
  0x52   :  { %16390 = vst [vmem:[#allocation16_spill] sm:$0xff] %v13024_v28  ;;  %16393 = vst [vmem:[#allocation19_spill] sm:$0xff] %v13034_v36  ;;  %10444 = vmatprep.subr.bf16.mxu1 %v13020_v26  ;;  %v13043_v41 = vsub.f32 %v144_v18, %v182_v23  ;;  %v192_v43 = vand.u32 4294901760, %v151_v25  ;;  %v190_v44 = vand.u32 4294901760, %v148_v30  ;;  %v194_v45 = vand.u32 4294901760, %v150_v31  ;;  %v154_v49 = vld [vmem:[#allocation2 + $0x70] sm:$0xff] }
  0x53   :  { %16391 = vst [vmem:[#allocation17_spill] sm:$0xff] %v13030_v34  ;;  %16392 = vst [vmem:[#allocation18_spill] sm:$0xff] %v13032_v35  ;;  %v196_v46 = vand.u32 4294901760, %v153_v32  ;;  %v200_v47 = vand.u32 4294901760, %v155_v37  ;;  %10446 = vmatpush1.bf16.msra.mxu1 %v13024_v28  ;;  %v13046_v50 = vpack.c.bf16 %v186_v40, %v182_v23  ;;  %v13048_v51 = vsub.f32 %v146_v22, %v186_v40  ;;  %v157_v54 = vld [vmem:[#allocation2 + $0x88] sm:$0xff]  ;;  %v159_v55 = vld [vmem:[#allocation2 + $0x98] sm:$0xff]  ;;  %p12866_p8 = pnand %p12865_p7, %p12859_p4 }
  0x54   :  { %v13050_v52 = vpack.c.bf16 %v192_v43, %v188_v42  ;;  %v13052_v53 = vsub.f32 %v149_v24, %v188_v42  ;;  %v156_v56 = vld [vmem:[#allocation2 + $0x80] sm:$0xff]  ;;  %10448 = vmatprep.subr.bf16.mxu1 %v13030_v34  ;;  %v13055_v57 = vsub.f32 %v151_v25, %v192_v43  ;;  %v13057_v58 = vpack.c.bf16 %v194_v45, %v190_v44  ;;  %v158_v61 = vld [vmem:[#allocation2 + $0x90] sm:$0xff]  ;;  %v161_v62 = vld [vmem:[#allocation2 + $0xa8] sm:$0xff]  ;;  %s12899_s0 = smov 64  }
  0x55   :  { %108 = vperm.xlu1 %12673, %v87_v11   ;;  %105 = vperm.xlu0 %12672, %v86_v12   ;;  %16394 = vst [vmem:[#allocation20_spill] sm:$0xff] %v13046_v50  ;;  %16395 = vst [vmem:[#allocation21_spill] sm:$0xff] %v13048_v51  ;;  %v13059_v59 = vsub.f32 %v148_v30, %v190_v44  ;;  %v13061_v60 = vsub.f32 %v150_v31, %v194_v45  ;;  %v163_v63 = vld [vmem:[#allocation2 + $0xb8] sm:$0xff]  ;;  %v198_v4 = vand.u32 4294901760, %v152_v48  ;;  %v160_v13 = vld [vmem:[#allocation2 + $0xa0] sm:$0xff] }
  0x56   :  { %16396 = vst [vmem:[#allocation22_spill] sm:$0xff] %v13050_v52  ;;  %16397 = vst [vmem:[#allocation23_spill] sm:$0xff] %v13052_v53  ;;  %v13063_v0 = vpack.c.bf16 %v200_v47, %v196_v46  ;;  %v13065_v2 = vsub.f32 %v153_v32, %v196_v46  ;;  %v13067_v3 = vsub.f32 %v155_v37, %v200_v47  ;;  %v202_v5 = vand.u32 4294901760, %v154_v49  ;;  %v162_v14 = vld [vmem:[#allocation2 + $0xb0] sm:$0xff]  ;;  %v165_v20 = vld [vmem:[#allocation2 + $0xc8] sm:$0xff] }
  0x57   :  { %16398 = vst [vmem:[#allocation24_spill] sm:$0xff] %v13055_v57  ;;  %16399 = vst [vmem:[#allocation25_spill] sm:$0xff] %v13057_v58  ;;  %v204_v6 = vand.u32 4294901760, %v157_v54  ;;  %v208_v7 = vand.u32 4294901760, %v159_v55  ;;  %v206_v8 = vand.u32 4294901760, %v156_v56  ;;  %10450 = vmatpush1.bf16.msra.mxu1 %v13046_v50  ;;  %v13070_v9 = vsub.f32 %v152_v48, %v198_v4  ;;  %v167_v21 = vld [vmem:[#allocation2 + $0xd8] sm:$0xff] }
  0x58   :  { %16400 = vst [vmem:[#allocation26_spill] sm:$0xff] %v13061_v60  ;;  %16401 = vst [vmem:[#allocation27_spill] sm:$0xff] %v13063_v0  ;;  %v210_v10 = vand.u32 4294901760, %v158_v61  ;;  %v212_v11 = vand.u32 4294901760, %v161_v62  ;;  %v216_v12 = vand.u32 4294901760, %v163_v63  ;;  %10452 = vmatprep.subr.bf16.mxu1 %v13050_v52  ;;  %v13073_v15 = vpack.c.bf16 %v202_v5, %v198_v4  ;;  %v164_v22 = vld [vmem:[#allocation2 + $0xc0] sm:$0xff] }
  0x59   :  { %16402 = vst [vmem:[#allocation28_spill] sm:$0xff] %v13065_v2  ;;  %16403 = vst [vmem:[#allocation29_spill] sm:$0xff] %v13067_v3  ;;  %114 = vperm.xlu1 %12673, %v89_v38   ;;  %111 = vperm.xlu0 %12672, %v88_v39   ;;  %v13075_v16 = vsub.f32 %v154_v49, %v202_v5  ;;  %v13077_v17 = vpack.c.bf16 %v208_v7, %v204_v6  ;;  %v166_v31 = vld [vmem:[#allocation2 + $0xd0] sm:$0xff]  ;;  %v169_v32 = vld [vmem:[#allocation2 + $0xe8] sm:$0xff]  ;;  %v214_v42 = vand.u32 4294901760, %v160_v13 }
  0x5a   :  { %16404 = vst [vmem:[#allocation30_spill] sm:$0xff] %v13070_v9  ;;  %16405 = vst [vmem:[#allocation31_spill] sm:$0xff] %v13073_v15  ;;  %v13079_v18 = vsub.f32 %v157_v54, %v204_v6  ;;  %v13081_v23 = vsub.f32 %v159_v55, %v208_v7  ;;  %v13083_v24 = vpack.c.bf16 %v210_v10, %v206_v8  ;;  %v171_v37 = vld [vmem:[#allocation2 + $0xf8] sm:$0xff]  ;;  %v218_v43 = vand.u32 4294901760, %v162_v14  ;;  %v168_v55 = vld [vmem:[#allocation2 + $0xe0] sm:$0xff] }
  0x5b   :  { %16406 = vst [vmem:[#allocation32_spill] sm:$0xff] %v13075_v16  ;;  %16407 = vst [vmem:[#allocation33_spill] sm:$0xff] %v13077_v17  ;;  %v13085_v25 = vsub.f32 %v156_v56, %v206_v8  ;;  %v13087_v30 = vsub.f32 %v158_v61, %v210_v10  ;;  %v13089_v38 = vpack.c.bf16 %v216_v12, %v212_v11  ;;  %10454 = vmatpush1.bf16.msra.mxu1 %v13057_v58  ;;  %v170_v4 = vld [vmem:[#allocation2 + $0xf0] sm:$0xff] }
  0x5c   :  { %16408 = vst [vmem:[#allocation34_spill] sm:$0xff] %v13079_v18  ;;  %16409 = vst [vmem:[#allocation35_spill] sm:$0xff] %v13081_v23  ;;  %v13091_v39 = vsub.f32 %v161_v62, %v212_v11  ;;  %v13093_v40 = vsub.f32 %v163_v63, %v216_v12  ;;  %v220_v44 = vand.u32 4294901760, %v165_v20  ;;  %v224_v45 = vand.u32 4294901760, %v167_v21  ;;  %10456 = vmatprep.subr.bf16.mxu1 %v13063_v0 }
  0x5d   :  { %16410 = vst [vmem:[#allocation36_spill] sm:$0xff] %v13083_v24  ;;  %16411 = vst [vmem:[#allocation37_spill] sm:$0xff] %v13085_v25  ;;  %v222_v46 = vand.u32 4294901760, %v164_v22  ;;  %v13097_v47 = vsub.f32 %v160_v13, %v214_v42  ;;  %v226_v48 = vand.u32 4294901760, %v166_v31  ;;  %v228_v49 = vand.u32 4294901760, %v169_v32 }
  0x5e   :  { %16412 = vst [vmem:[#allocation38_spill] sm:$0xff] %v13087_v30  ;;  %16413 = vst [vmem:[#allocation39_spill] sm:$0xff] %v13089_v38  ;;  %v232_v54 = vand.u32 4294901760, %v171_v37  ;;  %v13099_v56 = vpack.c.bf16 %v218_v43, %v214_v42  ;;  %v13101_v61 = vsub.f32 %v162_v14, %v218_v43  ;;  %v13103_v62 = vpack.c.bf16 %v224_v45, %v220_v44 }
  0x5f   :  { %16414 = vst [vmem:[#allocation40_spill] sm:$0xff] %v13091_v39  ;;  %16415 = vst [vmem:[#allocation41_spill] sm:$0xff] %v13093_v40  ;;  %v13105_v63 = vsub.f32 %v165_v20, %v220_v44  ;;  %v13107_v5 = vsub.f32 %v167_v21, %v224_v45  ;;  %v13109_v6 = vpack.c.bf16 %v226_v48, %v222_v46  ;;  %10458 = vmatpush1.bf16.msra.mxu1 %v13073_v15 }
  0x60   :  { %16416 = vst [vmem:[#allocation42_spill] sm:$0xff] %v13097_v47  ;;  %16417 = vst [vmem:[#allocation43_spill] sm:$0xff] %v13099_v56  ;;  %v13111_v7 = vsub.f32 %v164_v22, %v222_v46  ;;  %v13113_v8 = vsub.f32 %v166_v31, %v226_v48  ;;  %v13116_v10 = vpack.c.bf16 %v232_v54, %v228_v49  ;;  %v230_v13 = vand.u32 4294901760, %v168_v55 }
  0x61   :  { %16418 = vst [vmem:[#allocation44_spill] sm:$0xff] %v13101_v61  ;;  %16419 = vst [vmem:[#allocation45_spill] sm:$0xff] %v13103_v62  ;;  %v13118_v11 = vsub.f32 %v169_v32, %v228_v49  ;;  %v13120_v12 = vsub.f32 %v171_v37, %v232_v54  ;;  %10460 = vmatprep.subr.bf16.mxu1 %v13077_v17  ;;  %v234_v14 = vand.u32 4294901760, %v170_v4  ;;  %v16078_v20 = vand.u32 4294901760, %v13018_v19 }
  0x62   :  { %16420 = vst [vmem:[#allocation46_spill] sm:$0xff] %v13105_v63  ;;  %16421 = vst [vmem:[#allocation47_spill] sm:$0xff] %v13107_v5  ;;  %v16077_v21 = vand.u32 4294901760, %v13022_v27  ;;  %v16076_v22 = vand.u32 4294901760, %v13026_v29  ;;  %v13126_v31 = vsub.f32 %v168_v55, %v230_v13  ;;  %v16081_v42 = vand.u32 4294901760, %v13028_v33 }
  0x63   :  { %16422 = vst [vmem:[#allocation48_spill] sm:$0xff] %v13109_v6  ;;  %16423 = vst [vmem:[#allocation49_spill] sm:$0xff] %v13111_v7  ;;  %v16084_v43 = vand.u32 4294901760, %v13032_v35  ;;  %v16085_v32 = vand.u32 4294901760, %v13034_v36  ;;  %v13131_v37 = vpack.c.bf16 %v234_v14, %v230_v13  ;;  %v13133_v44 = vsub.f32 %v170_v4, %v234_v14  ;;  %10462 = vmatpush1.bf16.msra.mxu1 %v13083_v24 }
  0x64   :  { %16424 = vst [vmem:[#allocation50_spill] sm:$0xff] %v13113_v8  ;;  %16425 = vst [vmem:[#allocation51_spill] sm:$0xff] %v13116_v10  ;;  %v360_v45 = vsub.f32 %v13018_v19, %v16078_v20  ;;  %v372_v46 = vsub.f32 %v13022_v27, %v16077_v21  ;;  %v366_v48 = vsub.f32 %v13026_v29, %v16076_v22  ;;  %10464 = vmatprep.subr.bf16.mxu1 %v13089_v38 }
  0x65   :  { %16426 = vst [vmem:[#allocation52_spill] sm:$0xff] %v13118_v11  ;;  %16427 = vst [vmem:[#allocation53_spill] sm:$0xff] %v13120_v12  ;;  %v378_v49 = vsub.f32 %v13028_v33, %v16081_v42  ;;  %v384_v54 = vsub.f32 %v13032_v35, %v16084_v43  ;;  %v396_v55 = vsub.f32 %v13034_v36, %v16085_v32  ;;  %v16091_v14 = vand.u32 4294901760, %v13043_v41 }
  0x66   :  { %16428 = vst [vmem:[#allocation54_spill] sm:$0xff] %v13126_v31  ;;  %16429 = vst [vmem:[#allocation55_spill] sm:$0xff] %v13131_v37  ;;  %v361_v4 = vand.u32 4294901760, %v360_v45  ;;  %v373_v13 = vand.u32 4294901760, %v372_v46  ;;  %v16089_v22 = vand.u32 4294901760, %v13048_v51  ;;  %v367_v21 = vand.u32 4294901760, %v366_v48 }
  0x67   :  { %16430 = vst [vmem:[#allocation56_spill] sm:$0xff] %v13133_v44  ;;  %v379_v20 = vand.u32 4294901760, %v378_v49  ;;  %v385_v1 = vand.u32 4294901760, %v384_v54  ;;  %v397_v42 = vand.u32 4294901760, %v396_v55  ;;  %v390_v43 = vsub.f32 %v13043_v41, %v16091_v14  ;;  %10466 = vmatpush1.bf16.msra.mxu1 %v13099_v56 }
  0x68   :  { %v10475_v24 = vpack.c.bf16 %v373_v13, %v361_v4  ;;  %v402_v32 = vsub.f32 %v13048_v51, %v16089_v22  ;;  %v16088_v45 = vand.u32 4294901760, %v13052_v53  ;;  %v16090_v48 = vand.u32 4294901760, %v13055_v57  ;;  %10468 = vmatprep.subr.bf16.mxu1 %v13103_v62 }
  0x69   :  { %v13165_v46 = vpack.c.bf16 %v379_v20, %v367_v21  ;;  %v13167_v38 = vpack.c.bf16 %v397_v42, %v385_v1  ;;  %v16092_v49 = vand.u32 4294901760, %v13059_v59  ;;  %v391_v54 = vand.u32 4294901760, %v390_v43 }
  0x6a   :  { %v403_v55 = vand.u32 4294901760, %v402_v32  ;;  %v408_v4 = vsub.f32 %v13052_v53, %v16088_v45  ;;  %v16093_v13 = vand.u32 4294901760, %v13061_v60  ;;  %v420_v20 = vsub.f32 %v13055_v57, %v16090_v48 }
  0x6b   :  { %v414_v1 = vsub.f32 %v13059_v59, %v16092_v49  ;;  %v16098_v21 = vand.u32 4294901760, %v13065_v2  ;;  %v16101_v42 = vand.u32 4294901760, %v13067_v3  ;;  %v16102_v22 = vand.u32 4294901760, %v13070_v9  ;;  %10470 = vmatpush1.bf16.msra.mxu1 %v13109_v6 }
  0x6c   :  { %v13184_v43 = vpack.c.bf16 %v403_v55, %v391_v54  ;;  %v409_v32 = vand.u32 4294901760, %v408_v4  ;;  %v426_v45 = vsub.f32 %v13061_v60, %v16093_v13  ;;  %v421_v48 = vand.u32 4294901760, %v420_v20  ;;  %10472 = vmatprep.subr.bf16.mxu1 %v13116_v10 }
  0x6d   :  { %v415_v14 = vand.u32 4294901760, %v414_v1  ;;  %v432_v49 = vsub.f32 %v13065_v2, %v16098_v21  ;;  %v444_v54 = vsub.f32 %v13067_v3, %v16101_v42  ;;  %v438_v4 = vsub.f32 %v13070_v9, %v16102_v22 }
  0x6e   :  { %v427_v55 = vand.u32 4294901760, %v426_v45  ;;  %v16107_v13 = vand.u32 4294901760, %v13075_v16  ;;  %v16105_v20 = vand.u32 4294901760, %v13079_v18  ;;  %v13203_v1 = vpack.c.bf16 %v421_v48, %v409_v32 }
  0x6f   :  { %v433_v6 = vand.u32 4294901760, %v432_v49  ;;  %v445_v62 = vand.u32 4294901760, %v444_v54  ;;  %v16106_v21 = vand.u32 4294901760, %v13081_v23  ;;  %v439_v42 = vand.u32 4294901760, %v438_v4  ;;  %10474 = vmatpush1.bf16.msra.mxu1 %v13131_v37 }
  0x70   :  { %v13206_v56 = vpack.c.bf16 %v427_v55, %v415_v14  ;;  %v450_v45 = vsub.f32 %v13075_v16, %v16107_v13  ;;  %v456_v22 = vsub.f32 %v13079_v18, %v16105_v20  ;;  %v16108_v14 = vand.u32 4294901760, %v13085_v25  ;;  %10476 = vmatprep.subr.bf16.mxu1 %v10475_v24 }
  0x71   :  { %v13215_v10 = vpack.c.bf16 %v445_v62, %v433_v6  ;;  %v468_v48 = vsub.f32 %v13081_v23, %v16106_v21  ;;  %v16111_v49 = vand.u32 4294901760, %v13087_v30  ;;  %v16112_v55 = vand.u32 4294901760, %v13091_v39 }
  0x72   :  { %v451_v32 = vand.u32 4294901760, %v450_v45  ;;  %v457_v54 = vand.u32 4294901760, %v456_v22  ;;  %v16117_v4 = vand.u32 4294901760, %v13093_v40  ;;  %v462_v62 = vsub.f32 %v13085_v25, %v16108_v14 }
  0x73   :  { %v469_v20 = vand.u32 4294901760, %v468_v48  ;;  %v474_v6 = vsub.f32 %v13087_v30, %v16111_v49  ;;  %v16120_v21 = vand.u32 4294901760, %v13097_v47  ;;  %v480_v24 = vsub.f32 %v13091_v39, %v16112_v55 }
  0x74   :  { %v13231_v13 = vpack.c.bf16 %v451_v32, %v439_v42  ;;  %v492_v22 = vsub.f32 %v13093_v40, %v16117_v4  ;;  %v16118_v45 = vand.u32 4294901760, %v13101_v61  ;;  %v463_v14 = vand.u32 4294901760, %v462_v62 }
  0x75   :  { %v13240_v48 = vpack.c.bf16 %v469_v20, %v457_v54  ;;  %v475_v37 = vand.u32 4294901760, %v474_v6  ;;  %v486_v49 = vsub.f32 %v13097_v47, %v16120_v21  ;;  %v481_v42 = vand.u32 4294901760, %v480_v24 }
  0x76   :  { %v493_v32 = vand.u32 4294901760, %v492_v22  ;;  %v498_v55 = vsub.f32 %v13101_v61, %v16118_v45  ;;  %v16119_v17 = vand.u32 4294901760, %v13105_v63  ;;  %v16123_v20 = vand.u32 4294901760, %v13107_v5 }
  0x77   :  { %v13249_v15 = vpack.c.bf16 %v475_v37, %v463_v14  ;;  %v487_v4 = vand.u32 4294901760, %v486_v49  ;;  %v16124_v54 = vand.u32 4294901760, %v13111_v7  ;;  %v16127_v22 = vand.u32 4294901760, %v13113_v8 }
  0x78   :  { %v13253_v62 = vpack.c.bf16 %v493_v32, %v481_v42  ;;  %v499_v6 = vand.u32 4294901760, %v498_v55  ;;  %v504_v24 = vsub.f32 %v13105_v63, %v16119_v17  ;;  %v516_v45 = vsub.f32 %v13107_v5, %v16123_v20 }
  0x79   :  { %v510_v37 = vsub.f32 %v13111_v7, %v16124_v54  ;;  %v16130_v14 = vand.u32 4294901760, %v13118_v11  ;;  %v16131_v49 = vand.u32 4294901760, %v13120_v12  ;;  %v522_v32 = vsub.f32 %v13113_v8, %v16127_v22 }
  0x7a   :  { %v13267_v42 = vpack.c.bf16 %v499_v6, %v487_v4  ;;  %v505_v55 = vand.u32 4294901760, %v504_v24  ;;  %v16132_v17 = vand.u32 4294901760, %v13126_v31  ;;  %v517_v21 = vand.u32 4294901760, %v516_v45 }
  0x7b   :  { %v511_v0 = vand.u32 4294901760, %v510_v37  ;;  %v528_v20 = vsub.f32 %v13118_v11, %v16130_v14  ;;  %v540_v54 = vsub.f32 %v13120_v12, %v16131_v49  ;;  %v523_v58 = vand.u32 4294901760, %v522_v32 }
  0x7c   :  { %v534_v4 = vsub.f32 %v13126_v31, %v16132_v17  ;;  %v16135_v6 = vand.u32 4294901760, %v13133_v44  ;;  %v13285_v45 = vpack.c.bf16 %v517_v21, %v505_v55 }
  0x7d   :  { %v529_v37 = vand.u32 4294901760, %v528_v20  ;;  %v541_v22 = vand.u32 4294901760, %v540_v54  ;;  %v13287_v52 = vpack.c.bf16 %v523_v58, %v511_v0 }
  0x7e   :  { %v535_v14 = vand.u32 4294901760, %v534_v4  ;;  %v546_v32 = vsub.f32 %v13133_v44, %v16135_v6  ;;  %v90_v4 = vlaneseq }
  0x7f   :  { %v13294_v17 = vpack.c.bf16 %v541_v22, %v529_v37  ;;  %v16434_v22 = vmov 0.0  }
  0x80   :  { %v547_v0 = vand.u32 4294901760, %v546_v32  ;;  %v13326_v37 = vand.u32 127, %v90_v4 }
  0x82   :  { %v13308_v55 = vpack.c.bf16 %v547_v0, %v535_v14  ;;  %16431 = vst [vmem:[#allocation57_spill] sm:$0xff] %v13326_v37 }
  0xcc   :  { %v13328_v20 = vpop.permute.xlu1 %99  ;;  %v13330_v32 = vpop.permute.xlu0 %93 }
  0xcd   :  { %16432 = vst [vmem:[#allocation58_spill] sm:$0xff] %v13328_v20  ;;  %16433 = vst [vmem:[#allocation59_spill] sm:$0xff] %v13330_v32  ;;  %vm118_vm0 = vcmp.eq.s32.totalorder %v13328_v20, %v13326_v37  ;;  %vm116_vm1 = vcmp.eq.s32.totalorder %v13330_v32, %v13326_v37  ;;  %v13539_v32 = vld [vmem:[#allocation5 + $0x50] sm:$0xff]  ;;  %v16455_v20 = vpack.c.bf16 %v13061_v60, %v13059_v59 }
  0xce   :  { %v9771_v14 = vsel %vm118_vm0, 1.0, %v16434_v22  ;;  %v9769_v4 = vsel %vm116_vm1, 1.0, %v16434_v22 }
  0xcf   :  { %v13344_v0 = vsub.f32 %v9769_v4, %v9769_v4  ;;  %v13346_v54 = vsub.f32 %v9771_v14, %v9771_v14 }
  0xd0   :  { %v13348_v6 = vpop.permute.xlu1 %102  ;;  %v13350_v58 = vpop.permute.xlu0 %96 }
  0xd1   :  { %16435 = vst [vmem:[#allocation60_spill] sm:$0xff] %v13344_v0  ;;  %16436 = vst [vmem:[#allocation61_spill] sm:$0xff] %v13348_v6  ;;  %vm119_vm2 = vcmp.eq.s32.totalorder %v13348_v6, %v13326_v37  ;;  %vm117_vm3 = vcmp.eq.s32.totalorder %v13350_v58, %v13326_v37  ;;  %v16146_v21 = vand.u32 4294901760, %v13344_v0  ;;  %v16459_v6 = vpack.c.bf16 %v13075_v16, %v13070_v9 }
  0xd2   :  { %16437 = vst [vmem:[#allocation62_spill] sm:$0xff] %v13350_v58  ;;  %v9772_v4 = vsel %vm119_vm2, 1.0, %v16434_v22  ;;  %v9770_v14 = vsel %vm117_vm3, 1.0, %v16434_v22  ;;  %v16451_v58 = vpack.c.bf16 %v13048_v51, %v13043_v41 }
  0xd3   :  { %v13365_v50 = vsub.f32 %v9770_v14, %v9770_v14  ;;  %v272_v49 = vsub.f32 %v13344_v0, %v16146_v21  ;;  %v13375_v26 = vsub.f32 %v9772_v4, %v9772_v4  ;;  %v16441_v0 = vand.u32 4294901760, %v13346_v54 }
  0xd4   :  { %v13370_v24 = vpop.permute.xlu1 %108  ;;  %v13372_v34 = vpop.permute.xlu0 %105 }
  0xd5   :  { %16438 = vst [vmem:[#allocation63_spill] sm:$0xff] %v13370_v24  ;;  %16439 = vst [vmem:[#allocation64_spill] sm:$0xff] %v13372_v34  ;;  %vm120_vm4 = vcmp.eq.s32.totalorder %v13372_v34, %v13326_v37  ;;  %v273_v31 = vand.u32 4294901760, %v272_v49  ;;  %v16151_v44 = vand.u32 4294901760, %v13365_v50  ;;  %vm121_vm5 = vcmp.eq.s32.totalorder %v13370_v24, %v13326_v37 }
  0xd6   :  { %v9773_v14 = vsel %vm120_vm4, 1.0, %v16434_v22  ;;  %v294_v11 = vsub.f32 %v13346_v54, %v16441_v0  ;;  %v16463_v34 = vpack.c.bf16 %v13087_v30, %v13085_v25  ;;  %v16467_v24 = vpack.c.bf16 %v13101_v61, %v13097_v47 }
  0xd7   :  { %274 = vmatmul.mubr.f32.vlgmr.msra.gmra.mrb[0].mxu1 %v273_v31  ;;  %v283_v4 = vsub.f32 %v13365_v50, %v16151_v44  ;;  %v13393_v49 = vsub.f32 %v9773_v14, %v9773_v14  ;;  %v16156_v31 = vand.u32 4294901760, %v13375_v26 }
  0xd8   :  { %10478 = vmatpush1.bf16.msra.mxu1 %v13165_v46  ;;  %v13390_v21 = vpop.permute.xlu0 %111  ;;  %279 = vmatprep.mubr.f32.mxu1 %v16434_v22  ;;  %v9774_v46 = vsel %vm121_vm5, 1.0, %v16434_v22  ;;  %v13406_v14 = vpop.permute.xlu1 %114  ;;  %v295_v0 = vand.u32 4294901760, %v294_v11 }
  0xd9   :  { %16440 = vst [vmem:[#allocation65_spill] sm:$0xff] %v13390_v21  ;;  %10480 = vmatprep.subr.bf16.mxu1 %v13167_v38  ;;  %v284_v28 = vand.u32 4294901760, %v283_v4  ;;  %vm122_vm6 = vcmp.eq.s32.totalorder %v13390_v21, %v13326_v37  ;;  %16442 = vst [vmem:[#allocation66_spill] sm:$0xff] %v13406_v14  ;;  %v13410_v38 = vsub.f32 %v9774_v46, %v9774_v46  ;;  %v16155_v44 = vand.u32 4294901760, %v13393_v49 }
  0xda   :  { %v305_v4 = vsub.f32 %v13375_v26, %v16156_v31  ;;  %vm123_vm7 = vcmp.eq.s32.totalorder %v13406_v14, %v13326_v37  ;;  %v16446_v31 = vpack.c.bf16 %v13028_v33, %v13026_v29  ;;  %v16496_v37 = vld [vmem:[#allocation15_spill] sm:$0xff] }
  0xdb   :  { %285 = vmatmul.mubr.f32.gmra.mrb[2].mxu1 %v284_v28  ;;  %v9775_v28 = vsel %vm122_vm6, 1.0, %v16434_v22  ;;  %v16154_v46 = vand.u32 4294901760, %v13410_v38 }
  0xdc   :  { %10482 = vmatpush1.bf16.msra.mxu1 %v13184_v43  ;;  %290 = vmatprep.mubr.f32.mxu1 %v16434_v22  ;;  %v13425_v11 = vsub.f32 %v9775_v28, %v9775_v28  ;;  %v306_v43 = vand.u32 4294901760, %v305_v4 }
  0xdd   :  { %10484 = vmatprep.subr.bf16.mxu1 %v13203_v1  ;;  %v316_v1 = vsub.f32 %v13393_v49, %v16155_v44  ;;  %v327_v4 = vsub.f32 %v13410_v38, %v16154_v46  ;;  %v13500_v46 = vld [vmem:[#allocation5 + $0x20] sm:$0xff]  ;;  %v13502_v44 = vld [vmem:[#allocation5 + $0x30] sm:$0xff] }
  0xde   :  { %v16153_v28 = vand.u32 4294901760, %v13425_v11 }
  0xdf   :  { %296 = vmatmul.mubr.f32.gmra.mrb[4].mxu1 %v295_v0  ;;  %v9776_v0 = vsel %vm123_vm7, 1.0, %v16434_v22 }
  0xe0   :  { %10486 = vmatpush1.bf16.msra.mxu1 %v13206_v56  ;;  %301 = vmatprep.mubr.f32.mxu1 %v16434_v22  ;;  %v13438_v56 = vsub.f32 %v9776_v0, %v9776_v0  ;;  %v13461_v0 = vld [vmem:[#allocation5 + $0x8] sm:$0xff] }
  0xe1   :  { %10488 = vmatprep.subr.bf16.mxu1 %v13215_v10  ;;  %v317_v10 = vand.u32 4294901760, %v316_v1 }
  0xe3   :  { %307 = vmatmul.mubr.f32.gmra.mrb[6].mxu1 %v306_v43  ;;  %v338_v43 = vsub.f32 %v13425_v11, %v16153_v28 }
  0xe4   :  { %10490 = vmatpush1.bf16.msra.mxu1 %v13231_v13  ;;  %312 = vmatprep.mubr.f32.mxu1 %v16434_v22  ;;  %v328_v13 = vand.u32 4294901760, %v327_v4  ;;  %v13467_v4 = vld [vmem:[#allocation5] sm:$0xff] }
  0xe5   :  { %10492 = vmatprep.subr.bf16.mxu1 %v13240_v48  ;;  %v16152_v48 = vand.u32 4294901760, %v13438_v56  ;;  %v339_v1 = vand.u32 4294901760, %v338_v43  ;;  %v16443_v43 = vpack.c.bf16 %v13022_v27, %v13018_v19 }
  0xe7   :  { %318 = vmatmul.mubr.f32.gmra.mrb[8].mxu1 %v317_v10 }
  0xe8   :  { %10494 = vmatpush1.bf16.msra.mxu1 %v13249_v15  ;;  %323 = vmatprep.mubr.f32.mxu1 %v16434_v22  ;;  %v349_v15 = vsub.f32 %v13438_v56, %v16152_v48 }
  0xe9   :  { %10496 = vmatprep.subr.bf16.mxu1 %v13253_v62 }
  0xea   :  { %v350_v62 = vand.u32 4294901760, %v349_v15  ;;  %v13484_v15 = vld [vmem:[#allocation5 + $0x28] sm:$0xff] }
  0xeb   :  { %329 = vmatmul.mubr.f32.gmra.mrb[10].mxu1 %v328_v13  ;;  %v13469_v13 = vld [vmem:[#allocation5 + $0x10] sm:$0xff]  ;;  %v16166_v48 = vand.u32 4294901760, %v13484_v15  ;;  %v16484_v21 = vand.u32 4294901760, %v13484_v15 }
  0xec   :  { %10498 = vmatpush1.bf16.msra.mxu1 %v13267_v42  ;;  %334 = vmatprep.mubr.f32.mxu1 %v16434_v22  ;;  %v13463_v42 = vld [vmem:[#allocation5 + $0x18] sm:$0xff] }
  0xed   :  { %10500 = vmatprep.subr.bf16.mxu1 %v13285_v45  ;;  %v16160_v45 = vand.u32 4294901760, %v13461_v0  ;;  %v16157_v10 = vand.u32 4294901760, %v13463_v42  ;;  %v16471_v61 = vand.u32 4294901760, %v13463_v42 }
  0xef   :  { %340 = vmatmul.mubr.f32.gmra.mrb[12].mxu1 %v339_v1  ;;  %v13482_v1 = vpack.c.bf16 %v16157_v10, %v16160_v45  ;;  %v16175_v10 = vand.u32 4294901760, %v13500_v46 }
  0xf0   :  { %10502 = vmatpush1.bf16.msra.mxu1 %v13287_v52  ;;  %345 = vmatprep.mubr.f32.mxu1 %v16434_v22  ;;  %v16159_v52 = vand.u32 4294901760, %v13467_v4 }
  0xf1   :  { %10504 = vmatprep.subr.bf16.mxu1 %v13294_v17  ;;  %v16158_v17 = vand.u32 4294901760, %v13469_v13  ;;  %16444 = vst [vmem:[#allocation67_spill] sm:$0xff] %v13482_v1  ;;  %11116 = vmatprep.subr.bf16.mxu0 %v13482_v1  ;;  %v16449_v1 = vmov 1.0  }
  0xf3   :  { %351 = vmatmul.mubr.f32.gmra.mrb[14].mxu1 %v350_v62  ;;  %v13486_v62 = vld [vmem:[#allocation5 + $0x38] sm:$0xff] }
  0xf4   :  { %10506 = vmatpush1.bf16.msra.mxu1 %v13308_v55  ;;  %581 = vmatprep.mubr.f32.mxu1 %v16434_v22  ;;  %v16161_v55 = vmov 1.0   ;;  %v16165_v28 = vand.u32 4294901760, %v13486_v62 }
  0xf5   :  { %10508 = vmatprep.subr.bf16.mxu1 %v16443_v43  ;;  %v13496_v43 = vpack.c.bf16 %v16158_v17, %v16159_v52  ;;  %v16174_v17 = vand.u32 4294901760, %v13502_v44  ;;  %v16447_v52 = vpack.c.bf16 %v13034_v36, %v13032_v35 }
  0xf6   :  { %v13518_v45 = vpack.c.bf16 %v16165_v28, %v16166_v48 }
  0xf7   :  { %9777 = vmatmul.mubr.msk.f32.vlgmr.msra.gmra.mrb[0].mxu1 %vm116_vm1, %v16161_v55  ;;  %16445 = vst [vmem:[#allocation68_spill] sm:$0xff] %v13496_v43  ;;  %11118 = vmatpush1.bf16.msra.mxu0 %v13496_v43  ;;  %v13521_v55 = vld [vmem:[#allocation5 + $0x48] sm:$0xff]  ;;  %v13537_v43 = vld [vmem:[#allocation5 + $0x40] sm:$0xff] }
  0xf8   :  { %10510 = vmatpush1.bf16.msra.mxu1 %v16446_v31  ;;  %588 = vmatprep.mubr.f32.mxu1 %v16434_v22  ;;  %16448 = vst [vmem:[#allocation69_spill] sm:$0xff] %v13518_v45  ;;  %v13523_v31 = vld [vmem:[#allocation5 + $0x58] sm:$0xff]  ;;  %v16180_v28 = vand.u32 4294901760, %v13521_v55  ;;  %v16188_v36 = vand.u32 4294901760, %v13537_v43 }
  0xf9   :  { %10512 = vmatprep.subr.bf16.mxu1 %v16447_v52  ;;  %v13533_v52 = vpack.c.bf16 %v16174_v17, %v16175_v10  ;;  %v16179_v48 = vand.u32 4294901760, %v13523_v31  ;;  %11120 = vmatprep.subr.bf16.mxu0 %v13518_v45  ;;  %v16187_v17 = vand.u32 4294901760, %v13539_v32  ;;  %v16452_v10 = vpack.c.bf16 %v13055_v57, %v13052_v53  ;;  %v13558_v45 = vld [vmem:[#allocation5 + $0x68] sm:$0xff]  ;;  %v13576_v57 = vld [vmem:[#allocation5 + $0x70] sm:$0xff] }
  0xfb   :  { %9778 = vmatmul.mubr.msk.f32.gmra.mrb[2].mxu1 %vm117_vm3, %v16449_v1  ;;  %16450 = vst [vmem:[#allocation70_spill] sm:$0xff] %v13533_v52  ;;  %v13555_v35 = vpack.c.bf16 %v16179_v48, %v16180_v28  ;;  %11122 = vmatpush1.bf16.msra.mxu0 %v13533_v52  ;;  %v16193_v48 = vand.u32 4294901760, %v13558_v45  ;;  %v13574_v52 = vld [vmem:[#allocation5 + $0x60] sm:$0xff] }
  0xfc   :  { %10514 = vmatpush1.bf16.msra.mxu1 %v16451_v58  ;;  %595 = vmatprep.mubr.f32.mxu1 %v16434_v22  ;;  %v13560_v58 = vld [vmem:[#allocation5 + $0x78] sm:$0xff]  ;;  %v16201_v53 = vand.u32 4294901760, %v13574_v52 }
  0xfd   :  { %10516 = vmatprep.subr.bf16.mxu1 %v16452_v10  ;;  %16453 = vst [vmem:[#allocation71_spill] sm:$0xff] %v13555_v35  ;;  %v13570_v10 = vpack.c.bf16 %v16187_v17, %v16188_v36  ;;  %v16192_v28 = vand.u32 4294901760, %v13560_v58  ;;  %11124 = vmatprep.subr.bf16.mxu0 %v13555_v35  ;;  %v16200_v17 = vand.u32 4294901760, %v13576_v57  ;;  %v16456_v36 = vpack.c.bf16 %v13067_v3, %v13065_v2  ;;  %v13595_v35 = vld [vmem:[#allocation5 + $0x88] sm:$0xff]  ;;  %v13613_v3 = vld [vmem:[#allocation5 + $0x90] sm:$0xff] }
  0xff   :  { %9779 = vmatmul.mubr.msk.f32.gmra.mrb[4].mxu1 %vm118_vm0, %v16449_v1  ;;  %16454 = vst [vmem:[#allocation72_spill] sm:$0xff] %v13570_v10  ;;  %v13592_v51 = vpack.c.bf16 %v16192_v28, %v16193_v48  ;;  %11126 = vmatpush1.bf16.msra.mxu0 %v13570_v10  ;;  %v16206_v28 = vand.u32 4294901760, %v13595_v35  ;;  %v13611_v10 = vld [vmem:[#allocation5 + $0x80] sm:$0xff] }
 0x100   :  { %10518 = vmatpush1.bf16.msra.mxu1 %v16455_v20  ;;  %602 = vmatprep.mubr.f32.mxu1 %v16434_v22  ;;  %v13597_v20 = vld [vmem:[#allocation5 + $0x98] sm:$0xff]  ;;  %v16214_v2 = vand.u32 4294901760, %v13611_v10 }
 0x101   :  { %10520 = vmatprep.subr.bf16.mxu1 %v16456_v36  ;;  %16457 = vst [vmem:[#allocation73_spill] sm:$0xff] %v13592_v51  ;;  %v13607_v36 = vpack.c.bf16 %v16200_v17, %v16201_v53  ;;  %v16205_v48 = vand.u32 4294901760, %v13597_v20  ;;  %11128 = vmatprep.subr.bf16.mxu0 %v13592_v51  ;;  %v16213_v17 = vand.u32 4294901760, %v13613_v3  ;;  %v16460_v53 = vpack.c.bf16 %v13081_v23, %v13079_v18  ;;  %v13632_v51 = vld [vmem:[#allocation5 + $0xa8] sm:$0xff]  ;;  %v13650_v23 = vld [vmem:[#allocation5 + $0xb0] sm:$0xff] }
 0x103   :  { %9780 = vmatmul.mubr.msk.f32.gmra.mrb[6].mxu1 %vm119_vm2, %v16449_v1  ;;  %16458 = vst [vmem:[#allocation74_spill] sm:$0xff] %v13607_v36  ;;  %v13629_v60 = vpack.c.bf16 %v16205_v48, %v16206_v28  ;;  %11130 = vmatpush1.bf16.msra.mxu0 %v13607_v36  ;;  %v16219_v48 = vand.u32 4294901760, %v13632_v51  ;;  %v13648_v36 = vld [vmem:[#allocation5 + $0xa0] sm:$0xff] }
 0x104   :  { %10522 = vmatpush1.bf16.msra.mxu1 %v16459_v6  ;;  %609 = vmatprep.mubr.f32.mxu1 %v16434_v22  ;;  %v13634_v6 = vld [vmem:[#allocation5 + $0xb8] sm:$0xff]  ;;  %v16227_v18 = vand.u32 4294901760, %v13648_v36 }
 0x105   :  { %10524 = vmatprep.subr.bf16.mxu1 %v16460_v53  ;;  %16461 = vst [vmem:[#allocation75_spill] sm:$0xff] %v13629_v60  ;;  %v13644_v53 = vpack.c.bf16 %v16213_v17, %v16214_v2  ;;  %v16218_v28 = vand.u32 4294901760, %v13634_v6  ;;  %11132 = vmatprep.subr.bf16.mxu0 %v13629_v60  ;;  %v16226_v17 = vand.u32 4294901760, %v13650_v23  ;;  %v16464_v2 = vpack.c.bf16 %v13093_v40, %v13091_v39  ;;  %v13669_v60 = vld [vmem:[#allocation5 + $0xc8] sm:$0xff]  ;;  %v13687_v40 = vld [vmem:[#allocation5 + $0xd0] sm:$0xff] }
 0x106   :  { %v13713_v39 = vsub.f32 %v13463_v42, %v16471_v61  ;;  %v16475_v61 = vand.u32 4294901760, %v13469_v13 }
 0x107   :  { %9781 = vmatmul.mubr.msk.f32.gmra.mrb[8].mxu1 %vm120_vm4, %v16449_v1  ;;  %16462 = vst [vmem:[#allocation76_spill] sm:$0xff] %v13644_v53  ;;  %v13666_v16 = vpack.c.bf16 %v16218_v28, %v16219_v48  ;;  %11134 = vmatpush1.bf16.msra.mxu0 %v13644_v53  ;;  %v16234_v28 = vand.u32 4294901760, %v13669_v60  ;;  %v13685_v53 = vld [vmem:[#allocation5 + $0xc0] sm:$0xff] }
 0x108   :  { %10526 = vmatpush1.bf16.msra.mxu1 %v16463_v34  ;;  %616 = vmatprep.mubr.f32.mxu1 %v16434_v22  ;;  %v13671_v34 = vld [vmem:[#allocation5 + $0xd8] sm:$0xff]  ;;  %v13734_v42 = vsub.f32 %v13469_v13, %v16475_v61  ;;  %v16476_v13 = vpack.c.bf16 %v13113_v8, %v13111_v7  ;;  %v13775_v7 = vsub.f32 %v13484_v15, %v16484_v21 }
 0x109   :  { %10528 = vmatprep.subr.bf16.mxu1 %v16464_v2  ;;  %16465 = vst [vmem:[#allocation77_spill] sm:$0xff] %v13666_v16  ;;  %v13681_v2 = vpack.c.bf16 %v16226_v17, %v16227_v18  ;;  %v16233_v48 = vand.u32 4294901760, %v13671_v34  ;;  %11136 = vmatprep.subr.bf16.mxu0 %v13666_v16  ;;  %v16235_v17 = vand.u32 4294901760, %v13687_v40  ;;  %v16468_v18 = vpack.c.bf16 %v13107_v5, %v13105_v63  ;;  %v13744_v63 = vld [vmem:[#allocation5 + $0xf0] sm:$0xff] }
 0x10a   :  { %v16470_v16 = vand.u32 4294901760, %v13461_v0 }
 0x10b   :  { %9782 = vmatmul.mubr.msk.f32.gmra.mrb[10].mxu1 %vm121_vm5, %v16449_v1  ;;  %16466 = vst [vmem:[#allocation78_spill] sm:$0xff] %v13681_v2  ;;  %v13703_v30 = vpack.c.bf16 %v16233_v48, %v16234_v28  ;;  %11138 = vmatpush1.bf16.msra.mxu0 %v13681_v2  ;;  %v13722_v48 = vld [vmem:[#allocation5 + $0xe8] sm:$0xff]  ;;  %v13724_v28 = vld [vmem:[#allocation5 + $0xf8] sm:$0xff]  ;;  %v13742_v2 = vld [vmem:[#allocation5 + $0xe0] sm:$0xff] }
 0x10c   :  { %10530 = vmatpush1.bf16.msra.mxu1 %v16467_v24  ;;  %623 = vmatprep.mubr.f32.mxu1 %v16434_v22  ;;  %v13708_v24 = vsub.f32 %v13461_v0, %v16470_v16  ;;  %v16474_v16 = vand.u32 4294901760, %v13467_v4 }
 0x10d   :  { %10532 = vmatprep.subr.bf16.mxu1 %v16468_v18  ;;  %16469 = vst [vmem:[#allocation79_spill] sm:$0xff] %v13703_v30  ;;  %v16472_v18 = vand.u32 4294901760, %v13685_v53  ;;  %11140 = vmatprep.subr.bf16.mxu0 %v13703_v30  ;;  %v16480_v30 = vand.u32 4294901760, %v13724_v28 }
 0x10e   :  { %v13729_v0 = vsub.f32 %v13467_v4, %v16474_v16  ;;  %v16477_v4 = vld [vmem:[#allocation52_spill] sm:$0xff]  ;;  %v16479_v16 = vand.u32 4294901760, %v13722_v48 }
 0x10f   :  { %v13720_v5 = vpack.c.bf16 %v16235_v17, %v16472_v18  ;;  %9783 = vmatmul.mubr.msk.f32.gmra.mrb[12].mxu1 %vm122_vm6, %v16449_v1  ;;  %v16478_v47 = vpack.c.bf16 %v13120_v12, %v16477_v4  ;;  %v16483_v17 = vand.u32 4294901760, %v13713_v39  ;;  %v16486_v12 = vand.u32 4294901760, %v13744_v63 }
 0x110   :  { %10534 = vmatpush1.bf16.msra.mxu1 %v16476_v13  ;;  %630 = vmatprep.mubr.f32.mxu1 %v16434_v22  ;;  %v13764_v8 = vpack.c.bf16 %v16480_v30, %v16479_v16  ;;  %v16482_v13 = vand.u32 4294901760, %v13708_v24  ;;  %v16488_v30 = vand.u32 4294901760, %v13729_v0 }
 0x111   :  { %16473 = vst [vmem:[#allocation80_spill] sm:$0xff] %v13720_v5  ;;  %10536 = vmatprep.subr.bf16.mxu1 %v16478_v47  ;;  %v1521_v18 = vsub.f32 %v13713_v39, %v16483_v17  ;;  %v16485_v47 = vand.u32 4294901760, %v13742_v2  ;;  %v16490_v17 = vand.u32 4294901760, %v13486_v62  ;;  %11142 = vmatpush1.bf16.msra.mxu0 %v13720_v5 }
 0x112   :  { %16481 = vst [vmem:[#allocation81_spill] sm:$0xff] %v13764_v8  ;;  %v1509_v61 = vsub.f32 %v13708_v24, %v16482_v13  ;;  %v1515_v16 = vsub.f32 %v13729_v0, %v16488_v30  ;;  %v16489_v13 = vand.u32 4294901760, %v13734_v42  ;;  %11144 = vmatprep.subr.bf16.mxu0 %v13764_v8 }
 0x113   :  { %v13781_v4 = vpack.c.bf16 %v16486_v12, %v16485_v47  ;;  %v13792_v9 = vsub.f32 %v13486_v62, %v16490_v17  ;;  %9784 = vmatmul.mubr.msk.f32.gmra.mrb[14].mxu1 %vm123_vm7, %v16449_v1  ;;  %v1522_v21 = vand.u32 4294901760, %v1521_v18  ;;  %v16491_v47 = vand.u32 4294901760, %v13500_v46  ;;  %v16492_v62 = vld [vmem:[#allocation56_spill] sm:$0xff] }
 0x114   :  { %v1527_v25 = vsub.f32 %v13734_v42, %v16489_v13  ;;  %v1510_v12 = vand.u32 4294901760, %v1509_v61  ;;  %v16493_v13 = vld [vmem:[#allocation54_spill] sm:$0xff]  ;;  %766 = vmatprep.mubr.f32.mxu1 %v16434_v22  ;;  %v1516_v5 = vand.u32 4294901760, %v1515_v16  ;;  %v16495_v18 = vand.u32 4294901760, %v13502_v44 }
 0x115   :  { %16487 = vst [vmem:[#allocation82_spill] sm:$0xff] %v13781_v4  ;;  %v13803_v30 = vsub.f32 %v13500_v46, %v16491_v47  ;;  %v16494_v17 = vpack.c.bf16 %v16492_v62, %v16493_v13  ;;  %v16498_v47 = vand.u32 4294901760, %v13775_v7  ;;  %v16499_v16 = vand.u32 4294901760, %v13521_v55  ;;  %11146 = vmatpush1.bf16.msra.mxu0 %v13781_v4  ;;  %v16509_v4 = vld [vmem:[#allocation17_spill] sm:$0xff]  ;;  %v16518_v62 = vld [vmem:[#allocation22_spill] sm:$0xff] }
 0x116   :  { %v1528_v14 = vand.u32 4294901760, %v1527_v25  ;;  %v13814_v15 = vsub.f32 %v13502_v44, %v16495_v18  ;;  %v13817_v46 = vpack.c.bf16 %v1522_v21, %v1510_v12  ;;  %v16501_v44 = vand.u32 4294901760, %v13792_v9  ;;  %v16506_v12 = vld [vmem:[#allocation16_spill] sm:$0xff] }
 0x117   :  { %10538 = vmatpush1.bf16.msra.mxu1 %v16494_v17  ;;  %v1533_v8 = vsub.f32 %v13775_v7, %v16498_v47  ;;  %v13826_v25 = vsub.f32 %v13521_v55, %v16499_v16  ;;  %v16502_v21 = vand.u32 4294901760, %v13523_v31  ;;  %v16503_v47 = vld [vmem:[#allocation60_spill] sm:$0xff]  ;;  %v16504_v55 = vand.u32 4294901760, %v13803_v30 }
 0x118   :  { %10540 = vmatprep.subr.bf16.mxu1 %v16496_v37  ;;  %16497 = vst [vmem:[#allocation54_spill] sm:$0xff] %v13817_v46  ;;  %v13828_v61 = vpack.c.bf16 %v1528_v14, %v1516_v5  ;;  %v1545_v18 = vsub.f32 %v13792_v9, %v16501_v44  ;;  %v16505_v16 = vand.u32 4294901760, %v13537_v43  ;;  %v16511_v1 = vand.u32 4294901760, %v13558_v45 }
 0x119   :  { %v13837_v46 = vsub.f32 %v13523_v31, %v16502_v21  ;;  %v1534_v17 = vand.u32 4294901760, %v1533_v8  ;;  %v1539_v5 = vsub.f32 %v13803_v30, %v16504_v55  ;;  %v16507_v21 = vand.u32 4294901760, %v13814_v15 }
 0x11a   :  { %16500 = vst [vmem:[#allocation83_spill] sm:$0xff] %v13828_v61  ;;  %769 = vmatmul.mubr.f32.vlgmr.msra.gmra.mrb[0].mxu1 %v16503_v47  ;;  %v13848_v44 = vsub.f32 %v13537_v43, %v16505_v16  ;;  %v1546_v31 = vand.u32 4294901760, %v1545_v18  ;;  %v16508_v55 = vand.u32 4294901760, %v13539_v32  ;;  %v16510_v16 = vand.u32 4294901760, %v13826_v25 }
 0x11b   :  { %10542 = vmatpush1.bf16.msra.mxu1 %v16506_v12  ;;  %774 = vmatprep.mubr.f32.mxu1 %v16434_v22  ;;  %v1551_v8 = vsub.f32 %v13814_v15, %v16507_v21  ;;  %v1540_v43 = vand.u32 4294901760, %v1539_v5  ;;  %v13869_v21 = vsub.f32 %v13558_v45, %v16511_v1  ;;  %v16514_v45 = vand.u32 4294901760, %v13560_v58 }
 0x11c   :  { %v13859_v14 = vsub.f32 %v13539_v32, %v16508_v55  ;;  %10544 = vmatprep.subr.bf16.mxu1 %v16509_v4  ;;  %v1557_v12 = vsub.f32 %v13826_v25, %v16510_v16  ;;  %v16262_v18 = vand.u32 4294901760, %v13848_v44  ;;  %v13871_v61 = vpack.c.bf16 %v1546_v31, %v1534_v17  ;;  %v16515_v17 = vld [vmem:[#allocation20_spill] sm:$0xff] }
 0x11d   :  { %v1552_v37 = vand.u32 4294901760, %v1551_v8  ;;  %v16513_v32 = vand.u32 4294901760, %v13837_v46  ;;  %v13885_v1 = vsub.f32 %v13560_v58, %v16514_v45  ;;  %v16519_v45 = vand.u32 4294901760, %v13869_v21 }
 0x11e   :  { %16512 = vst [vmem:[#allocation60_spill] sm:$0xff] %v13871_v61  ;;  %v16264_v5 = vand.u32 4294901760, %v13859_v14  ;;  %777 = vmatmul.mubr.f32.gmra.mrb[2].mxu1 %v13365_v50  ;;  %v1558_v4 = vand.u32 4294901760, %v1557_v12  ;;  %v1563_v16 = vsub.f32 %v13848_v44, %v16262_v18 }
 0x11f   :  { %v1569_v55 = vsub.f32 %v13837_v46, %v16513_v32  ;;  %10546 = vmatpush1.bf16.msra.mxu1 %v16515_v17  ;;  %782 = vmatprep.mubr.f32.mxu1 %v16434_v22  ;;  %v13889_v31 = vpack.c.bf16 %v1552_v37, %v1540_v43  ;;  %v16517_v32 = vand.u32 4294901760, %v13574_v52  ;;  %v1581_v61 = vsub.f32 %v13869_v21, %v16519_v45 }
 0x120   :  { %v1575_v12 = vsub.f32 %v13859_v14, %v16264_v5  ;;  %10548 = vmatprep.subr.bf16.mxu1 %v16518_v62  ;;  %v1564_v58 = vand.u32 4294901760, %v1563_v16  ;;  %v16266_v37 = vand.u32 4294901760, %v13885_v1  ;;  %v16520_v43 = vand.u32 4294901760, %v13576_v57 }
 0x121   :  { %16516 = vst [vmem:[#allocation84_spill] sm:$0xff] %v13889_v31  ;;  %v1570_v8 = vand.u32 4294901760, %v1569_v55  ;;  %v13897_v18 = vsub.f32 %v13574_v52, %v16517_v32  ;;  %v16522_v32 = vand.u32 4294901760, %v13595_v35  ;;  %v1582_v45 = vand.u32 4294901760, %v1581_v61 }
 0x122   :  { %v13907_v55 = vsub.f32 %v13576_v57, %v16520_v43  ;;  %v1576_v31 = vand.u32 4294901760, %v1575_v12  ;;  %785 = vmatmul.mubr.f32.gmra.mrb[4].mxu1 %v13346_v54  ;;  %v1593_v62 = vsub.f32 %v13885_v1, %v16266_v37  ;;  %v16524_v12 = vld [vmem:[#allocation25_spill] sm:$0xff]  ;;  %v16527_v57 = vld [vmem:[#allocation27_spill] sm:$0xff] }
 0x123   :  { %v13909_v5 = vpack.c.bf16 %v1570_v8, %v1558_v4  ;;  %v16268_v52 = vand.u32 4294901760, %v13897_v18  ;;  %v13915_v16 = vsub.f32 %v13595_v35, %v16522_v32  ;;  %v16523_v4 = vand.u32 4294901760, %v13597_v20  ;;  %10550 = vmatpush1.bf16.msra.mxu1 %v16524_v12  ;;  %790 = vmatprep.mubr.f32.mxu1 %v16434_v22  ;;  %v16536_v12 = vld [vmem:[#allocation31_spill] sm:$0xff] }
 0x124   :  { %v13929_v35 = vpack.c.bf16 %v1576_v31, %v1564_v58  ;;  %v16526_v32 = vand.u32 4294901760, %v13611_v10  ;;  %10552 = vmatprep.subr.bf16.mxu1 %v16527_v57  ;;  %v16529_v58 = vand.u32 4294901760, %v13613_v3 }
 0x125   :  { %16521 = vst [vmem:[#allocation85_spill] sm:$0xff] %v13909_v5  ;;  %v13925_v8 = vsub.f32 %v13597_v20, %v16523_v4  ;;  %v1587_v61 = vsub.f32 %v13897_v18, %v16268_v52  ;;  %v1594_v20 = vand.u32 4294901760, %v1593_v62  ;;  %v16528_v4 = vand.u32 4294901760, %v13907_v55 }
 0x126   :  { %16525 = vst [vmem:[#allocation86_spill] sm:$0xff] %v13929_v35  ;;  %v13938_v37 = vsub.f32 %v13611_v10, %v16526_v32  ;;  %v13948_v52 = vsub.f32 %v13613_v3, %v16529_v58  ;;  %v16531_v35 = vand.u32 4294901760, %v13915_v16  ;;  %v16532_v62 = vand.u32 4294901760, %v13632_v51  ;;  %793 = vmatmul.mubr.f32.gmra.mrb[6].mxu1 %v13375_v26 }
 0x127   :  { %v1599_v5 = vsub.f32 %v13907_v55, %v16528_v4  ;;  %v1588_v43 = vand.u32 4294901760, %v1587_v61  ;;  %v13960_v4 = vpack.c.bf16 %v1594_v20, %v1582_v45  ;;  %v16535_v3 = vand.u32 4294901760, %v13925_v8  ;;  %10554 = vmatpush1.bf16.msra.mxu1 %v16536_v12  ;;  %798 = vmatprep.mubr.f32.mxu1 %v16434_v22  ;;  %v16539_v20 = vld [vmem:[#allocation33_spill] sm:$0xff] }
 0x128   :  { %16530 = vst [vmem:[#allocation87_spill] sm:$0xff] %v13948_v52  ;;  %v1605_v10 = vsub.f32 %v13915_v16, %v16531_v35  ;;  %v16271_v32 = vand.u32 4294901760, %v13938_v37  ;;  %v13957_v57 = vsub.f32 %v13632_v51, %v16532_v62  ;;  %v16537_v45 = vand.u32 4294901760, %v13634_v6  ;;  %10556 = vmatprep.subr.bf16.mxu1 %v16539_v20 }
 0x129   :  { %16534 = vst [vmem:[#allocation89_spill] sm:$0xff] %v13960_v4  ;;  %v1600_v31 = vand.u32 4294901760, %v1599_v5  ;;  %v1617_v61 = vsub.f32 %v13925_v8, %v16535_v3  ;;  %v16541_v4 = vand.u32 4294901760, %v13948_v52  ;;  %v16542_v12 = vand.u32 4294901760, %v13648_v36 }
 0x12a   :  { %16533 = vst [vmem:[#allocation88_spill] sm:$0xff] %v13957_v57  ;;  %v1606_v35 = vand.u32 4294901760, %v1605_v10  ;;  %v1611_v51 = vsub.f32 %v13938_v37, %v16271_v32  ;;  %v13975_v5 = vsub.f32 %v13634_v6, %v16537_v45  ;;  %v16544_v17 = vand.u32 4294901760, %v13957_v57  ;;  %801 = vmatmul.mubr.f32.gmra.mrb[8].mxu1 %v13393_v49 }
 0x12b   :  { %v13978_v3 = vpack.c.bf16 %v1600_v31, %v1588_v43  ;;  %v1618_v58 = vand.u32 4294901760, %v1617_v61  ;;  %v1623_v10 = vsub.f32 %v13948_v52, %v16541_v4  ;;  %v13986_v32 = vsub.f32 %v13648_v36, %v16542_v12  ;;  %806 = vmatprep.mubr.f32.mxu1 %v16434_v22  ;;  %v16554_v36 = vld [vmem:[#allocation39_spill] sm:$0xff] }
 0x12c   :  { %16538 = vst [vmem:[#allocation90_spill] sm:$0xff] %v13975_v5  ;;  %v1612_v62 = vand.u32 4294901760, %v1611_v51  ;;  %v1629_v6 = vsub.f32 %v13957_v57, %v16544_v17  ;;  %v16545_v43 = vand.u32 4294901760, %v13650_v23  ;;  %v16548_v12 = vand.u32 4294901760, %v13669_v60  ;;  %v16550_v17 = vld [vmem:[#allocation36_spill] sm:$0xff] }
 0x12d   :  { %16540 = vst [vmem:[#allocation91_spill] sm:$0xff] %v13978_v3  ;;  %16543 = vst [vmem:[#allocation92_spill] sm:$0xff] %v13986_v32  ;;  %v13998_v4 = vpack.c.bf16 %v1618_v58, %v1606_v35  ;;  %v1624_v61 = vand.u32 4294901760, %v1623_v10  ;;  %10558 = vmatpush1.bf16.msra.mxu1 %v16550_v17  ;;  %v16552_v35 = vand.u32 4294901760, %v13671_v34  ;;  %v16557_v3 = vand.u32 4294901760, %v13685_v53 }
 0x12e   :  { %v13995_v31 = vsub.f32 %v13650_v23, %v16545_v43  ;;  %v14004_v51 = vsub.f32 %v13669_v60, %v16548_v12  ;;  %v1630_v45 = vand.u32 4294901760, %v1629_v6  ;;  %v16551_v23 = vand.u32 4294901760, %v13975_v5  ;;  %10560 = vmatprep.subr.bf16.mxu1 %v16554_v36  ;;  %809 = vmatmul.mubr.f32.gmra.mrb[10].mxu1 %v13410_v38  ;;  %v16567_v36 = vld [vmem:[#allocation45_spill] sm:$0xff] }
 0x12f   :  { %16547 = vst [vmem:[#allocation94_spill] sm:$0xff] %v13998_v4  ;;  %v14015_v10 = vsub.f32 %v13671_v34, %v16552_v35  ;;  %v14018_v60 = vpack.c.bf16 %v1624_v61, %v1612_v62  ;;  %v16556_v12 = vand.u32 4294901760, %v13986_v32  ;;  %v16560_v62 = vand.u32 4294901760, %v13687_v40  ;;  %v16564_v35 = vld [vmem:[#allocation43_spill] sm:$0xff]  ;;  %814 = vmatprep.mubr.f32.mxu1 %v16434_v22 }
 0x130   :  { %16546 = vst [vmem:[#allocation93_spill] sm:$0xff] %v13995_v31  ;;  %16549 = vst [vmem:[#allocation95_spill] sm:$0xff] %v14004_v51  ;;  %v1641_v43 = vsub.f32 %v13975_v5, %v16551_v23  ;;  %v16275_v6 = vand.u32 4294901760, %v14004_v51  ;;  %v14027_v23 = vsub.f32 %v13685_v53, %v16557_v3  ;;  %v16559_v17 = vand.u32 4294901760, %v13995_v31 }
 0x131   :  { %16553 = vst [vmem:[#allocation96_spill] sm:$0xff] %v14015_v10  ;;  %16555 = vst [vmem:[#allocation97_spill] sm:$0xff] %v14018_v60  ;;  %v1635_v4 = vsub.f32 %v13986_v32, %v16556_v12  ;;  %v14036_v61 = vsub.f32 %v13687_v40, %v16560_v62  ;;  %10562 = vmatpush1.bf16.msra.mxu1 %v16564_v35  ;;  %v16569_v35 = vand.u32 4294901760, %v13724_v28 }
 0x132   :  { %16558 = vst [vmem:[#allocation98_spill] sm:$0xff] %v14027_v23  ;;  %v1642_v58 = vand.u32 4294901760, %v1641_v43  ;;  %v1647_v34 = vsub.f32 %v13995_v31, %v16559_v17  ;;  %v1653_v53 = vsub.f32 %v14004_v51, %v16275_v6  ;;  %v16562_v43 = vand.u32 4294901760, %v13722_v48  ;;  %10564 = vmatprep.subr.bf16.mxu1 %v16567_v36  ;;  %817 = vmatmul.mubr.f32.gmra.mrb[12].mxu1 %v13425_v11 }
 0x133   :  { %16561 = vst [vmem:[#allocation99_spill] sm:$0xff] %v14036_v61  ;;  %v1636_v12 = vand.u32 4294901760, %v1635_v4  ;;  %v16566_v4 = vand.u32 4294901760, %v14015_v10  ;;  %v16277_v6 = vand.u32 4294901760, %v14036_v61  ;;  %v16568_v20 = vand.u32 4294901760, %v14027_v23  ;;  %822 = vmatprep.mubr.f32.mxu1 %v16434_v22 }
 0x134   :  { %v14046_v17 = vsub.f32 %v13722_v48, %v16562_v43  ;;  %v14050_v40 = vpack.c.bf16 %v1642_v58, %v1630_v45  ;;  %v1648_v62 = vand.u32 4294901760, %v1647_v34  ;;  %v1654_v3 = vand.u32 4294901760, %v1653_v53 }
 0x135   :  { %v1665_v60 = vsub.f32 %v14015_v10, %v16566_v4  ;;  %v1659_v48 = vsub.f32 %v14027_v23, %v16568_v20  ;;  %v14064_v45 = vsub.f32 %v13724_v28, %v16569_v35  ;;  %v1671_v4 = vsub.f32 %v14036_v61, %v16277_v6  ;;  %v16578_v6 = vld [vmem:[#allocation51_spill] sm:$0xff] }
 0x136   :  { %16563 = vst [vmem:[#allocation100_spill] sm:$0xff] %v14046_v17  ;;  %16565 = vst [vmem:[#allocation101_spill] sm:$0xff] %v14050_v40  ;;  %v16278_v43 = vand.u32 4294901760, %v14046_v17  ;;  %v14066_v58 = vpack.c.bf16 %v1648_v62, %v1636_v12  ;;  %v16572_v53 = vand.u32 4294901760, %v13742_v2  ;;  %v16576_v62 = vld [vmem:[#allocation48_spill] sm:$0xff]  ;;  %v16580_v35 = vand.u32 4294901760, %v13022_v27  ;;  %825 = vmatmul.mubr.f32.gmra.mrb[14].mxu1 %v13438_v56 }
 0x137   :  { %16570 = vst [vmem:[#allocation102_spill] sm:$0xff] %v14064_v45  ;;  %v1666_v34 = vand.u32 4294901760, %v1665_v60  ;;  %v1660_v20 = vand.u32 4294901760, %v1659_v48  ;;  %v16574_v60 = vand.u32 4294901760, %v13744_v63  ;;  %10566 = vmatpush1.bf16.msra.mxu1 %v16576_v62  ;;  %v16583_v27 = vld [vmem:[#allocation55_spill] sm:$0xff]  ;;  %927 = vmatprep.mubr.f32.mxu1 %v16434_v22 }
 0x138   :  { %16571 = vst [vmem:[#allocation103_spill] sm:$0xff] %v14066_v58  ;;  %v14074_v40 = vsub.f32 %v13742_v2, %v16572_v53  ;;  %v1677_v28 = vsub.f32 %v14046_v17, %v16278_v43  ;;  %v1672_v53 = vand.u32 4294901760, %v1671_v4  ;;  %10568 = vmatprep.subr.bf16.mxu1 %v16578_v6  ;;  %v16579_v43 = vand.u32 4294901760, %v13018_v19 }
 0x139   :  { %v14084_v12 = vsub.f32 %v13744_v63, %v16574_v60  ;;  %v14088_v2 = vpack.c.bf16 %v1666_v34, %v1654_v3  ;;  %v16581_v63 = vand.u32 4294901760, %v14064_v45  ;;  %v16585_v4 = vand.u32 4294901760, %v13028_v33 }
 0x13a   :  { %16573 = vst [vmem:[#allocation104_spill] sm:$0xff] %v14074_v40  ;;  %v16282_v48 = vand.u32 4294901760, %v14074_v40  ;;  %v10571_v58 = vpack.c.bf16 %v16580_v35, %v16579_v43  ;;  %v1678_v36 = vand.u32 4294901760, %v1677_v28  ;;  %v14100_v17 = vpack.c.bf16 %v1672_v53, %v1660_v20  ;;  %v16586_v53 = vld [vmem:[#allocation18_spill] sm:$0xff] }
 0x13b   :  { %16575 = vst [vmem:[#allocation105_spill] sm:$0xff] %v14084_v12  ;;  %16577 = vst [vmem:[#allocation106_spill] sm:$0xff] %v14088_v2  ;;  %v1689_v60 = vsub.f32 %v14064_v45, %v16581_v63  ;;  %v16283_v62 = vand.u32 4294901760, %v14084_v12  ;;  %10570 = vmatpush1.bf16.msra.mxu1 %v16583_v27  ;;  %v16584_v43 = vand.u32 4294901760, %v13026_v29  ;;  %v14117_v35 = vpack.c.bf16 %v13713_v39, %v13708_v24 }
 0x13c   :  { %16582 = vst [vmem:[#allocation51_spill] sm:$0xff] %v14100_v17  ;;  %v1683_v3 = vsub.f32 %v14074_v40, %v16282_v48  ;;  %10572 = vmatprep.subr.bf16.mxu1 %v10571_v58  ;;  %v16587_v63 = vand.u32 4294901760, %v16586_v53  ;;  %v14127_v29 = vpack.c.bf16 %v13734_v42, %v13729_v0  ;;  %v16590_v33 = vand.u32 4294901760, %v16503_v47  ;;  %v16596_v53 = vld [vmem:[#allocation24_spill] sm:$0xff] }
 0x13d   :  { %v1690_v34 = vand.u32 4294901760, %v1689_v60  ;;  %v1695_v19 = vsub.f32 %v14084_v12, %v16283_v62  ;;  %v10573_v20 = vpack.c.bf16 %v16585_v4, %v16584_v43  ;;  %v16588_v60 = vld [vmem:[#allocation19_spill] sm:$0xff]  ;;  %v16591_v58 = vand.u32 4294901760, %v13043_v41  ;;  %v16592_v43 = vld [vmem:[#allocation21_spill] sm:$0xff] }
 0x13e   :  { %v1684_v28 = vand.u32 4294901760, %v1683_v3  ;;  %v16589_v48 = vand.u32 4294901760, %v16588_v60  ;;  %931 = vmatmul.mubr.f32.vlgmr.msra.gmra.mrb[0].mxu1 %v16590_v33  ;;  %v16593_v4 = vand.u32 4294901760, %v16592_v43  ;;  %v16597_v47 = vand.u32 4294901760, %v16596_v53 }
 0x13f   :  { %v14123_v17 = vpack.c.bf16 %v1690_v34, %v1678_v36  ;;  %v1696_v2 = vand.u32 4294901760, %v1695_v19  ;;  %10574 = vmatpush1.bf16.msra.mxu1 %v10573_v20  ;;  %936 = vmatprep.mubr.f32.mxu1 %v16434_v22  ;;  %v14140_v36 = vpack.c.bf16 %v13792_v9, %v13775_v7  ;;  %v16594_v34 = vld [vmem:[#allocation23_spill] sm:$0xff]  ;;  %v16599_v20 = vand.u32 4294901760, %v13365_v50 }
 0x140   :  { %v10575_v62 = vpack.c.bf16 %v16589_v48, %v16587_v63  ;;  %v10577_v48 = vpack.c.bf16 %v16593_v4, %v16591_v58  ;;  %v16595_v19 = vand.u32 4294901760, %v16594_v34  ;;  %v16600_v41 = vand.u32 4294901760, %v13059_v59  ;;  %v16604_v58 = vld [vmem:[#allocation28_spill] sm:$0xff]  ;;  %v16606_v4 = vld [vmem:[#allocation29_spill] sm:$0xff]  ;;  %v16609_v59 = vld [vmem:[#allocation30_spill] sm:$0xff] }
 0x141   :  { %v14131_v3 = vpack.c.bf16 %v1696_v2, %v1684_v28  ;;  %v14148_v2 = vpack.c.bf16 %v13814_v15, %v13803_v30  ;;  %v16601_v28 = vld [vmem:[#allocation26_spill] sm:$0xff]  ;;  %v14159_v33 = vpack.c.bf16 %v13837_v46, %v13826_v25  ;;  %v16605_v43 = vand.u32 4294901760, %v16604_v58  ;;  %v16615_v58 = vld [vmem:[#allocation35_spill] sm:$0xff] }
 0x142   :  { %10576 = vmatprep.subr.bf16.mxu1 %v10575_v62  ;;  %v10579_v63 = vpack.c.bf16 %v16597_v47, %v16595_v19  ;;  %940 = vmatmul.mubr.f32.gmra.mrb[2].mxu1 %v16599_v20  ;;  %v16602_v60 = vand.u32 4294901760, %v16601_v28  ;;  %v16607_v34 = vand.u32 4294901760, %v16606_v4  ;;  %v14167_v50 = vpack.c.bf16 %v13859_v14, %v13848_v44  ;;  %v16611_v47 = vld [vmem:[#allocation32_spill] sm:$0xff]  ;;  %v16613_v28 = vld [vmem:[#allocation34_spill] sm:$0xff] }
 0x143   :  { %16598 = vst [vmem:[#allocation55_spill] sm:$0xff] %v14148_v2  ;;  %10578 = vmatpush1.bf16.msra.mxu1 %v10577_v48  ;;  %945 = vmatprep.mubr.f32.mxu1 %v16434_v22  ;;  %16603 = vst [vmem:[#allocation18_spill] sm:$0xff] %v14159_v33  ;;  %v16608_v48 = vand.u32 4294901760, %v13346_v54  ;;  %v16610_v53 = vand.u32 4294901760, %v16609_v59  ;;  %v16612_v20 = vand.u32 4294901760, %v16611_v47  ;;  %v14186_v54 = vpack.c.bf16 %v13907_v55, %v13897_v18  ;;  %v16620_v59 = vld [vmem:[#allocation38_spill] sm:$0xff] }
 0x144   :  { %v10581_v62 = vpack.c.bf16 %v16602_v60, %v16600_v41  ;;  %10580 = vmatprep.subr.bf16.mxu1 %v10579_v63  ;;  %v10583_v19 = vpack.c.bf16 %v16607_v34, %v16605_v43  ;;  %v14178_v41 = vpack.c.bf16 %v13885_v1, %v13869_v21  ;;  %v16614_v60 = vand.u32 4294901760, %v16613_v28  ;;  %v16618_v34 = vld [vmem:[#allocation37_spill] sm:$0xff] }
 0x145   :  { %v10585_v63 = vpack.c.bf16 %v16612_v20, %v16610_v53  ;;  %v16616_v43 = vand.u32 4294901760, %v16615_v58  ;;  %v16621_v53 = vand.u32 4294901760, %v16620_v59  ;;  %v14197_v47 = vpack.c.bf16 %v13925_v8, %v13915_v16  ;;  %v16623_v20 = vld [vmem:[#allocation40_spill] sm:$0xff] }
 0x146   :  { %949 = vmatmul.mubr.f32.gmra.mrb[4].mxu1 %v16608_v48  ;;  %v16619_v48 = vand.u32 4294901760, %v16618_v34  ;;  %v16624_v28 = vand.u32 4294901760, %v16623_v20  ;;  %v16634_v20 = vld [vmem:[#allocation46_spill] sm:$0xff] }
 0x147   :  { %10582 = vmatpush1.bf16.msra.mxu1 %v10581_v62  ;;  %954 = vmatprep.mubr.f32.mxu1 %v16434_v22  ;;  %v10587_v4 = vpack.c.bf16 %v16616_v43, %v16614_v60  ;;  %v16617_v62 = vand.u32 4294901760, %v13375_v26  ;;  %16622 = vst [vmem:[#allocation19_spill] sm:$0xff] %v14197_v47  ;;  %v16625_v60 = vld [vmem:[#allocation41_spill] sm:$0xff]  ;;  %v14205_v26 = vpack.c.bf16 %v13948_v52, %v13938_v37 }
 0x148   :  { %10584 = vmatprep.subr.bf16.mxu1 %v10583_v19  ;;  %v10589_v19 = vpack.c.bf16 %v16621_v53, %v16619_v48  ;;  %v16626_v58 = vand.u32 4294901760, %v16625_v60  ;;  %v16631_v48 = vld [vmem:[#allocation44_spill] sm:$0xff]  ;;  %v14216_v53 = vpack.c.bf16 %v13975_v5, %v13957_v57  ;;  %v16636_v60 = vld [vmem:[#allocation47_spill] sm:$0xff]  ;;  %v16711_v5 = vld [vmem:[#allocation101_spill] sm:$0xff] }
 0x149   :  { %16627 = vst [vmem:[#allocation21_spill] sm:$0xff] %v14205_v26  ;;  %v16632_v59 = vand.u32 4294901760, %v16631_v48  ;;  %v16713_v57 = vld [vmem:[#allocation106_spill] sm:$0xff] }
 0x14a   :  { %958 = vmatmul.mubr.f32.gmra.mrb[6].mxu1 %v16617_v62  ;;  %v10591_v43 = vpack.c.bf16 %v16626_v58, %v16624_v28  ;;  %v16629_v62 = vld [vmem:[#allocation42_spill] sm:$0xff]  ;;  %16633 = vst [vmem:[#allocation23_spill] sm:$0xff] %v14216_v53  ;;  %v16635_v28 = vand.u32 4294901760, %v16634_v20  ;;  %v16637_v58 = vand.u32 4294901760, %v16636_v60  ;;  %v16645_v20 = vld [vmem:[#allocation52_spill] sm:$0xff]  ;;  %v16647_v60 = vld [vmem:[#allocation53_spill] sm:$0xff] }
 0x14b   :  { %10586 = vmatpush1.bf16.msra.mxu1 %v10585_v63  ;;  %963 = vmatprep.mubr.f32.mxu1 %v16434_v22  ;;  %v16628_v63 = vand.u32 4294901760, %v13393_v49  ;;  %v16630_v34 = vand.u32 4294901760, %v16629_v62  ;;  %v14224_v49 = vpack.c.bf16 %v13995_v31, %v13986_v32  ;;  %v16709_v32 = vld [vmem:[#allocation94_spill] sm:$0xff] }
 0x14c   :  { %10588 = vmatprep.subr.bf16.mxu1 %v10587_v4  ;;  %v10595_v52 = vpack.c.bf16 %v16637_v58, %v16635_v28  ;;  %v16646_v28 = vand.u32 4294901760, %v16645_v20  ;;  %v16648_v58 = vand.u32 4294901760, %v16647_v60  ;;  %v14258_v20 = vpack.c.bf16 %v14084_v12, %v14074_v40  ;;  %v16695_v40 = vld [vmem:[#allocation77_spill] sm:$0xff]  ;;  %v16708_v60 = vld [vmem:[#allocation91_spill] sm:$0xff] }
 0x14d   :  { %v10593_v4 = vpack.c.bf16 %v16632_v59, %v16630_v34  ;;  %16638 = vst [vmem:[#allocation24_spill] sm:$0xff] %v14224_v49  ;;  %v16642_v34 = vld [vmem:[#allocation50_spill] sm:$0xff]  ;;  %v14235_v59 = vpack.c.bf16 %v14015_v10, %v14004_v51  ;;  %v16704_v10 = vld [vmem:[#allocation84_spill] sm:$0xff]  ;;  %v16705_v51 = vld [vmem:[#allocation85_spill] sm:$0xff] }
 0x14e   :  { %967 = vmatmul.mubr.f32.gmra.mrb[8].mxu1 %v16628_v63  ;;  %v16640_v63 = vld [vmem:[#allocation49_spill] sm:$0xff]  ;;  %v16643_v48 = vand.u32 4294901760, %v16642_v34  ;;  %v10599_v31 = vpack.c.bf16 %v16648_v58, %v16646_v28  ;;  %v16654_v34 = vld [vmem:[#allocation100_spill] sm:$0xff]  ;;  %16656 = vst [vmem:[#allocation30_spill] sm:$0xff] %v14258_v20 }
 0x14f   :  { %10590 = vmatpush1.bf16.msra.mxu1 %v10589_v19  ;;  %972 = vmatprep.mubr.f32.mxu1 %v16434_v22  ;;  %v16639_v19 = vand.u32 4294901760, %v13410_v38  ;;  %v16641_v62 = vand.u32 4294901760, %v16640_v63  ;;  %16644 = vst [vmem:[#allocation26_spill] sm:$0xff] %v14235_v59  ;;  %v14243_v38 = vpack.c.bf16 %v14036_v61, %v14027_v23  ;;  %v16652_v63 = vld [vmem:[#allocation56_spill] sm:$0xff]  ;;  %v16701_v61 = vld [vmem:[#allocation54_spill] sm:$0xff] }
 0x150   :  { %10592 = vmatprep.subr.bf16.mxu1 %v10591_v43  ;;  %v16662_v58 = vld [vmem:[#allocation16_spill] sm:$0xff] }
 0x151   :  { %v10597_v43 = vpack.c.bf16 %v16643_v48, %v16641_v62  ;;  %16649 = vst [vmem:[#allocation28_spill] sm:$0xff] %v14243_v38  ;;  %v16653_v62 = vand.u32 4294901760, %v16652_v63  ;;  %v14254_v48 = vpack.c.bf16 %v14064_v45, %v16654_v34  ;;  %v16690_v28 = vld [vmem:[#allocation72_spill] sm:$0xff]  ;;  %v16697_v45 = vld [vmem:[#allocation79_spill] sm:$0xff]  ;;  %v16699_v34 = vld [vmem:[#allocation81_spill] sm:$0xff] }
 0x152   :  { %976 = vmatmul.mubr.f32.gmra.mrb[10].mxu1 %v16639_v19  ;;  %v16651_v19 = vand.u32 4294901760, %v16493_v13  ;;  %v16659_v13 = vmov 1.0   ;;  %v16694_v63 = vld [vmem:[#allocation76_spill] sm:$0xff] }
 0x153   :  { %10594 = vmatpush1.bf16.msra.mxu1 %v10593_v4  ;;  %981 = vmatprep.mubr.f32.mxu1 %v16434_v22  ;;  %v16650_v4 = vand.u32 4294901760, %v13425_v11  ;;  %16655 = vst [vmem:[#allocation29_spill] sm:$0xff] %v14254_v48  ;;  %v16657_v11 = vand.u32 4294901760, %v13438_v56  ;;  %v16665_v56 = vld [vmem:[#allocation20_spill] sm:$0xff] }
 0x154   :  { %10596 = vmatprep.subr.bf16.mxu1 %v10595_v52  ;;  %v10601_v52 = vpack.c.bf16 %v16653_v62, %v16651_v19  ;;  %v16666_v19 = vld [vmem:[#allocation22_spill] sm:$0xff]  ;;  %v16668_v62 = vld [vmem:[#allocation25_spill] sm:$0xff]  ;;  %v16703_v23 = vld [vmem:[#allocation60_spill] sm:$0xff] }
 0x156   :  { %985 = vmatmul.mubr.f32.gmra.mrb[12].mxu1 %v16650_v4  ;;  %v16692_v4 = vld [vmem:[#allocation74_spill] sm:$0xff] }
 0x157   :  { %10598 = vmatpush1.bf16.msra.mxu1 %v10597_v43  ;;  %990 = vmatprep.mubr.f32.mxu1 %v16434_v22  ;;  %v16658_v43 = vld [vmem:[#allocation15_spill] sm:$0xff] }
 0x158   :  { %10600 = vmatprep.subr.bf16.mxu1 %v10599_v31  ;;  %v16663_v31 = vld [vmem:[#allocation17_spill] sm:$0xff] }
 0x15a   :  { %994 = vmatmul.mubr.f32.gmra.mrb[14].mxu1 %v16657_v11  ;;  %v16696_v11 = vld [vmem:[#allocation78_spill] sm:$0xff] }
 0x15b   :  { %10602 = vmatpush1.bf16.msra.mxu1 %v10601_v52  ;;  %1160 = vmatprep.mubr.f32.mxu1 %v16434_v22  ;;  %v16669_v52 = vld [vmem:[#allocation27_spill] sm:$0xff] }
 0x15c   :  { %10604 = vmatprep.subr.bf16.mxu1 %v16658_v43  ;;  %v16671_v43 = vld [vmem:[#allocation31_spill] sm:$0xff] }
 0x15e   :  { %9785 = vmatmul.mubr.msk.f32.vlgmr.msra.gmra.mrb[0].mxu1 %vm116_vm1, %v16659_v13 }
 0x15f   :  { %10606 = vmatpush1.bf16.msra.mxu1 %v16662_v58  ;;  %1167 = vmatprep.mubr.f32.mxu1 %v16434_v22  ;;  %v16672_v58 = vld [vmem:[#allocation33_spill] sm:$0xff] }
 0x160   :  { %10608 = vmatprep.subr.bf16.mxu1 %v16663_v31  ;;  %v16698_v31 = vld [vmem:[#allocation80_spill] sm:$0xff] }
 0x162   :  { %9786 = vmatmul.mubr.msk.f32.gmra.mrb[2].mxu1 %vm117_vm3, %v16659_v13 }
 0x163   :  { %10610 = vmatpush1.bf16.msra.mxu1 %v16665_v56  ;;  %1174 = vmatprep.mubr.f32.mxu1 %v16434_v22  ;;  %v16674_v56 = vld [vmem:[#allocation36_spill] sm:$0xff] }
 0x164   :  { %10612 = vmatprep.subr.bf16.mxu1 %v16666_v19  ;;  %v16675_v19 = vld [vmem:[#allocation39_spill] sm:$0xff] }
 0x166   :  { %9787 = vmatmul.mubr.msk.f32.gmra.mrb[4].mxu1 %vm118_vm0, %v16659_v13 }
 0x167   :  { %10614 = vmatpush1.bf16.msra.mxu1 %v16668_v62  ;;  %1181 = vmatprep.mubr.f32.mxu1 %v16434_v22  ;;  %v16700_v62 = vld [vmem:[#allocation82_spill] sm:$0xff] }
 0x168   :  { %10616 = vmatprep.subr.bf16.mxu1 %v16669_v52  ;;  %v16677_v52 = vld [vmem:[#allocation43_spill] sm:$0xff] }
 0x16a   :  { %9788 = vmatmul.mubr.msk.f32.gmra.mrb[6].mxu1 %vm119_vm2, %v16659_v13 }
 0x16b   :  { %10618 = vmatpush1.bf16.msra.mxu1 %v16671_v43  ;;  %1188 = vmatprep.mubr.f32.mxu1 %v16434_v22  ;;  %v16678_v43 = vld [vmem:[#allocation45_spill] sm:$0xff] }
 0x16c   :  { %10620 = vmatprep.subr.bf16.mxu1 %v16672_v58  ;;  %v16702_v58 = vld [vmem:[#allocation83_spill] sm:$0xff] }
 0x16e   :  { %9789 = vmatmul.mubr.msk.f32.gmra.mrb[8].mxu1 %vm120_vm4, %v16659_v13 }
 0x16f   :  { %10622 = vmatpush1.bf16.msra.mxu1 %v16674_v56  ;;  %1195 = vmatprep.mubr.f32.mxu1 %v16434_v22  ;;  %v16680_v56 = vld [vmem:[#allocation48_spill] sm:$0xff] }
 0x170   :  { %10624 = vmatprep.subr.bf16.mxu1 %v16675_v19  ;;  %v16706_v19 = vld [vmem:[#allocation86_spill] sm:$0xff] }
 0x172   :  { %9790 = vmatmul.mubr.msk.f32.gmra.mrb[10].mxu1 %vm121_vm5, %v16659_v13 }
 0x173   :  { %10626 = vmatpush1.bf16.msra.mxu1 %v16677_v52  ;;  %1202 = vmatprep.mubr.f32.mxu1 %v16434_v22  ;;  %v16682_v52 = vand.u32 4294901760, %v13708_v24  ;;  %v16689_v24 = vld [vmem:[#allocation71_spill] sm:$0xff] }
 0x174   :  { %10628 = vmatprep.subr.bf16.mxu1 %v16678_v43  ;;  %v16683_v43 = vand.u32 4294901760, %v13713_v39  ;;  %v16688_v39 = vld [vmem:[#allocation70_spill] sm:$0xff] }
 0x176   :  { %9791 = vmatmul.mubr.msk.f32.gmra.mrb[12].mxu1 %vm122_vm6, %v16659_v13  ;;  %v14323_v12 = vpack.c.bf16 %v16683_v43, %v16682_v52  ;;  %v16691_v52 = vld [vmem:[#allocation73_spill] sm:$0xff]  ;;  %v16693_v43 = vld [vmem:[#allocation75_spill] sm:$0xff] }
 0x177   :  { %10630 = vmatpush1.bf16.msra.mxu1 %v16680_v56  ;;  %1209 = vmatprep.mubr.f32.mxu1 %v16434_v22  ;;  %v16685_v56 = vld [vmem:[#allocation67_spill] sm:$0xff] }
 0x178   :  { %10632 = vmatprep.subr.bf16.mxu1 %v16578_v6  ;;  %16684 = vst [vmem:[#allocation32_spill] sm:$0xff] %v14323_v12  ;;  %11148 = vmatprep.subr.bf16.mxu0 %v14323_v12  ;;  %v16686_v6 = vld [vmem:[#allocation68_spill] sm:$0xff] }
 0x17a   :  { %9792 = vmatmul.mubr.msk.f32.gmra.mrb[14].mxu1 %vm123_vm7, %v16659_v13 }
 0x17b   :  { %10634 = vmatpush1.bf16.msra.mxu1 %v16583_v27  ;;  %1313 = vmatprep.mubr.f32.mxu1 %v16434_v22  ;;  %v16687_v27 = vld [vmem:[#allocation69_spill] sm:$0xff] }
 0x17c   :  { %10636 = vmatprep.subr.bf16.mxu1 %v16685_v56 }
 0x17e   :  { %9793 = vmatmul.mubr.msk.f32.vlgmr.msra.gmra.mrb[0].mxu1 %vm116_vm1, %v16659_v13 }
 0x17f   :  { %10638 = vmatpush1.bf16.msra.mxu1 %v16686_v6  ;;  %1320 = vmatprep.mubr.f32.mxu1 %v16434_v22 }
 0x180   :  { %10640 = vmatprep.subr.bf16.mxu1 %v16687_v27 }
 0x182   :  { %9794 = vmatmul.mubr.msk.f32.gmra.mrb[2].mxu1 %vm117_vm3, %v16659_v13 }
 0x183   :  { %10642 = vmatpush1.bf16.msra.mxu1 %v16688_v39  ;;  %1327 = vmatprep.mubr.f32.mxu1 %v16434_v22 }
 0x184   :  { %10644 = vmatprep.subr.bf16.mxu1 %v16689_v24 }
 0x186   :  { %9795 = vmatmul.mubr.msk.f32.gmra.mrb[4].mxu1 %vm118_vm0, %v16659_v13 }
 0x187   :  { %10646 = vmatpush1.bf16.msra.mxu1 %v16690_v28  ;;  %1334 = vmatprep.mubr.f32.mxu1 %v16434_v22 }
 0x188   :  { %10648 = vmatprep.subr.bf16.mxu1 %v16691_v52 }
 0x18a   :  { %9796 = vmatmul.mubr.msk.f32.gmra.mrb[6].mxu1 %vm119_vm2, %v16659_v13 }
 0x18b   :  { %10650 = vmatpush1.bf16.msra.mxu1 %v16692_v4  ;;  %1341 = vmatprep.mubr.f32.mxu1 %v16434_v22 }
 0x18c   :  { %10652 = vmatprep.subr.bf16.mxu1 %v16693_v43 }
 0x18e   :  { %9797 = vmatmul.mubr.msk.f32.gmra.mrb[8].mxu1 %vm120_vm4, %v16659_v13 }
 0x18f   :  { %10654 = vmatpush1.bf16.msra.mxu1 %v16694_v63  ;;  %1348 = vmatprep.mubr.f32.mxu1 %v16434_v22 }
 0x190   :  { %10656 = vmatprep.subr.bf16.mxu1 %v16695_v40 }
 0x192   :  { %9798 = vmatmul.mubr.msk.f32.gmra.mrb[10].mxu1 %vm121_vm5, %v16659_v13 }
 0x193   :  { %10658 = vmatpush1.bf16.msra.mxu1 %v16696_v11  ;;  %1355 = vmatprep.mubr.f32.mxu1 %v16434_v22 }
 0x194   :  { %10660 = vmatprep.subr.bf16.mxu1 %v16697_v45 }
 0x196   :  { %9799 = vmatmul.mubr.msk.f32.gmra.mrb[12].mxu1 %vm122_vm6, %v16659_v13 }
 0x197   :  { %10662 = vmatpush1.bf16.msra.mxu1 %v16698_v31  ;;  %1362 = vmatprep.mubr.f32.mxu1 %v16434_v22 }
 0x198   :  { %10664 = vmatprep.subr.bf16.mxu1 %v16699_v34 }
 0x19a   :  { %9800 = vmatmul.mubr.msk.f32.gmra.mrb[14].mxu1 %vm123_vm7, %v16659_v13  ;;  %v16707_v13 = vld [vmem:[#allocation89_spill] sm:$0xff] }
 0x19b   :  { %10666 = vmatpush1.bf16.msra.mxu1 %v16700_v62  ;;  %1499 = vmatprep.mubr.f32.mxu1 %v16434_v22 }
 0x19c   :  { %10668 = vmatprep.subr.bf16.mxu1 %v16701_v61  ;;  %v16710_v61 = vld [vmem:[#allocation97_spill] sm:$0xff] }
 0x19e   :  { %1500 = vmatmul.mubr.f32.vlgmr.msra.gmra.mrb[0].mxu1 %v16434_v22 }
 0x19f   :  { %10670 = vmatpush1.bf16.msra.mxu1 %v16702_v58  ;;  %1730 = vmatprep.mubr.f32.mxu1 %v16434_v22  ;;  %v16712_v58 = vld [vmem:[#allocation103_spill] sm:$0xff] }
 0x1a0   :  { %10672 = vmatprep.subr.bf16.mxu1 %v16703_v23  ;;  %v16714_v23 = vld [vmem:[#allocation51_spill] sm:$0xff] }
 0x1a3   :  { %10674 = vmatpush1.bf16.msra.mxu1 %v16704_v10 }
 0x1a4   :  { %10676 = vmatprep.subr.bf16.mxu1 %v16705_v51 }
 0x1a7   :  { %10678 = vmatpush1.bf16.msra.mxu1 %v16706_v19 }
 0x1a8   :  { %10680 = vmatprep.subr.bf16.mxu1 %v16707_v13 }
 0x1ab   :  { %10682 = vmatpush1.bf16.msra.mxu1 %v16708_v60 }
 0x1ac   :  { %10684 = vmatprep.subr.bf16.mxu1 %v16709_v32 }
 0x1af   :  { %10686 = vmatpush1.bf16.msra.mxu1 %v16710_v61 }
 0x1b0   :  { %10688 = vmatprep.subr.bf16.mxu1 %v16711_v5 }
 0x1b3   :  { %10690 = vmatpush1.bf16.msra.mxu1 %v16712_v58 }
 0x1b4   :  { %10692 = vmatprep.subr.bf16.mxu1 %v16713_v57 }
 0x1b7   :  { %10694 = vmatpush1.bf16.msra.mxu1 %v16714_v23 }
 0x1b8   :  { %10696 = vmatprep.subr.bf16.mxu1 %v14123_v17 }
 0x1bb   :  { %10698 = vmatpush1.bf16.msra.mxu1 %v14131_v3 }
 0x1bc   :  { %10700 = vmatprep.subr.bf16.mxu1 %v14117_v35 }
 0x1be   :  { %1731 = vmatmul.mubr.f32.vlgmr.msra.gmra.mrb[0].mxu1 %v16434_v22 }
 0x1bf   :  { %10702 = vmatpush1.bf16.msra.mxu1 %v14127_v29  ;;  %1865 = vmatprep.mubr.f32.mxu1 %v16434_v22 }
 0x1c0   :  { %10704 = vmatprep.subr.bf16.mxu1 %v14140_v36 }
 0x1c3   :  { %10706 = vmatpush1.bf16.msra.mxu1 %v14148_v2 }
 0x1c4   :  { %10708 = vmatprep.subr.bf16.mxu1 %v14159_v33 }
 0x1c7   :  { %10710 = vmatpush1.bf16.msra.mxu1 %v14167_v50 }
 0x1c8   :  { %10712 = vmatprep.subr.bf16.mxu1 %v14178_v41 }
 0x1cb   :  { %10714 = vmatpush1.bf16.msra.mxu1 %v14186_v54 }
 0x1cc   :  { %10716 = vmatprep.subr.bf16.mxu1 %v14197_v47 }
 0x1cf   :  { %10718 = vmatpush1.bf16.msra.mxu1 %v14205_v26  ;;  %v16721_v26 = vand.u32 4294901760, %v13803_v30  ;;  %v16728_v30 = vand.u32 4294901760, %v13859_v14  ;;  %v16736_v14 = vand.u32 4294901760, %v13915_v16  ;;  %v16748_v16 = vld [vmem:[#allocation92_spill] sm:$0xff] }
 0x1d0   :  { %10720 = vmatprep.subr.bf16.mxu1 %v14216_v53 }
 0x1d3   :  { %10722 = vmatpush1.bf16.msra.mxu1 %v14224_v49  ;;  %v16719_v49 = vand.u32 4294901760, %v13792_v9  ;;  %v16725_v9 = vand.u32 4294901760, %v13837_v46  ;;  %v16733_v46 = vand.u32 4294901760, %v13897_v18  ;;  %v16743_v18 = vld [vmem:[#allocation88_spill] sm:$0xff] }
 0x1d4   :  { %10724 = vmatprep.subr.bf16.mxu1 %v14235_v59  ;;  %v16718_v59 = vand.u32 4294901760, %v13775_v7  ;;  %v16724_v7 = vand.u32 4294901760, %v13826_v25  ;;  %v16734_v25 = vand.u32 4294901760, %v13907_v55  ;;  %v16744_v55 = vand.u32 4294901760, %v16743_v18 }
 0x1d6   :  { %v14447_v53 = vpack.c.bf16 %v16719_v49, %v16718_v59  ;;  %v16727_v49 = vand.u32 4294901760, %v13848_v44  ;;  %v16737_v44 = vand.u32 4294901760, %v13925_v8  ;;  %v16749_v8 = vand.u32 4294901760, %v16748_v16  ;;  %v16763_v16 = vld [vmem:[#allocation100_spill] sm:$0xff] }
 0x1d7   :  { %10726 = vmatpush1.bf16.msra.mxu1 %v14243_v38 }
 0x1d8   :  { %10728 = vmatprep.subr.bf16.mxu1 %v14254_v48  ;;  %v16716_v48 = vand.u32 4294901760, %v13734_v42  ;;  %16720 = vst [vmem:[#allocation35_spill] sm:$0xff] %v14447_v53  ;;  %v14463_v42 = vpack.c.bf16 %v16725_v9, %v16724_v7  ;;  %v14470_v59 = vpack.c.bf16 %v16728_v30, %v16727_v49  ;;  %v16745_v49 = vld [vmem:[#allocation90_spill] sm:$0xff] }
 0x1d9   :  { %v16746_v30 = vand.u32 4294901760, %v16745_v49 }
 0x1da   :  { %16726 = vst [vmem:[#allocation38_spill] sm:$0xff] %v14463_v42  ;;  %16729 = vst [vmem:[#allocation40_spill] sm:$0xff] %v14470_v59 }
 0x1db   :  { %10730 = vmatpush1.bf16.msra.mxu1 %v14258_v20  ;;  %v16715_v20 = vand.u32 4294901760, %v13729_v0  ;;  %v16722_v0 = vand.u32 4294901760, %v13814_v15  ;;  %v16730_v15 = vand.u32 4294901760, %v13869_v21  ;;  %v16739_v21 = vand.u32 4294901760, %v13938_v37  ;;  %v16753_v37 = vld [vmem:[#allocation95_spill] sm:$0xff] }
 0x1dc   :  { %10732 = vmatprep.subr.bf16.mxu1 %v16685_v56 }
 0x1dd   :  { %v14440_v38 = vpack.c.bf16 %v16716_v48, %v16715_v20  ;;  %v14455_v47 = vpack.c.bf16 %v16722_v0, %v16721_v26  ;;  %v16731_v26 = vand.u32 4294901760, %v13885_v1  ;;  %v14484_v20 = vpack.c.bf16 %v16734_v25, %v16733_v46  ;;  %v16740_v1 = vld [vmem:[#allocation87_spill] sm:$0xff] }
 0x1de   :  { %1866 = vmatmul.mubr.f32.vlgmr.msra.gmra.mrb[0].mxu1 %v16434_v22  ;;  %v14491_v0 = vpack.c.bf16 %v16737_v44, %v16736_v14  ;;  %v16741_v7 = vand.u32 4294901760, %v16740_v1  ;;  %v16754_v14 = vand.u32 4294901760, %v16753_v37  ;;  %v16755_v44 = vld [vmem:[#allocation96_spill] sm:$0xff] }
 0x1df   :  { %10734 = vmatpush1.bf16.msra.mxu1 %v16686_v6  ;;  %1968 = vmatprep.mubr.f32.mxu1 %v16434_v22  ;;  %16717 = vst [vmem:[#allocation34_spill] sm:$0xff] %v14440_v38  ;;  %16723 = vst [vmem:[#allocation37_spill] sm:$0xff] %v14455_v47  ;;  %v14477_v48 = vpack.c.bf16 %v16731_v26, %v16730_v15  ;;  %v14505_v15 = vpack.c.bf16 %v16746_v30, %v16744_v55  ;;  %v16750_v26 = vld [vmem:[#allocation93_spill] sm:$0xff]  ;;  %v16760_v55 = vld [vmem:[#allocation99_spill] sm:$0xff] }
 0x1e0   :  { %10736 = vmatprep.subr.bf16.mxu1 %v16687_v27  ;;  %16735 = vst [vmem:[#allocation42_spill] sm:$0xff] %v14484_v20  ;;  %16738 = vst [vmem:[#allocation44_spill] sm:$0xff] %v14491_v0  ;;  %v14498_v9 = vpack.c.bf16 %v16741_v7, %v16739_v21  ;;  %v16751_v46 = vand.u32 4294901760, %v16750_v26  ;;  %v16756_v21 = vand.u32 4294901760, %v16755_v44  ;;  %v16758_v7 = vld [vmem:[#allocation98_spill] sm:$0xff]  ;;  %v16761_v49 = vand.u32 4294901760, %v16760_v55 }
 0x1e1   :  { %16732 = vst [vmem:[#allocation41_spill] sm:$0xff] %v14477_v48  ;;  %16747 = vst [vmem:[#allocation47_spill] sm:$0xff] %v14505_v15  ;;  %v16759_v18 = vand.u32 4294901760, %v16758_v7  ;;  %v16765_v26 = vld [vmem:[#allocation102_spill] sm:$0xff]  ;;  %v16768_v37 = vld [vmem:[#allocation104_spill] sm:$0xff] }
 0x1e2   :  { %16742 = vst [vmem:[#allocation46_spill] sm:$0xff] %v14498_v9  ;;  %v14512_v25 = vpack.c.bf16 %v16751_v46, %v16749_v8  ;;  %v14519_v1 = vpack.c.bf16 %v16756_v21, %v16754_v14  ;;  %v16764_v8 = vand.u32 4294901760, %v16763_v16  ;;  %v16766_v46 = vand.u32 4294901760, %v16765_v26  ;;  %v16770_v44 = vld [vmem:[#allocation105_spill] sm:$0xff]  ;;  %v16773_v7 = vld [vmem:[#allocation54_spill] sm:$0xff] }
 0x1e3   :  { %10738 = vmatpush1.bf16.msra.mxu1 %v16688_v39  ;;  %v14526_v30 = vpack.c.bf16 %v16761_v49, %v16759_v18  ;;  %v16769_v14 = vand.u32 4294901760, %v16768_v37  ;;  %v16771_v21 = vand.u32 4294901760, %v16770_v44 }
 0x1e4   :  { %10740 = vmatprep.subr.bf16.mxu1 %v16689_v24  ;;  %16752 = vst [vmem:[#allocation49_spill] sm:$0xff] %v14512_v25  ;;  %16757 = vst [vmem:[#allocation50_spill] sm:$0xff] %v14519_v1 }
 0x1e5   :  { %16762 = vst [vmem:[#allocation52_spill] sm:$0xff] %v14526_v30 }
 0x1e7   :  { %10742 = vmatpush1.bf16.msra.mxu1 %v16690_v28 }
 0x1e8   :  { %10744 = vmatprep.subr.bf16.mxu1 %v16691_v52 }
 0x1eb   :  { %10746 = vmatpush1.bf16.msra.mxu1 %v16692_v4 }
 0x1ec   :  { %10748 = vmatprep.subr.bf16.mxu1 %v16693_v43 }
 0x1ef   :  { %10750 = vmatpush1.bf16.msra.mxu1 %v16694_v63 }
 0x1f0   :  { %10752 = vmatprep.subr.bf16.mxu1 %v16695_v40 }
 0x1f3   :  { %10754 = vmatpush1.bf16.msra.mxu1 %v16696_v11 }
 0x1f4   :  { %10756 = vmatprep.subr.bf16.mxu1 %v16697_v45 }
 0x1f7   :  { %10758 = vmatpush1.bf16.msra.mxu1 %v16698_v31 }
 0x1f8   :  { %10760 = vmatprep.subr.bf16.mxu1 %v16699_v34 }
 0x1fb   :  { %10762 = vmatpush1.bf16.msra.mxu1 %v16700_v62 }
 0x1fc   :  { %10764 = vmatprep.subr.bf16.mxu1 %v14323_v12 }
 0x1fe   :  { %1969 = vmatmul.mubr.f32.vlgmr.msra.gmra.mrb[0].mxu1 %v16434_v22 }
 0x1ff   :  { %10766 = vmatpush1.bf16.msra.mxu1 %v14440_v38  ;;  %2135 = vmatprep.mubr.f32.mxu1 %v16434_v22 }
 0x200   :  { %10768 = vmatprep.subr.bf16.mxu1 %v14447_v53 }
 0x203   :  { %10770 = vmatpush1.bf16.msra.mxu1 %v14455_v47 }
 0x204   :  { %10772 = vmatprep.subr.bf16.mxu1 %v14463_v42 }
 0x207   :  { %10774 = vmatpush1.bf16.msra.mxu1 %v14470_v59 }
 0x208   :  { %10776 = vmatprep.subr.bf16.mxu1 %v14477_v48 }
 0x20b   :  { %10778 = vmatpush1.bf16.msra.mxu1 %v14484_v20 }
 0x20c   :  { %10780 = vmatprep.subr.bf16.mxu1 %v14491_v0 }
 0x20f   :  { %10782 = vmatpush1.bf16.msra.mxu1 %v14498_v9 }
 0x210   :  { %10784 = vmatprep.subr.bf16.mxu1 %v14505_v15  ;;  %v14533_v15 = vpack.c.bf16 %v16766_v46, %v16764_v8 }
 0x212   :  { %16767 = vst [vmem:[#allocation53_spill] sm:$0xff] %v14533_v15 }
 0x213   :  { %10786 = vmatpush1.bf16.msra.mxu1 %v14512_v25  ;;  %v14540_v25 = vpack.c.bf16 %v16771_v21, %v16769_v14 }
 0x214   :  { %10788 = vmatprep.subr.bf16.mxu1 %v14519_v1 }
 0x215   :  { %16772 = vst [vmem:[#allocation56_spill] sm:$0xff] %v14540_v25 }
 0x217   :  { %10790 = vmatpush1.bf16.msra.mxu1 %v14526_v30 }
 0x218   :  { %10792 = vmatprep.subr.bf16.mxu1 %v14533_v15 }
 0x21b   :  { %10794 = vmatpush1.bf16.msra.mxu1 %v14540_v25 }
 0x21c   :  { %10796 = vmatprep.subr.bf16.mxu1 %v16685_v56 }
 0x21e   :  { %2136 = vmatmul.mubr.f32.vlgmr.msra.gmra.mrb[0].mxu1 %v16434_v22 }
 0x21f   :  { %10798 = vmatpush1.bf16.msra.mxu1 %v16686_v6  ;;  %2238 = vmatprep.mubr.f32.mxu1 %v16434_v22 }
 0x220   :  { %10800 = vmatprep.subr.bf16.mxu1 %v16687_v27 }
 0x223   :  { %10802 = vmatpush1.bf16.msra.mxu1 %v16688_v39 }
 0x224   :  { %10804 = vmatprep.subr.bf16.mxu1 %v16689_v24 }
 0x227   :  { %10806 = vmatpush1.bf16.msra.mxu1 %v16690_v28 }
 0x228   :  { %10808 = vmatprep.subr.bf16.mxu1 %v16691_v52 }
 0x22b   :  { %10810 = vmatpush1.bf16.msra.mxu1 %v16692_v4 }
 0x22c   :  { %10812 = vmatprep.subr.bf16.mxu1 %v16693_v43 }
 0x22f   :  { %10814 = vmatpush1.bf16.msra.mxu1 %v16694_v63 }
 0x230   :  { %10816 = vmatprep.subr.bf16.mxu1 %v16695_v40 }
 0x233   :  { %10818 = vmatpush1.bf16.msra.mxu1 %v16696_v11 }
 0x234   :  { %10820 = vmatprep.subr.bf16.mxu1 %v16697_v45 }
 0x237   :  { %10822 = vmatpush1.bf16.msra.mxu1 %v16698_v31 }
 0x238   :  { %10824 = vmatprep.subr.bf16.mxu1 %v16699_v34 }
 0x23b   :  { %10826 = vmatpush1.bf16.msra.mxu1 %v16700_v62 }
 0x23c   :  { %10828 = vmatprep.subr.bf16.mxu1 %v16685_v56 }
 0x23e   :  { %2239 = vmatmul.mubr.f32.vlgmr.msra.gmra.mrb[0].mxu1 %v16434_v22 }
 0x23f   :  { %10830 = vmatpush1.bf16.msra.mxu1 %v16686_v6  ;;  %2365 = vmatprep.mubr.f32.mxu1 %v16434_v22 }
 0x240   :  { %10832 = vmatprep.subr.bf16.mxu1 %v16687_v27 }
 0x243   :  { %10834 = vmatpush1.bf16.msra.mxu1 %v16688_v39 }
 0x244   :  { %10836 = vmatprep.subr.bf16.mxu1 %v16689_v24 }
 0x247   :  { %10838 = vmatpush1.bf16.msra.mxu1 %v16690_v28 }
 0x248   :  { %10840 = vmatprep.subr.bf16.mxu1 %v16691_v52 }
 0x24b   :  { %10842 = vmatpush1.bf16.msra.mxu1 %v16692_v4 }
 0x24c   :  { %10844 = vmatprep.subr.bf16.mxu1 %v16693_v43 }
 0x24f   :  { %10846 = vmatpush1.bf16.msra.mxu1 %v16694_v63 }
 0x250   :  { %10848 = vmatprep.subr.bf16.mxu1 %v16695_v40 }
 0x253   :  { %10850 = vmatpush1.bf16.msra.mxu1 %v16696_v11 }
 0x254   :  { %10852 = vmatprep.subr.bf16.mxu1 %v16697_v45 }
 0x257   :  { %10854 = vmatpush1.bf16.msra.mxu1 %v16698_v31 }
 0x258   :  { %10856 = vmatprep.subr.bf16.mxu1 %v16699_v34 }
 0x25b   :  { %10858 = vmatpush1.bf16.msra.mxu1 %v16700_v62 }
 0x25c   :  { %10860 = vmatprep.subr.bf16.mxu1 %v16773_v7 }
 0x25d   :  { %v14581_v18 = vpop.f32.mrb[6].mxu1 }
 0x25e   :  { %16774 = vst [vmem:[#allocation15_spill] sm:$0xff] %v14581_v18  ;;  %v14583_v55 = vpop.f32.mrb[7].mxu1 }
 0x25f   :  { %16775 = vst [vmem:[#allocation59_spill] sm:$0xff] %v14583_v55 }
 0x261   :  { %v14585_v49 = vpop.f32.mrb[8].mxu1 }
 0x262   :  { %16776 = vst [vmem:[#allocation16_spill] sm:$0xff] %v14585_v49  ;;  %v14587_v16 = vpop.f32.mrb[9].mxu1 }
 0x263   :  { %16777 = vst [vmem:[#allocation17_spill] sm:$0xff] %v14587_v16 }
 0x265   :  { %v14589_v8 = vpop.f32.mrb[10].mxu1 }
 0x266   :  { %16778 = vst [vmem:[#allocation62_spill] sm:$0xff] %v14589_v8  ;;  %v14591_v26 = vpop.f32.mrb[11].mxu1 }
 0x267   :  { %16779 = vst [vmem:[#allocation20_spill] sm:$0xff] %v14591_v26  ;;  %v16784_v26 = vld [vmem:[#allocation57_spill] sm:$0xff] }
 0x268   :  { %vm1402_vm8 = vcmp.lt.s32.totalorder %v16784_v26, 64 }
 0x269   :  { %v14593_v46 = vpop.f32.mrb[12].mxu1 }
 0x26a   :  { %16780 = vst [vmem:[#allocation22_spill] sm:$0xff] %v14593_v46  ;;  %v14595_v37 = vpop.f32.mrb[13].mxu1 }
 0x26b   :  { %16781 = vst [vmem:[#allocation58_spill] sm:$0xff] %v14595_v37 }
 0x26d   :  { %v14597_v14 = vpop.f32.mrb[14].mxu1 }
 0x26e   :  { %16782 = vst [vmem:[#allocation25_spill] sm:$0xff] %v14597_v14  ;;  %v14599_v44 = vpop.f32.mrb[15].mxu1 }
 0x26f   :  { %16783 = vst [vmem:[#allocation27_spill] sm:$0xff] %v14599_v44 }
 0x311   :  { %v2240_v21 = vpop.f32.mrb[0].mxu1 }
 0x312   :  { %v9801_v18 = vmul.f32 -1.442695, %v2240_v21  ;;  %v2242_v7 = vpop.f32.mrb[1].mxu1 }
 0x313   :  { %v9802_v55 = vmul.f32 -1.442695, %v2242_v7 }
 0x314   :  { %12674 = vpow2.f32 %v9801_v18 }
 0x315   :  { %12676 = vpow2.f32 %v9802_v55 }
 0x316   :  { %12678 = vtanh.f32 %v2242_v7 }
 0x31e   :  { %v12675_v49 = vpop.eup %12674 }
 0x31f   :  { %v12677_v16 = vpop.eup %12676  ;;  %v2250_v8 = vadd.f32 1.0, %v12675_v49 }
 0x320   :  { %v2257_v25 = vadd.f32 1.0, %v12677_v16  ;;  %v12679_v46 = vpop.eup %12678 }
 0x321   :  { %12680 = vrcp.f32 %v2250_v8  ;;  %v2261_v44 = vsel %vm1402_vm8, %v12679_v46, 0.0 }
 0x322   :  { %12682 = vrcp.f32 %v2257_v25 }
 0x32b   :  { %v12681_v37 = vpop.eup %12680 }
 0x32c   :  { %v12683_v14 = vpop.eup %12682  ;;  %v2262_v21 = vmul.f32 %v12681_v37, %v2261_v44 }
 0x32d   :  { %v2260_v18 = vsel %vm1402_vm8, %v12679_v46, %v12683_v14  ;;  %v16786_v14 = vld [vmem:[#allocation83_spill] sm:$0xff] }
 0x32e   :  { %2263 = vrot.lane.b32.xlu0 %v2262_v21, %s12899_s0 }
 0x3a0   :  { %v2264_v7 = vpop.permute.xlu0 %2263 }
 0x3a1   :  { %v14607_v55 = vadd.f32 %v2264_v7, %v2262_v21  ;;  %v16787_v21 = vld [vmem:[#allocation60_spill] sm:$0xff]  ;;  %v16789_v7 = vld [vmem:[#allocation21_spill] sm:$0xff] }
 0x3a3   :  { %12684 = vtanh.f32 %v14607_v55 }
 0x3ad   :  { %v12685_v25 = vpop.eup %12684 }
 0x3ae   :  { %v14610_v49 = vmul.f32 %v12685_v25, %v2260_v18  ;;  %v16788_v18 = vld [vmem:[#allocation19_spill] sm:$0xff] }
 0x3af   :  { %v16790_v25 = vld [vmem:[#allocation23_spill] sm:$0xff] }
 0x3b0   :  { %16785 = vst [vmem:[#allocation61_spill] sm:$0xff] %v14610_v49  ;;  %v14613_v16 = vand.u32 4294901760, %v14610_v49 }
 0x3b2   :  { %v2367_v8 = vsub.f32 %v14610_v49, %v14613_v16  ;;  %v16793_v49 = vld [vmem:[#allocation28_spill] sm:$0xff] }
 0x3b4   :  { %v2368_v37 = vand.u32 4294901760, %v2367_v8 }
 0x3b6   :  { %v2369_v44 = vsub.f32 %v2367_v8, %v2368_v37 }
 0x3b8   :  { %v2370_v46 = vand.u32 4294901760, %v2369_v44  ;;  %v16791_v44 = vld [vmem:[#allocation24_spill] sm:$0xff] }
 0x3ba   :  { %2371 = vmatmul.mubr.f32.vlgmr.msra.gmra.mrb[2].mxu1 %v2370_v46  ;;  %v16792_v46 = vld [vmem:[#allocation26_spill] sm:$0xff] }
 0x3bb   :  { %10862 = vmatpush1.bf16.msra.mxu1 %v16786_v14  ;;  %2601 = vmatprep.mubr.f32.mxu1 %v16434_v22 }
 0x3bc   :  { %10864 = vmatprep.subr.bf16.mxu1 %v16787_v21 }
 0x3bf   :  { %10866 = vmatpush1.bf16.msra.mxu1 %v16704_v10 }
 0x3c0   :  { %10868 = vmatprep.subr.bf16.mxu1 %v16705_v51 }
 0x3c3   :  { %10870 = vmatpush1.bf16.msra.mxu1 %v16706_v19 }
 0x3c4   :  { %10872 = vmatprep.subr.bf16.mxu1 %v16707_v13 }
 0x3c7   :  { %10874 = vmatpush1.bf16.msra.mxu1 %v16708_v60 }
 0x3c8   :  { %10876 = vmatprep.subr.bf16.mxu1 %v16709_v32 }
 0x3cb   :  { %10878 = vmatpush1.bf16.msra.mxu1 %v16710_v61 }
 0x3cc   :  { %10880 = vmatprep.subr.bf16.mxu1 %v16711_v5 }
 0x3cf   :  { %10882 = vmatpush1.bf16.msra.mxu1 %v16712_v58 }
 0x3d0   :  { %10884 = vmatprep.subr.bf16.mxu1 %v16713_v57 }
 0x3d3   :  { %10886 = vmatpush1.bf16.msra.mxu1 %v16714_v23 }
 0x3d4   :  { %10888 = vmatprep.subr.bf16.mxu1 %v14123_v17 }
 0x3d7   :  { %10890 = vmatpush1.bf16.msra.mxu1 %v14131_v3 }
 0x3d8   :  { %10892 = vmatprep.subr.bf16.mxu1 %v14117_v35 }
 0x3da   :  { %2603 = vmatmul.mubr.f32.vlgmr.msra.gmra.mrb[2].mxu1 %v14613_v16 }
 0x3db   :  { %10894 = vmatpush1.bf16.msra.mxu1 %v14127_v29  ;;  %2737 = vmatprep.mubr.f32.mxu1 %v16434_v22 }
 0x3dc   :  { %10896 = vmatprep.subr.bf16.mxu1 %v14140_v36 }
 0x3df   :  { %10898 = vmatpush1.bf16.msra.mxu1 %v14148_v2  ;;  %v16794_v2 = vld [vmem:[#allocation29_spill] sm:$0xff] }
 0x3e0   :  { %10900 = vmatprep.subr.bf16.mxu1 %v14159_v33  ;;  %v16795_v33 = vld [vmem:[#allocation30_spill] sm:$0xff] }
 0x3e3   :  { %10902 = vmatpush1.bf16.msra.mxu1 %v14167_v50 }
 0x3e4   :  { %10904 = vmatprep.subr.bf16.mxu1 %v14178_v41 }
 0x3e7   :  { %10906 = vmatpush1.bf16.msra.mxu1 %v14186_v54 }
 0x3e8   :  { %10908 = vmatprep.subr.bf16.mxu1 %v16788_v18 }
 0x3eb   :  { %10910 = vmatpush1.bf16.msra.mxu1 %v16789_v7 }
 0x3ec   :  { %10912 = vmatprep.subr.bf16.mxu1 %v16790_v25 }
 0x3ef   :  { %10914 = vmatpush1.bf16.msra.mxu1 %v16791_v44 }
 0x3f0   :  { %10916 = vmatprep.subr.bf16.mxu1 %v16792_v46 }
 0x3f3   :  { %10918 = vmatpush1.bf16.msra.mxu1 %v16793_v49 }
 0x3f4   :  { %10920 = vmatprep.subr.bf16.mxu1 %v16794_v2 }
 0x3f7   :  { %10922 = vmatpush1.bf16.msra.mxu1 %v16795_v33 }
 0x3f8   :  { %10924 = vmatprep.subr.bf16.mxu1 %v16685_v56 }
 0x3fa   :  { %2740 = vmatmul.mubr.f32.vlgmr.msra.gmra.mrb[2].mxu1 %v2367_v8  ;;  %v16796_v8 = vld [vmem:[#allocation47_spill] sm:$0xff] }
 0x3fb   :  { %10926 = vmatpush1.bf16.msra.mxu1 %v16686_v6  ;;  %2842 = vmatprep.mubr.f32.mxu1 %v16434_v22 }
 0x3fc   :  { %10928 = vmatprep.subr.bf16.mxu1 %v16687_v27 }
 0x3ff   :  { %10930 = vmatpush1.bf16.msra.mxu1 %v16688_v39 }
 0x400   :  { %10932 = vmatprep.subr.bf16.mxu1 %v16689_v24 }
 0x403   :  { %10934 = vmatpush1.bf16.msra.mxu1 %v16690_v28 }
 0x404   :  { %10936 = vmatprep.subr.bf16.mxu1 %v16691_v52 }
 0x407   :  { %10938 = vmatpush1.bf16.msra.mxu1 %v16692_v4 }
 0x408   :  { %10940 = vmatprep.subr.bf16.mxu1 %v16693_v43 }
 0x40b   :  { %10942 = vmatpush1.bf16.msra.mxu1 %v16694_v63 }
 0x40c   :  { %10944 = vmatprep.subr.bf16.mxu1 %v16695_v40 }
 0x40f   :  { %10946 = vmatpush1.bf16.msra.mxu1 %v16696_v11 }
 0x410   :  { %10948 = vmatprep.subr.bf16.mxu1 %v16697_v45 }
 0x413   :  { %10950 = vmatpush1.bf16.msra.mxu1 %v16698_v31 }
 0x414   :  { %10952 = vmatprep.subr.bf16.mxu1 %v16699_v34 }
 0x417   :  { %10954 = vmatpush1.bf16.msra.mxu1 %v16700_v62 }
 0x418   :  { %10956 = vmatprep.subr.bf16.mxu1 %v14323_v12  ;;  %v16798_v12 = vld [vmem:[#allocation56_spill] sm:$0xff] }
 0x41a   :  { %2846 = vmatmul.mubr.f32.vlgmr.msra.gmra.mrb[2].mxu1 %v2368_v37  ;;  %v16797_v37 = vld [vmem:[#allocation49_spill] sm:$0xff] }
 0x41b   :  { %10958 = vmatpush1.bf16.msra.mxu1 %v14440_v38  ;;  %3012 = vmatprep.mubr.f32.mxu1 %v16434_v22 }
 0x41c   :  { %10960 = vmatprep.subr.bf16.mxu1 %v14447_v53 }
 0x41f   :  { %10962 = vmatpush1.bf16.msra.mxu1 %v14455_v47 }
 0x420   :  { %10964 = vmatprep.subr.bf16.mxu1 %v14463_v42 }
 0x423   :  { %10966 = vmatpush1.bf16.msra.mxu1 %v14470_v59 }
 0x424   :  { %10968 = vmatprep.subr.bf16.mxu1 %v14477_v48 }
 0x427   :  { %10970 = vmatpush1.bf16.msra.mxu1 %v14484_v20 }
 0x428   :  { %10972 = vmatprep.subr.bf16.mxu1 %v14491_v0 }
 0x42b   :  { %10974 = vmatpush1.bf16.msra.mxu1 %v14498_v9 }
 0x42c   :  { %10976 = vmatprep.subr.bf16.mxu1 %v16796_v8 }
 0x42f   :  { %10978 = vmatpush1.bf16.msra.mxu1 %v16797_v37 }
 0x430   :  { %10980 = vmatprep.subr.bf16.mxu1 %v14519_v1 }
 0x433   :  { %10982 = vmatpush1.bf16.msra.mxu1 %v14526_v30 }
 0x434   :  { %10984 = vmatprep.subr.bf16.mxu1 %v14533_v15 }
 0x437   :  { %10986 = vmatpush1.bf16.msra.mxu1 %v16798_v12 }
 0x438   :  { %10988 = vmatprep.subr.bf16.mxu1 %v16685_v56 }
 0x43a   :  { %3014 = vmatmul.mubr.f32.vlgmr.msra.gmra.mrb[2].mxu1 %v14613_v16 }
 0x43b   :  { %10990 = vmatpush1.bf16.msra.mxu1 %v16686_v6  ;;  %3116 = vmatprep.mubr.f32.mxu1 %v16434_v22 }
 0x43c   :  { %10992 = vmatprep.subr.bf16.mxu1 %v16687_v27 }
 0x43f   :  { %10994 = vmatpush1.bf16.msra.mxu1 %v16688_v39 }
 0x440   :  { %10996 = vmatprep.subr.bf16.mxu1 %v16689_v24 }
 0x443   :  { %10998 = vmatpush1.bf16.msra.mxu1 %v16690_v28 }
 0x444   :  { %11000 = vmatprep.subr.bf16.mxu1 %v16691_v52 }
 0x447   :  { %11002 = vmatpush1.bf16.msra.mxu1 %v16692_v4 }
 0x448   :  { %11004 = vmatprep.subr.bf16.mxu1 %v16693_v43 }
 0x44b   :  { %11006 = vmatpush1.bf16.msra.mxu1 %v16694_v63 }
 0x44c   :  { %11008 = vmatprep.subr.bf16.mxu1 %v16695_v40 }
 0x44f   :  { %11010 = vmatpush1.bf16.msra.mxu1 %v16696_v11 }
 0x450   :  { %11012 = vmatprep.subr.bf16.mxu1 %v16697_v45 }
 0x453   :  { %11014 = vmatpush1.bf16.msra.mxu1 %v16698_v31 }
 0x454   :  { %11016 = vmatprep.subr.bf16.mxu1 %v16699_v34 }
 0x457   :  { %11018 = vmatpush1.bf16.msra.mxu1 %v16700_v62 }
 0x458   :  { %11020 = vmatprep.subr.bf16.mxu1 %v16685_v56 }
 0x45a   :  { %3118 = vmatmul.mubr.f32.vlgmr.msra.gmra.mrb[2].mxu1 %v14613_v16  ;;  %v16799_v16 = vld [vmem:[#allocation54_spill] sm:$0xff] }
 0x45b   :  { %11022 = vmatpush1.bf16.msra.mxu1 %v16686_v6  ;;  %3244 = vmatprep.mubr.f32.mxu1 %v16434_v22 }
 0x45c   :  { %11024 = vmatprep.subr.bf16.mxu1 %v16687_v27 }
 0x45f   :  { %11026 = vmatpush1.bf16.msra.mxu1 %v16688_v39 }
 0x460   :  { %11028 = vmatprep.subr.bf16.mxu1 %v16689_v24 }
 0x463   :  { %11030 = vmatpush1.bf16.msra.mxu1 %v16690_v28 }
 0x464   :  { %11032 = vmatprep.subr.bf16.mxu1 %v16691_v52 }
 0x467   :  { %11034 = vmatpush1.bf16.msra.mxu1 %v16692_v4 }
 0x468   :  { %11036 = vmatprep.subr.bf16.mxu1 %v16693_v43 }
 0x46b   :  { %11038 = vmatpush1.bf16.msra.mxu1 %v16694_v63 }
 0x46c   :  { %11040 = vmatprep.subr.bf16.mxu1 %v16695_v40 }
 0x46f   :  { %11042 = vmatpush1.bf16.msra.mxu1 %v16696_v11 }
 0x470   :  { %11044 = vmatprep.subr.bf16.mxu1 %v16697_v45 }
 0x473   :  { %11046 = vmatpush1.bf16.msra.mxu1 %v16698_v31 }
 0x474   :  { %11048 = vmatprep.subr.bf16.mxu1 %v16699_v34 }
 0x477   :  { %11050 = vmatpush1.bf16.msra.mxu1 %v16700_v62 }
 0x478   :  { %11052 = vmatprep.subr.bf16.mxu1 %v16799_v16 }
 0x52d   :  { %v3119_v33 = vpop.f32.mrb[2].mxu1 }
 0x52e   :  { %v9803_v2 = vmul.f32 -1.442695, %v3119_v33  ;;  %v3121_v49 = vpop.f32.mrb[3].mxu1 }
 0x52f   :  { %v9804_v46 = vmul.f32 -1.442695, %v3121_v49 }
 0x530   :  { %12686 = vpow2.f32 %v9803_v2 }
 0x531   :  { %12688 = vpow2.f32 %v9804_v46  ;;  %v16802_v46 = vld [vmem:[#allocation21_spill] sm:$0xff] }
 0x532   :  { %12690 = vtanh.f32 %v3121_v49 }
 0x53a   :  { %v12687_v44 = vpop.eup %12686 }
 0x53b   :  { %v12689_v25 = vpop.eup %12688  ;;  %v3129_v11 = vadd.f32 1.0, %v12687_v44  ;;  %v16801_v44 = vld [vmem:[#allocation18_spill] sm:$0xff] }
 0x53c   :  { %v3136_v7 = vadd.f32 1.0, %v12689_v25  ;;  %v12691_v31 = vpop.eup %12690 }
 0x53d   :  { %12692 = vrcp.f32 %v3129_v11  ;;  %v3140_v62 = vsel %vm1402_vm8, %v12691_v31, %v14607_v55 }
 0x53e   :  { %12694 = vrcp.f32 %v3136_v7 }
 0x547   :  { %v12693_v45 = vpop.eup %12692 }
 0x548   :  { %v12695_v16 = vpop.eup %12694  ;;  %v3141_v34 = vmul.f32 %v12693_v45, %v3140_v62  ;;  %v16800_v62 = vld [vmem:[#allocation55_spill] sm:$0xff] }
 0x549   :  { %v3139_v33 = vsel %vm1402_vm8, %v12691_v31, %v12695_v16  ;;  %v16803_v16 = vld [vmem:[#allocation78_spill] sm:$0xff] }
 0x54a   :  { %3142 = vrot.lane.b32.xlu1 %v3141_v34, %s12899_s0 }
 0x5bc   :  { %v3143_v2 = vpop.permute.xlu1 %3142 }
 0x5bd   :  { %v14728_v49 = vadd.f32 %v3143_v2, %v3141_v34  ;;  %v16805_v2 = vld [vmem:[#allocation79_spill] sm:$0xff] }
 0x5bf   :  { %12696 = vtanh.f32 %v14728_v49 }
 0x5c9   :  { %v12697_v11 = vpop.eup %12696 }
 0x5ca   :  { %v14731_v7 = vmul.f32 %v12697_v11, %v3139_v33  ;;  %v16804_v33 = vld [vmem:[#allocation23_spill] sm:$0xff]  ;;  %v16806_v11 = vld [vmem:[#allocation24_spill] sm:$0xff] }
 0x5cc   :  { %v14734_v25 = vand.u32 4294901760, %v14731_v7 }
 0x5ce   :  { %v14738_v55 = vsub.f32 %v14731_v7, %v14734_v25 }
 0x5d0   :  { %v3247_v45 = vand.u32 4294901760, %v14738_v55 }
 0x5d2   :  { %v3248_v31 = vsub.f32 %v14738_v55, %v3247_v45  ;;  %3725 = vmatmul.mubr.f32.vlgmr.msra.gmra.mrb[0].mxu0 %v3247_v45  ;;  %v16807_v45 = vld [vmem:[#allocation80_spill] sm:$0xff] }
 0x5d3   :  { %11150 = vmatpush1.bf16.msra.mxu0 %v14440_v38  ;;  %3891 = vmatprep.mubr.f32.mxu0 %v16434_v22 }
 0x5d4   :  { %v3249_v34 = vand.u32 4294901760, %v3248_v31  ;;  %11152 = vmatprep.subr.bf16.mxu0 %v14447_v53  ;;  %v16808_v31 = vld [vmem:[#allocation26_spill] sm:$0xff] }
 0x5d6   :  { %3250 = vmatmul.mubr.f32.vlgmr.msra.gmra.mrb[4].mxu1 %v3249_v34  ;;  %v16809_v34 = vld [vmem:[#allocation81_spill] sm:$0xff] }
 0x5d7   :  { %11054 = vmatpush1.bf16.msra.mxu1 %v16786_v14  ;;  %11154 = vmatpush1.bf16.msra.mxu0 %v14455_v47 }
 0x5d8   :  { %11056 = vmatprep.subr.bf16.mxu1 %v16787_v21  ;;  %11156 = vmatprep.subr.bf16.mxu0 %v14463_v42 }
 0x5d9   :  { %3480 = vmatprep.mubr.f32.mxu1 %v16434_v22 }
 0x5db   :  { %11058 = vmatpush1.bf16.msra.mxu1 %v16704_v10  ;;  %11158 = vmatpush1.bf16.msra.mxu0 %v14470_v59 }
 0x5dc   :  { %11060 = vmatprep.subr.bf16.mxu1 %v16705_v51  ;;  %11160 = vmatprep.subr.bf16.mxu0 %v14477_v48 }
 0x5df   :  { %11062 = vmatpush1.bf16.msra.mxu1 %v16706_v19  ;;  %11162 = vmatpush1.bf16.msra.mxu0 %v14484_v20 }
 0x5e0   :  { %11064 = vmatprep.subr.bf16.mxu1 %v16707_v13  ;;  %11164 = vmatprep.subr.bf16.mxu0 %v14491_v0 }
 0x5e3   :  { %11066 = vmatpush1.bf16.msra.mxu1 %v16708_v60  ;;  %11166 = vmatpush1.bf16.msra.mxu0 %v14498_v9 }
 0x5e4   :  { %11068 = vmatprep.subr.bf16.mxu1 %v16709_v32  ;;  %11168 = vmatprep.subr.bf16.mxu0 %v16796_v8 }
 0x5e7   :  { %11070 = vmatpush1.bf16.msra.mxu1 %v16710_v61  ;;  %11170 = vmatpush1.bf16.msra.mxu0 %v16797_v37 }
 0x5e8   :  { %11072 = vmatprep.subr.bf16.mxu1 %v16711_v5  ;;  %11172 = vmatprep.subr.bf16.mxu0 %v14519_v1  ;;  %v16813_v1 = vld [vmem:[#allocation30_spill] sm:$0xff] }
 0x5eb   :  { %11074 = vmatpush1.bf16.msra.mxu1 %v16712_v58  ;;  %11174 = vmatpush1.bf16.msra.mxu0 %v14526_v30  ;;  %v16812_v30 = vld [vmem:[#allocation29_spill] sm:$0xff] }
 0x5ec   :  { %11076 = vmatprep.subr.bf16.mxu1 %v16713_v57  ;;  %11176 = vmatprep.subr.bf16.mxu0 %v14533_v15  ;;  %v16811_v15 = vld [vmem:[#allocation82_spill] sm:$0xff] }
 0x5ef   :  { %11078 = vmatpush1.bf16.msra.mxu1 %v16714_v23  ;;  %11178 = vmatpush1.bf16.msra.mxu0 %v16798_v12  ;;  %v16810_v12 = vld [vmem:[#allocation28_spill] sm:$0xff] }
 0x5f0   :  { %11080 = vmatprep.subr.bf16.mxu1 %v14123_v17  ;;  %11180 = vmatprep.subr.bf16.mxu0 %v16685_v56 }
 0x5f2   :  { %3893 = vmatmul.mubr.f32.vlgmr.msra.gmra.mrb[0].mxu0 %v14734_v25 }
 0x5f3   :  { %11082 = vmatpush1.bf16.msra.mxu1 %v14131_v3  ;;  %11182 = vmatpush1.bf16.msra.mxu0 %v16686_v6 }
 0x5f4   :  { %11084 = vmatprep.subr.bf16.mxu1 %v14117_v35  ;;  %11184 = vmatprep.subr.bf16.mxu0 %v16687_v27 }
 0x5f5   :  { %3995 = vmatprep.mubr.f32.mxu0 %v16434_v22 }
 0x5f6   :  { %3482 = vmatmul.mubr.f32.vlgmr.msra.gmra.mrb[4].mxu1 %v14734_v25 }
 0x5f7   :  { %11086 = vmatpush1.bf16.msra.mxu1 %v14127_v29  ;;  %11186 = vmatpush1.bf16.msra.mxu0 %v16688_v39 }
 0x5f8   :  { %11088 = vmatprep.subr.bf16.mxu1 %v14140_v36  ;;  %11188 = vmatprep.subr.bf16.mxu0 %v16689_v24 }
 0x5f9   :  { %3616 = vmatprep.mubr.f32.mxu1 %v16434_v22 }
 0x5fb   :  { %11090 = vmatpush1.bf16.msra.mxu1 %v16800_v62  ;;  %11190 = vmatpush1.bf16.msra.mxu0 %v16690_v28 }
 0x5fc   :  { %11092 = vmatprep.subr.bf16.mxu1 %v16801_v44  ;;  %11192 = vmatprep.subr.bf16.mxu0 %v16691_v52 }
 0x5ff   :  { %11094 = vmatpush1.bf16.msra.mxu1 %v14167_v50  ;;  %11194 = vmatpush1.bf16.msra.mxu0 %v16692_v4 }
 0x600   :  { %11096 = vmatprep.subr.bf16.mxu1 %v14178_v41  ;;  %11196 = vmatprep.subr.bf16.mxu0 %v16693_v43 }
 0x603   :  { %11098 = vmatpush1.bf16.msra.mxu1 %v14186_v54  ;;  %11198 = vmatpush1.bf16.msra.mxu0 %v16694_v63 }
 0x604   :  { %11100 = vmatprep.subr.bf16.mxu1 %v16788_v18  ;;  %11200 = vmatprep.subr.bf16.mxu0 %v16695_v40 }
 0x607   :  { %11102 = vmatpush1.bf16.msra.mxu1 %v16802_v46  ;;  %11202 = vmatpush1.bf16.msra.mxu0 %v16803_v16 }
 0x608   :  { %11104 = vmatprep.subr.bf16.mxu1 %v16804_v33  ;;  %11204 = vmatprep.subr.bf16.mxu0 %v16805_v2 }
 0x60b   :  { %11106 = vmatpush1.bf16.msra.mxu1 %v16806_v11  ;;  %11206 = vmatpush1.bf16.msra.mxu0 %v16807_v45 }
 0x60c   :  { %11108 = vmatprep.subr.bf16.mxu1 %v16808_v31  ;;  %11208 = vmatprep.subr.bf16.mxu0 %v16809_v34 }
 0x60f   :  { %11110 = vmatpush1.bf16.msra.mxu1 %v16810_v12  ;;  %11210 = vmatpush1.bf16.msra.mxu0 %v16811_v15 }
 0x610   :  { %11112 = vmatprep.subr.bf16.mxu1 %v16812_v30  ;;  %11212 = vmatprep.subr.bf16.mxu0 %v16685_v56 }
 0x612   :  { %3997 = vmatmul.mubr.f32.vlgmr.msra.gmra.mrb[0].mxu0 %v14734_v25  ;;  %v16814_v25 = vld [vmem:[#allocation54_spill] sm:$0xff] }
 0x613   :  { %11114 = vmatpush1.bf16.msra.mxu1 %v16813_v1  ;;  %11214 = vmatpush1.bf16.msra.mxu0 %v16686_v6 }
 0x614   :  { %11216 = vmatprep.subr.bf16.mxu0 %v16687_v27  ;;  %4123 = vmatprep.mubr.f32.mxu0 %v16434_v22 }
 0x616   :  { %3619 = vmatmul.mubr.f32.vlgmr.msra.gmra.mrb[4].mxu1 %v14738_v55 }
 0x617   :  { %11218 = vmatpush1.bf16.msra.mxu0 %v16688_v39  ;;  %10055 = vmatprep.mubr.msk.f32.mxu1 %vm12901_vm9, %v16434_v22 }
 0x618   :  { %11220 = vmatprep.subr.bf16.mxu0 %v16689_v24 }
 0x61b   :  { %11222 = vmatpush1.bf16.msra.mxu0 %v16690_v28 }
 0x61c   :  { %11224 = vmatprep.subr.bf16.mxu0 %v16691_v52 }
 0x61f   :  { %11226 = vmatpush1.bf16.msra.mxu0 %v16692_v4 }
 0x620   :  { %11228 = vmatprep.subr.bf16.mxu0 %v16693_v43 }
 0x623   :  { %11230 = vmatpush1.bf16.msra.mxu0 %v16694_v63 }
 0x624   :  { %11232 = vmatprep.subr.bf16.mxu0 %v16695_v40 }
 0x627   :  { %11234 = vmatpush1.bf16.msra.mxu0 %v16803_v16 }
 0x628   :  { %11236 = vmatprep.subr.bf16.mxu0 %v16805_v2 }
 0x62b   :  { %11238 = vmatpush1.bf16.msra.mxu0 %v16807_v45 }
 0x62c   :  { %11240 = vmatprep.subr.bf16.mxu0 %v16809_v34 }
 0x62f   :  { %11242 = vmatpush1.bf16.msra.mxu0 %v16811_v15 }
 0x630   :  { %11244 = vmatprep.subr.bf16.mxu0 %v16814_v25 }
 0x6e5   :  { %v3998_v55 = vpop.f32.mrb[0].mxu0 }
 0x6e6   :  { %v4000_v37 = vpop.f32.mrb[1].mxu0 }
 0x6e9   :  { %v3620_v8 = vpop.f32.mrb[4].mxu1 }
 0x6ea   :  { %v12459_v9 = vadd.f32 %v3998_v55, %v3620_v8  ;;  %v3622_v0 = vpop.f32.mrb[5].mxu1 }
 0x6eb   :  { %v12460_v20 = vadd.f32 %v4000_v37, %v3622_v0 }
 0x6ec   :  { %v9805_v48 = vmul.f32 -1.442695, %v12459_v9 }
 0x6ed   :  { %v9806_v59 = vmul.f32 -1.442695, %v12460_v20 }
 0x6ee   :  { %12698 = vpow2.f32 %v9805_v48 }
 0x6ef   :  { %12700 = vpow2.f32 %v9806_v59 }
 0x6f0   :  { %12702 = vtanh.f32 %v12460_v20 }
 0x6f8   :  { %v12699_v42 = vpop.eup %12698 }
 0x6f9   :  { %v12701_v47 = vpop.eup %12700  ;;  %v4008_v53 = vadd.f32 1.0, %v12699_v42 }
 0x6fa   :  { %v4015_v38 = vadd.f32 1.0, %v12701_v47  ;;  %v12703_v15 = vpop.eup %12702 }
 0x6fb   :  { %12704 = vrcp.f32 %v4008_v53  ;;  %v4019_v25 = vsel %vm1402_vm8, %v12703_v15, %v14728_v49  ;;  %v16815_v53 = vld [vmem:[#allocation61_spill] sm:$0xff] }
 0x6fc   :  { %12706 = vrcp.f32 %v4015_v38  ;;  %v3147_v38 = vadd.f32 %v14731_v7, %v16815_v53  ;;  %v16816_v7 = vld [vmem:[#allocation81_spill] sm:$0xff]  ;;  %v16823_v53 = vld [vmem:[#allocation40_spill] sm:$0xff] }
 0x705   :  { %v12705_v34 = vpop.eup %12704 }
 0x706   :  { %v12707_v8 = vpop.eup %12706  ;;  %v4020_v55 = vmul.f32 %v12705_v34, %v4019_v25  ;;  %v16817_v25 = vld [vmem:[#allocation82_spill] sm:$0xff] }
 0x707   :  { %v4018_v0 = vsel %vm1402_vm8, %v12703_v15, %v12707_v8  ;;  %v16818_v8 = vld [vmem:[#allocation32_spill] sm:$0xff] }
 0x708   :  { %4021 = vrot.lane.b32.xlu0 %v4020_v55, %s12899_s0 }
 0x77a   :  { %v4022_v59 = vpop.permute.xlu0 %4021 }
 0x77b   :  { %v14836_v48 = vadd.f32 %v4022_v59, %v4020_v55  ;;  %v16819_v55 = vld [vmem:[#allocation34_spill] sm:$0xff]  ;;  %v16821_v59 = vld [vmem:[#allocation37_spill] sm:$0xff] }
 0x77d   :  { %12708 = vtanh.f32 %v14836_v48 }
 0x787   :  { %v12709_v47 = vpop.eup %12708 }
 0x788   :  { %v4025_v42 = vmul.f32 %v12709_v47, %v4018_v0  ;;  %v16820_v0 = vld [vmem:[#allocation35_spill] sm:$0xff]  ;;  %v16822_v47 = vld [vmem:[#allocation38_spill] sm:$0xff] }
 0x78a   :  { %v14841_v20 = vadd.f32 %v4025_v42, %v3147_v38  ;;  %v14843_v9 = vand.u32 4294901760, %v4025_v42  ;;  %v16824_v38 = vld [vmem:[#allocation41_spill] sm:$0xff] }
 0x78c   :  { %v4125_v37 = vsub.f32 %v4025_v42, %v14843_v9  ;;  %v16825_v42 = vld [vmem:[#allocation42_spill] sm:$0xff] }
 0x78e   :  { %v4126_v49 = vand.u32 4294901760, %v4125_v37 }
 0x790   :  { %v4127_v15 = vsub.f32 %v4125_v37, %v4126_v49 }
 0x792   :  { %v4128_v34 = vand.u32 4294901760, %v4127_v15  ;;  %v16827_v15 = vld [vmem:[#allocation46_spill] sm:$0xff] }
 0x794   :  { %4129 = vmatmul.mubr.f32.vlgmr.msra.gmra.mrb[2].mxu0 %v4128_v34  ;;  %v16829_v34 = vld [vmem:[#allocation49_spill] sm:$0xff] }
 0x795   :  { %11246 = vmatpush1.bf16.msra.mxu0 %v16786_v14  ;;  %4359 = vmatprep.mubr.f32.mxu0 %v16434_v22 }
 0x796   :  { %11248 = vmatprep.subr.bf16.mxu0 %v16787_v21 }
 0x799   :  { %11250 = vmatpush1.bf16.msra.mxu0 %v16704_v10 }
 0x79a   :  { %11252 = vmatprep.subr.bf16.mxu0 %v16705_v51 }
 0x79d   :  { %11254 = vmatpush1.bf16.msra.mxu0 %v16706_v19 }
 0x79e   :  { %11256 = vmatprep.subr.bf16.mxu0 %v16707_v13 }
 0x7a1   :  { %11258 = vmatpush1.bf16.msra.mxu0 %v16708_v60 }
 0x7a2   :  { %11260 = vmatprep.subr.bf16.mxu0 %v16709_v32 }
 0x7a5   :  { %11262 = vmatpush1.bf16.msra.mxu0 %v16710_v61 }
 0x7a6   :  { %11264 = vmatprep.subr.bf16.mxu0 %v16711_v5 }
 0x7a9   :  { %11266 = vmatpush1.bf16.msra.mxu0 %v16712_v58 }
 0x7aa   :  { %11268 = vmatprep.subr.bf16.mxu0 %v16713_v57 }
 0x7ad   :  { %11270 = vmatpush1.bf16.msra.mxu0 %v16714_v23 }
 0x7ae   :  { %11272 = vmatprep.subr.bf16.mxu0 %v14123_v17 }
 0x7b1   :  { %11274 = vmatpush1.bf16.msra.mxu0 %v14131_v3 }
 0x7b2   :  { %11276 = vmatprep.subr.bf16.mxu0 %v14117_v35 }
 0x7b4   :  { %4361 = vmatmul.mubr.f32.vlgmr.msra.gmra.mrb[2].mxu0 %v14843_v9 }
 0x7b5   :  { %11278 = vmatpush1.bf16.msra.mxu0 %v14127_v29  ;;  %4495 = vmatprep.mubr.f32.mxu0 %v16434_v22 }
 0x7b6   :  { %11280 = vmatprep.subr.bf16.mxu0 %v14140_v36 }
 0x7b9   :  { %11282 = vmatpush1.bf16.msra.mxu0 %v16800_v62 }
 0x7ba   :  { %11284 = vmatprep.subr.bf16.mxu0 %v16801_v44 }
 0x7bd   :  { %11286 = vmatpush1.bf16.msra.mxu0 %v14167_v50 }
 0x7be   :  { %11288 = vmatprep.subr.bf16.mxu0 %v14178_v41 }
 0x7c1   :  { %11290 = vmatpush1.bf16.msra.mxu0 %v14186_v54 }
 0x7c2   :  { %11292 = vmatprep.subr.bf16.mxu0 %v16788_v18 }
 0x7c5   :  { %11294 = vmatpush1.bf16.msra.mxu0 %v16802_v46 }
 0x7c6   :  { %11296 = vmatprep.subr.bf16.mxu0 %v16804_v33 }
 0x7c9   :  { %11298 = vmatpush1.bf16.msra.mxu0 %v16806_v11 }
 0x7ca   :  { %11300 = vmatprep.subr.bf16.mxu0 %v16808_v31 }
 0x7cd   :  { %11302 = vmatpush1.bf16.msra.mxu0 %v16810_v12 }
 0x7ce   :  { %11304 = vmatprep.subr.bf16.mxu0 %v16812_v30 }
 0x7d1   :  { %11306 = vmatpush1.bf16.msra.mxu0 %v16813_v1 }
 0x7d2   :  { %11308 = vmatprep.subr.bf16.mxu0 %v16685_v56 }
 0x7d4   :  { %4498 = vmatmul.mubr.f32.vlgmr.msra.gmra.mrb[2].mxu0 %v4125_v37  ;;  %v16826_v37 = vld [vmem:[#allocation44_spill] sm:$0xff] }
 0x7d5   :  { %11310 = vmatpush1.bf16.msra.mxu0 %v16686_v6  ;;  %4600 = vmatprep.mubr.f32.mxu0 %v16434_v22 }
 0x7d6   :  { %11312 = vmatprep.subr.bf16.mxu0 %v16687_v27 }
 0x7d9   :  { %11314 = vmatpush1.bf16.msra.mxu0 %v16688_v39 }
 0x7da   :  { %11316 = vmatprep.subr.bf16.mxu0 %v16689_v24 }
 0x7dd   :  { %11318 = vmatpush1.bf16.msra.mxu0 %v16690_v28 }
 0x7de   :  { %11320 = vmatprep.subr.bf16.mxu0 %v16691_v52 }
 0x7e1   :  { %11322 = vmatpush1.bf16.msra.mxu0 %v16692_v4 }
 0x7e2   :  { %11324 = vmatprep.subr.bf16.mxu0 %v16693_v43 }
 0x7e5   :  { %11326 = vmatpush1.bf16.msra.mxu0 %v16694_v63 }
 0x7e6   :  { %11328 = vmatprep.subr.bf16.mxu0 %v16695_v40 }
 0x7e9   :  { %11330 = vmatpush1.bf16.msra.mxu0 %v16803_v16 }
 0x7ea   :  { %11332 = vmatprep.subr.bf16.mxu0 %v16805_v2 }
 0x7ed   :  { %11334 = vmatpush1.bf16.msra.mxu0 %v16807_v45 }
 0x7ee   :  { %11336 = vmatprep.subr.bf16.mxu0 %v16816_v7 }
 0x7f1   :  { %11338 = vmatpush1.bf16.msra.mxu0 %v16817_v25 }
 0x7f2   :  { %11340 = vmatprep.subr.bf16.mxu0 %v16818_v8 }
 0x7f4   :  { %4604 = vmatmul.mubr.f32.vlgmr.msra.gmra.mrb[2].mxu0 %v4126_v49  ;;  %v16828_v49 = vld [vmem:[#allocation47_spill] sm:$0xff] }
 0x7f5   :  { %11342 = vmatpush1.bf16.msra.mxu0 %v16819_v55  ;;  %4770 = vmatprep.mubr.f32.mxu0 %v16434_v22  ;;  %v16830_v55 = vld [vmem:[#allocation50_spill] sm:$0xff] }
 0x7f6   :  { %11344 = vmatprep.subr.bf16.mxu0 %v16820_v0  ;;  %v16831_v0 = vld [vmem:[#allocation52_spill] sm:$0xff] }
 0x7f9   :  { %11346 = vmatpush1.bf16.msra.mxu0 %v16821_v59  ;;  %v16832_v59 = vld [vmem:[#allocation53_spill] sm:$0xff] }
 0x7fa   :  { %11348 = vmatprep.subr.bf16.mxu0 %v16822_v47  ;;  %v16833_v47 = vld [vmem:[#allocation56_spill] sm:$0xff] }
 0x7fd   :  { %11350 = vmatpush1.bf16.msra.mxu0 %v16823_v53 }
 0x7fe   :  { %11352 = vmatprep.subr.bf16.mxu0 %v16824_v38 }
 0x801   :  { %11354 = vmatpush1.bf16.msra.mxu0 %v16825_v42 }
 0x802   :  { %11356 = vmatprep.subr.bf16.mxu0 %v16826_v37 }
 0x805   :  { %11358 = vmatpush1.bf16.msra.mxu0 %v16827_v15 }
 0x806   :  { %11360 = vmatprep.subr.bf16.mxu0 %v16828_v49 }
 0x809   :  { %11362 = vmatpush1.bf16.msra.mxu0 %v16829_v34  ;;  %v16836_v34 = vld [vmem:[#allocation59_spill] sm:$0xff] }
 0x80a   :  { %11364 = vmatprep.subr.bf16.mxu0 %v16830_v55 }
 0x80d   :  { %11366 = vmatpush1.bf16.msra.mxu0 %v16831_v0 }
 0x80e   :  { %11368 = vmatprep.subr.bf16.mxu0 %v16832_v59  ;;  %v16835_v59 = vld [vmem:[#allocation15_spill] sm:$0xff] }
 0x811   :  { %11370 = vmatpush1.bf16.msra.mxu0 %v16833_v47 }
 0x812   :  { %11372 = vmatprep.subr.bf16.mxu0 %v16685_v56 }
 0x814   :  { %4772 = vmatmul.mubr.f32.vlgmr.msra.gmra.mrb[2].mxu0 %v14843_v9 }
 0x815   :  { %11374 = vmatpush1.bf16.msra.mxu0 %v16686_v6  ;;  %4874 = vmatprep.mubr.f32.mxu0 %v16434_v22 }
 0x816   :  { %11376 = vmatprep.subr.bf16.mxu0 %v16687_v27 }
 0x819   :  { %11378 = vmatpush1.bf16.msra.mxu0 %v16688_v39 }
 0x81a   :  { %11380 = vmatprep.subr.bf16.mxu0 %v16689_v24 }
 0x81d   :  { %11382 = vmatpush1.bf16.msra.mxu0 %v16690_v28 }
 0x81e   :  { %11384 = vmatprep.subr.bf16.mxu0 %v16691_v52 }
 0x821   :  { %11386 = vmatpush1.bf16.msra.mxu0 %v16692_v4 }
 0x822   :  { %11388 = vmatprep.subr.bf16.mxu0 %v16693_v43 }
 0x825   :  { %11390 = vmatpush1.bf16.msra.mxu0 %v16694_v63 }
 0x826   :  { %11392 = vmatprep.subr.bf16.mxu0 %v16695_v40 }
 0x829   :  { %11394 = vmatpush1.bf16.msra.mxu0 %v16803_v16 }
 0x82a   :  { %11396 = vmatprep.subr.bf16.mxu0 %v16805_v2 }
 0x82d   :  { %11398 = vmatpush1.bf16.msra.mxu0 %v16807_v45 }
 0x82e   :  { %11400 = vmatprep.subr.bf16.mxu0 %v16816_v7 }
 0x831   :  { %11402 = vmatpush1.bf16.msra.mxu0 %v16817_v25 }
 0x832   :  { %11404 = vmatprep.subr.bf16.mxu0 %v16685_v56 }
 0x834   :  { %4876 = vmatmul.mubr.f32.vlgmr.msra.gmra.mrb[2].mxu0 %v14843_v9  ;;  %v16834_v9 = vld [vmem:[#allocation54_spill] sm:$0xff] }
 0x835   :  { %11406 = vmatpush1.bf16.msra.mxu0 %v16686_v6  ;;  %5002 = vmatprep.mubr.f32.mxu0 %v16434_v22 }
 0x836   :  { %11408 = vmatprep.subr.bf16.mxu0 %v16687_v27 }
 0x839   :  { %11410 = vmatpush1.bf16.msra.mxu0 %v16688_v39 }
 0x83a   :  { %11412 = vmatprep.subr.bf16.mxu0 %v16689_v24 }
 0x83d   :  { %11414 = vmatpush1.bf16.msra.mxu0 %v16690_v28 }
 0x83e   :  { %11416 = vmatprep.subr.bf16.mxu0 %v16691_v52 }
 0x841   :  { %11418 = vmatpush1.bf16.msra.mxu0 %v16692_v4 }
 0x842   :  { %11420 = vmatprep.subr.bf16.mxu0 %v16693_v43 }
 0x845   :  { %11422 = vmatpush1.bf16.msra.mxu0 %v16694_v63 }
 0x846   :  { %11424 = vmatprep.subr.bf16.mxu0 %v16695_v40 }
 0x849   :  { %11426 = vmatpush1.bf16.msra.mxu0 %v16803_v16 }
 0x84a   :  { %11428 = vmatprep.subr.bf16.mxu0 %v16805_v2 }
 0x84d   :  { %11430 = vmatpush1.bf16.msra.mxu0 %v16807_v45 }
 0x84e   :  { %11432 = vmatprep.subr.bf16.mxu0 %v16816_v7 }
 0x851   :  { %11434 = vmatpush1.bf16.msra.mxu0 %v16817_v25 }
 0x852   :  { %11436 = vmatprep.subr.bf16.mxu0 %v16834_v9 }
 0x907   :  { %v4877_v47 = vpop.f32.mrb[2].mxu0 }
 0x908   :  { %v12461_v0 = vadd.f32 %v4877_v47, %v16835_v59  ;;  %v4879_v55 = vpop.f32.mrb[3].mxu0 }
 0x909   :  { %v12462_v49 = vadd.f32 %v4879_v55, %v16836_v34  ;;  %v16839_v34 = vld [vmem:[#allocation32_spill] sm:$0xff] }
 0x90a   :  { %v9807_v15 = vmul.f32 -1.442695, %v12461_v0 }
 0x90b   :  { %v9808_v37 = vmul.f32 -1.442695, %v12462_v49 }
 0x90c   :  { %12710 = vpow2.f32 %v9807_v15 }
 0x90d   :  { %12712 = vpow2.f32 %v9808_v37 }
 0x90e   :  { %12714 = vtanh.f32 %v12462_v49 }
 0x916   :  { %v12711_v42 = vpop.eup %12710 }
 0x917   :  { %v12713_v38 = vpop.eup %12712  ;;  %v4887_v53 = vadd.f32 1.0, %v12711_v42 }
 0x918   :  { %v4894_v8 = vadd.f32 1.0, %v12713_v38  ;;  %v12715_v25 = vpop.eup %12714 }
 0x919   :  { %12716 = vrcp.f32 %v4887_v53  ;;  %v4898_v59 = vsel %vm1402_vm8, %v12715_v25, %v14836_v48 }
 0x91a   :  { %12718 = vrcp.f32 %v4894_v8 }
 0x923   :  { %v12717_v7 = vpop.eup %12716 }
 0x924   :  { %v12719_v47 = vpop.eup %12718  ;;  %v4899_v9 = vmul.f32 %v12717_v7, %v4898_v59  ;;  %v16841_v59 = vld [vmem:[#allocation35_spill] sm:$0xff] }
 0x925   :  { %v4897_v55 = vsel %vm1402_vm8, %v12715_v25, %v12719_v47  ;;  %v16838_v25 = vld [vmem:[#allocation82_spill] sm:$0xff]  ;;  %v16842_v47 = vld [vmem:[#allocation37_spill] sm:$0xff] }
 0x926   :  { %4900 = vrot.lane.b32.xlu1 %v4899_v9, %s12899_s0 }
 0x998   :  { %v4901_v0 = vpop.permute.xlu1 %4900 }
 0x999   :  { %v14959_v37 = vadd.f32 %v4901_v0, %v4899_v9  ;;  %v16840_v9 = vld [vmem:[#allocation34_spill] sm:$0xff]  ;;  %v16844_v0 = vld [vmem:[#allocation40_spill] sm:$0xff] }
 0x99b   :  { %12720 = vtanh.f32 %v14959_v37 }
 0x9a5   :  { %v12721_v53 = vpop.eup %12720 }
 0x9a6   :  { %v4904_v8 = vmul.f32 %v12721_v53, %v4897_v55  ;;  %v16843_v55 = vld [vmem:[#allocation38_spill] sm:$0xff]  ;;  %v16845_v53 = vld [vmem:[#allocation41_spill] sm:$0xff] }
 0x9a8   :  { %v14963_v38 = vadd.f32 %v4904_v8, %v14841_v20  ;;  %v14965_v42 = vand.u32 4294901760, %v4904_v8  ;;  %v16837_v20 = vld [vmem:[#allocation81_spill] sm:$0xff] }
 0x9aa   :  { %v5004_v48 = vsub.f32 %v4904_v8, %v14965_v42  ;;  %v16846_v8 = vld [vmem:[#allocation42_spill] sm:$0xff] }
 0x9ac   :  { %v5005_v7 = vand.u32 4294901760, %v5004_v48 }
 0x9ae   :  { %v5006_v15 = vsub.f32 %v5004_v48, %v5005_v7 }
 0x9b0   :  { %v5007_v49 = vand.u32 4294901760, %v5006_v15  ;;  %v16848_v15 = vld [vmem:[#allocation46_spill] sm:$0xff] }
 0x9b2   :  { %5008 = vmatmul.mubr.f32.vlgmr.msra.gmra.mrb[4].mxu0 %v5007_v49  ;;  %v16850_v49 = vld [vmem:[#allocation49_spill] sm:$0xff] }
 0x9b3   :  { %11438 = vmatpush1.bf16.msra.mxu0 %v16786_v14  ;;  %5238 = vmatprep.mubr.f32.mxu0 %v16434_v22 }
 0x9b4   :  { %11440 = vmatprep.subr.bf16.mxu0 %v16787_v21 }
 0x9b7   :  { %11442 = vmatpush1.bf16.msra.mxu0 %v16704_v10 }
 0x9b8   :  { %11444 = vmatprep.subr.bf16.mxu0 %v16705_v51 }
 0x9bb   :  { %11446 = vmatpush1.bf16.msra.mxu0 %v16706_v19 }
 0x9bc   :  { %11448 = vmatprep.subr.bf16.mxu0 %v16707_v13 }
 0x9bf   :  { %11450 = vmatpush1.bf16.msra.mxu0 %v16708_v60 }
 0x9c0   :  { %11452 = vmatprep.subr.bf16.mxu0 %v16709_v32 }
 0x9c3   :  { %11454 = vmatpush1.bf16.msra.mxu0 %v16710_v61 }
 0x9c4   :  { %11456 = vmatprep.subr.bf16.mxu0 %v16711_v5 }
 0x9c7   :  { %11458 = vmatpush1.bf16.msra.mxu0 %v16712_v58 }
 0x9c8   :  { %11460 = vmatprep.subr.bf16.mxu0 %v16713_v57 }
 0x9cb   :  { %11462 = vmatpush1.bf16.msra.mxu0 %v16714_v23 }
 0x9cc   :  { %11464 = vmatprep.subr.bf16.mxu0 %v14123_v17 }
 0x9cf   :  { %11466 = vmatpush1.bf16.msra.mxu0 %v14131_v3 }
 0x9d0   :  { %11468 = vmatprep.subr.bf16.mxu0 %v14117_v35 }
 0x9d2   :  { %5240 = vmatmul.mubr.f32.vlgmr.msra.gmra.mrb[4].mxu0 %v14965_v42 }
 0x9d3   :  { %11470 = vmatpush1.bf16.msra.mxu0 %v14127_v29  ;;  %5374 = vmatprep.mubr.f32.mxu0 %v16434_v22 }
 0x9d4   :  { %11472 = vmatprep.subr.bf16.mxu0 %v14140_v36 }
 0x9d7   :  { %11474 = vmatpush1.bf16.msra.mxu0 %v16800_v62 }
 0x9d8   :  { %11476 = vmatprep.subr.bf16.mxu0 %v16801_v44 }
 0x9db   :  { %11478 = vmatpush1.bf16.msra.mxu0 %v14167_v50 }
 0x9dc   :  { %11480 = vmatprep.subr.bf16.mxu0 %v14178_v41 }
 0x9df   :  { %11482 = vmatpush1.bf16.msra.mxu0 %v14186_v54 }
 0x9e0   :  { %11484 = vmatprep.subr.bf16.mxu0 %v16788_v18 }
 0x9e3   :  { %11486 = vmatpush1.bf16.msra.mxu0 %v16802_v46 }
 0x9e4   :  { %11488 = vmatprep.subr.bf16.mxu0 %v16804_v33 }
 0x9e7   :  { %11490 = vmatpush1.bf16.msra.mxu0 %v16806_v11 }
 0x9e8   :  { %11492 = vmatprep.subr.bf16.mxu0 %v16808_v31 }
 0x9eb   :  { %11494 = vmatpush1.bf16.msra.mxu0 %v16810_v12 }
 0x9ec   :  { %11496 = vmatprep.subr.bf16.mxu0 %v16812_v30 }
 0x9ef   :  { %11498 = vmatpush1.bf16.msra.mxu0 %v16813_v1 }
 0x9f0   :  { %11500 = vmatprep.subr.bf16.mxu0 %v16685_v56 }
 0x9f2   :  { %5377 = vmatmul.mubr.f32.vlgmr.msra.gmra.mrb[4].mxu0 %v5004_v48  ;;  %v16847_v48 = vld [vmem:[#allocation44_spill] sm:$0xff] }
 0x9f3   :  { %11502 = vmatpush1.bf16.msra.mxu0 %v16686_v6  ;;  %5479 = vmatprep.mubr.f32.mxu0 %v16434_v22 }
 0x9f4   :  { %11504 = vmatprep.subr.bf16.mxu0 %v16687_v27 }
 0x9f7   :  { %11506 = vmatpush1.bf16.msra.mxu0 %v16688_v39 }
 0x9f8   :  { %11508 = vmatprep.subr.bf16.mxu0 %v16689_v24 }
 0x9fb   :  { %11510 = vmatpush1.bf16.msra.mxu0 %v16690_v28 }
 0x9fc   :  { %11512 = vmatprep.subr.bf16.mxu0 %v16691_v52 }
 0x9ff   :  { %11514 = vmatpush1.bf16.msra.mxu0 %v16692_v4 }
 0xa00   :  { %11516 = vmatprep.subr.bf16.mxu0 %v16693_v43 }
 0xa03   :  { %11518 = vmatpush1.bf16.msra.mxu0 %v16694_v63 }
 0xa04   :  { %11520 = vmatprep.subr.bf16.mxu0 %v16695_v40 }
 0xa07   :  { %11522 = vmatpush1.bf16.msra.mxu0 %v16803_v16 }
 0xa08   :  { %11524 = vmatprep.subr.bf16.mxu0 %v16805_v2 }
 0xa0b   :  { %11526 = vmatpush1.bf16.msra.mxu0 %v16807_v45 }
 0xa0c   :  { %11528 = vmatprep.subr.bf16.mxu0 %v16837_v20 }
 0xa0f   :  { %11530 = vmatpush1.bf16.msra.mxu0 %v16838_v25 }
 0xa10   :  { %11532 = vmatprep.subr.bf16.mxu0 %v16839_v34 }
 0xa12   :  { %5483 = vmatmul.mubr.f32.vlgmr.msra.gmra.mrb[4].mxu0 %v5005_v7  ;;  %v16849_v7 = vld [vmem:[#allocation47_spill] sm:$0xff] }
 0xa13   :  { %11534 = vmatpush1.bf16.msra.mxu0 %v16840_v9  ;;  %5649 = vmatprep.mubr.f32.mxu0 %v16434_v22  ;;  %v16851_v9 = vld [vmem:[#allocation50_spill] sm:$0xff] }
 0xa14   :  { %11536 = vmatprep.subr.bf16.mxu0 %v16841_v59  ;;  %v16852_v59 = vld [vmem:[#allocation52_spill] sm:$0xff] }
 0xa17   :  { %11538 = vmatpush1.bf16.msra.mxu0 %v16842_v47  ;;  %v16853_v47 = vld [vmem:[#allocation53_spill] sm:$0xff] }
 0xa18   :  { %11540 = vmatprep.subr.bf16.mxu0 %v16843_v55  ;;  %v16854_v55 = vld [vmem:[#allocation56_spill] sm:$0xff] }
 0xa1b   :  { %11542 = vmatpush1.bf16.msra.mxu0 %v16844_v0 }
 0xa1c   :  { %11544 = vmatprep.subr.bf16.mxu0 %v16845_v53 }
 0xa1f   :  { %11546 = vmatpush1.bf16.msra.mxu0 %v16846_v8 }
 0xa20   :  { %11548 = vmatprep.subr.bf16.mxu0 %v16847_v48 }
 0xa23   :  { %11550 = vmatpush1.bf16.msra.mxu0 %v16848_v15 }
 0xa24   :  { %11552 = vmatprep.subr.bf16.mxu0 %v16849_v7 }
 0xa27   :  { %11554 = vmatpush1.bf16.msra.mxu0 %v16850_v49  ;;  %v16857_v49 = vld [vmem:[#allocation17_spill] sm:$0xff] }
 0xa28   :  { %11556 = vmatprep.subr.bf16.mxu0 %v16851_v9 }
 0xa2b   :  { %11558 = vmatpush1.bf16.msra.mxu0 %v16852_v59 }
 0xa2c   :  { %11560 = vmatprep.subr.bf16.mxu0 %v16853_v47  ;;  %v16856_v47 = vld [vmem:[#allocation16_spill] sm:$0xff] }
 0xa2f   :  { %11562 = vmatpush1.bf16.msra.mxu0 %v16854_v55 }
 0xa30   :  { %11564 = vmatprep.subr.bf16.mxu0 %v16685_v56 }
 0xa32   :  { %5651 = vmatmul.mubr.f32.vlgmr.msra.gmra.mrb[4].mxu0 %v14965_v42 }
 0xa33   :  { %11566 = vmatpush1.bf16.msra.mxu0 %v16686_v6  ;;  %5753 = vmatprep.mubr.f32.mxu0 %v16434_v22 }
 0xa34   :  { %11568 = vmatprep.subr.bf16.mxu0 %v16687_v27 }
 0xa37   :  { %11570 = vmatpush1.bf16.msra.mxu0 %v16688_v39 }
 0xa38   :  { %11572 = vmatprep.subr.bf16.mxu0 %v16689_v24 }
 0xa3b   :  { %11574 = vmatpush1.bf16.msra.mxu0 %v16690_v28 }
 0xa3c   :  { %11576 = vmatprep.subr.bf16.mxu0 %v16691_v52 }
 0xa3f   :  { %11578 = vmatpush1.bf16.msra.mxu0 %v16692_v4 }
 0xa40   :  { %11580 = vmatprep.subr.bf16.mxu0 %v16693_v43 }
 0xa43   :  { %11582 = vmatpush1.bf16.msra.mxu0 %v16694_v63 }
 0xa44   :  { %11584 = vmatprep.subr.bf16.mxu0 %v16695_v40 }
 0xa47   :  { %11586 = vmatpush1.bf16.msra.mxu0 %v16803_v16 }
 0xa48   :  { %11588 = vmatprep.subr.bf16.mxu0 %v16805_v2 }
 0xa4b   :  { %11590 = vmatpush1.bf16.msra.mxu0 %v16807_v45 }
 0xa4c   :  { %11592 = vmatprep.subr.bf16.mxu0 %v16837_v20 }
 0xa4f   :  { %11594 = vmatpush1.bf16.msra.mxu0 %v16838_v25 }
 0xa50   :  { %11596 = vmatprep.subr.bf16.mxu0 %v16685_v56 }
 0xa52   :  { %5755 = vmatmul.mubr.f32.vlgmr.msra.gmra.mrb[4].mxu0 %v14965_v42  ;;  %v16855_v42 = vld [vmem:[#allocation54_spill] sm:$0xff] }
 0xa53   :  { %11598 = vmatpush1.bf16.msra.mxu0 %v16686_v6  ;;  %5881 = vmatprep.mubr.f32.mxu0 %v16434_v22 }
 0xa54   :  { %11600 = vmatprep.subr.bf16.mxu0 %v16687_v27 }
 0xa57   :  { %11602 = vmatpush1.bf16.msra.mxu0 %v16688_v39 }
 0xa58   :  { %11604 = vmatprep.subr.bf16.mxu0 %v16689_v24 }
 0xa5b   :  { %11606 = vmatpush1.bf16.msra.mxu0 %v16690_v28 }
 0xa5c   :  { %11608 = vmatprep.subr.bf16.mxu0 %v16691_v52 }
 0xa5f   :  { %11610 = vmatpush1.bf16.msra.mxu0 %v16692_v4 }
 0xa60   :  { %11612 = vmatprep.subr.bf16.mxu0 %v16693_v43 }
 0xa63   :  { %11614 = vmatpush1.bf16.msra.mxu0 %v16694_v63 }
 0xa64   :  { %11616 = vmatprep.subr.bf16.mxu0 %v16695_v40 }
 0xa67   :  { %11618 = vmatpush1.bf16.msra.mxu0 %v16803_v16 }
 0xa68   :  { %11620 = vmatprep.subr.bf16.mxu0 %v16805_v2 }
 0xa6b   :  { %11622 = vmatpush1.bf16.msra.mxu0 %v16807_v45 }
 0xa6c   :  { %11624 = vmatprep.subr.bf16.mxu0 %v16837_v20 }
 0xa6f   :  { %11626 = vmatpush1.bf16.msra.mxu0 %v16838_v25 }
 0xa70   :  { %11628 = vmatprep.subr.bf16.mxu0 %v16855_v42 }
 0xb25   :  { %v5756_v55 = vpop.f32.mrb[4].mxu0 }
 0xb26   :  { %v12463_v59 = vadd.f32 %v5756_v55, %v16856_v47  ;;  %v5758_v9 = vpop.f32.mrb[5].mxu0 }
 0xb27   :  { %v12464_v7 = vadd.f32 %v5758_v9, %v16857_v49  ;;  %v16860_v49 = vld [vmem:[#allocation32_spill] sm:$0xff] }
 0xb28   :  { %v9809_v15 = vmul.f32 -1.442695, %v12463_v59 }
 0xb29   :  { %v9810_v48 = vmul.f32 -1.442695, %v12464_v7 }
 0xb2a   :  { %12722 = vpow2.f32 %v9809_v15 }
 0xb2b   :  { %12724 = vpow2.f32 %v9810_v48 }
 0xb2c   :  { %12726 = vtanh.f32 %v12464_v7 }
 0xb34   :  { %v12723_v8 = vpop.eup %12722 }
 0xb35   :  { %v12725_v53 = vpop.eup %12724  ;;  %v5766_v0 = vadd.f32 1.0, %v12723_v8 }
 0xb36   :  { %v5773_v34 = vadd.f32 1.0, %v12725_v53  ;;  %v12727_v25 = vpop.eup %12726 }
 0xb37   :  { %12728 = vrcp.f32 %v5766_v0  ;;  %v5777_v47 = vsel %vm1402_vm8, %v12727_v25, %v14959_v37 }
 0xb38   :  { %12730 = vrcp.f32 %v5773_v34 }
 0xb41   :  { %v12729_v20 = vpop.eup %12728 }
 0xb42   :  { %v12731_v55 = vpop.eup %12730  ;;  %v5778_v42 = vmul.f32 %v12729_v20, %v5777_v47  ;;  %v16862_v47 = vld [vmem:[#allocation35_spill] sm:$0xff] }
 0xb43   :  { %v5776_v9 = vsel %vm1402_vm8, %v12727_v25, %v12731_v55  ;;  %v16859_v25 = vld [vmem:[#allocation82_spill] sm:$0xff]  ;;  %v16863_v55 = vld [vmem:[#allocation37_spill] sm:$0xff] }
 0xb44   :  { %5779 = vrot.lane.b32.xlu0 %v5778_v42, %s12899_s0 }
 0xbb6   :  { %v5780_v59 = vpop.permute.xlu0 %5779 }
 0xbb7   :  { %v15081_v48 = vadd.f32 %v5780_v59, %v5778_v42  ;;  %v16861_v42 = vld [vmem:[#allocation34_spill] sm:$0xff]  ;;  %v16865_v59 = vld [vmem:[#allocation40_spill] sm:$0xff] }
 0xbb9   :  { %12732 = vtanh.f32 %v15081_v48 }
 0xbc3   :  { %v12733_v0 = vpop.eup %12732 }
 0xbc4   :  { %v5783_v34 = vmul.f32 %v12733_v0, %v5776_v9  ;;  %v16864_v9 = vld [vmem:[#allocation38_spill] sm:$0xff]  ;;  %v16866_v0 = vld [vmem:[#allocation41_spill] sm:$0xff] }
 0xbc6   :  { %v15085_v53 = vadd.f32 %v5783_v34, %v14963_v38  ;;  %v15087_v8 = vand.u32 4294901760, %v5783_v34  ;;  %v16858_v38 = vld [vmem:[#allocation81_spill] sm:$0xff] }
 0xbc8   :  { %v5883_v37 = vsub.f32 %v5783_v34, %v15087_v8  ;;  %v16867_v34 = vld [vmem:[#allocation42_spill] sm:$0xff] }
 0xbca   :  { %v5884_v20 = vand.u32 4294901760, %v5883_v37 }
 0xbcc   :  { %v5885_v15 = vsub.f32 %v5883_v37, %v5884_v20 }
 0xbce   :  { %v5886_v7 = vand.u32 4294901760, %v5885_v15  ;;  %v16869_v15 = vld [vmem:[#allocation46_spill] sm:$0xff] }
 0xbd0   :  { %5887 = vmatmul.mubr.f32.vlgmr.msra.gmra.mrb[6].mxu0 %v5886_v7  ;;  %v16871_v7 = vld [vmem:[#allocation49_spill] sm:$0xff] }
 0xbd1   :  { %11630 = vmatpush1.bf16.msra.mxu0 %v16786_v14  ;;  %6117 = vmatprep.mubr.f32.mxu0 %v16434_v22 }
 0xbd2   :  { %11632 = vmatprep.subr.bf16.mxu0 %v16787_v21 }
 0xbd5   :  { %11634 = vmatpush1.bf16.msra.mxu0 %v16704_v10 }
 0xbd6   :  { %11636 = vmatprep.subr.bf16.mxu0 %v16705_v51 }
 0xbd9   :  { %11638 = vmatpush1.bf16.msra.mxu0 %v16706_v19 }
 0xbda   :  { %11640 = vmatprep.subr.bf16.mxu0 %v16707_v13 }
 0xbdd   :  { %11642 = vmatpush1.bf16.msra.mxu0 %v16708_v60 }
 0xbde   :  { %11644 = vmatprep.subr.bf16.mxu0 %v16709_v32 }
 0xbe1   :  { %11646 = vmatpush1.bf16.msra.mxu0 %v16710_v61 }
 0xbe2   :  { %11648 = vmatprep.subr.bf16.mxu0 %v16711_v5 }
 0xbe5   :  { %11650 = vmatpush1.bf16.msra.mxu0 %v16712_v58 }
 0xbe6   :  { %11652 = vmatprep.subr.bf16.mxu0 %v16713_v57 }
 0xbe9   :  { %11654 = vmatpush1.bf16.msra.mxu0 %v16714_v23 }
 0xbea   :  { %11656 = vmatprep.subr.bf16.mxu0 %v14123_v17 }
 0xbed   :  { %11658 = vmatpush1.bf16.msra.mxu0 %v14131_v3 }
 0xbee   :  { %11660 = vmatprep.subr.bf16.mxu0 %v14117_v35 }
 0xbf0   :  { %6119 = vmatmul.mubr.f32.vlgmr.msra.gmra.mrb[6].mxu0 %v15087_v8 }
 0xbf1   :  { %11662 = vmatpush1.bf16.msra.mxu0 %v14127_v29  ;;  %6253 = vmatprep.mubr.f32.mxu0 %v16434_v22 }
 0xbf2   :  { %11664 = vmatprep.subr.bf16.mxu0 %v14140_v36 }
 0xbf5   :  { %11666 = vmatpush1.bf16.msra.mxu0 %v16800_v62 }
 0xbf6   :  { %11668 = vmatprep.subr.bf16.mxu0 %v16801_v44 }
 0xbf9   :  { %11670 = vmatpush1.bf16.msra.mxu0 %v14167_v50 }
 0xbfa   :  { %11672 = vmatprep.subr.bf16.mxu0 %v14178_v41 }
 0xbfd   :  { %11674 = vmatpush1.bf16.msra.mxu0 %v14186_v54 }
 0xbfe   :  { %11676 = vmatprep.subr.bf16.mxu0 %v16788_v18 }
 0xc01   :  { %11678 = vmatpush1.bf16.msra.mxu0 %v16802_v46 }
 0xc02   :  { %11680 = vmatprep.subr.bf16.mxu0 %v16804_v33 }
 0xc05   :  { %11682 = vmatpush1.bf16.msra.mxu0 %v16806_v11 }
 0xc06   :  { %11684 = vmatprep.subr.bf16.mxu0 %v16808_v31 }
 0xc09   :  { %11686 = vmatpush1.bf16.msra.mxu0 %v16810_v12 }
 0xc0a   :  { %11688 = vmatprep.subr.bf16.mxu0 %v16812_v30 }
 0xc0d   :  { %11690 = vmatpush1.bf16.msra.mxu0 %v16813_v1 }
 0xc0e   :  { %11692 = vmatprep.subr.bf16.mxu0 %v16685_v56 }
 0xc10   :  { %6256 = vmatmul.mubr.f32.vlgmr.msra.gmra.mrb[6].mxu0 %v5883_v37  ;;  %v16868_v37 = vld [vmem:[#allocation44_spill] sm:$0xff] }
 0xc11   :  { %11694 = vmatpush1.bf16.msra.mxu0 %v16686_v6  ;;  %6358 = vmatprep.mubr.f32.mxu0 %v16434_v22 }
 0xc12   :  { %11696 = vmatprep.subr.bf16.mxu0 %v16687_v27 }
 0xc15   :  { %11698 = vmatpush1.bf16.msra.mxu0 %v16688_v39 }
 0xc16   :  { %11700 = vmatprep.subr.bf16.mxu0 %v16689_v24 }
 0xc19   :  { %11702 = vmatpush1.bf16.msra.mxu0 %v16690_v28 }
 0xc1a   :  { %11704 = vmatprep.subr.bf16.mxu0 %v16691_v52 }
 0xc1d   :  { %11706 = vmatpush1.bf16.msra.mxu0 %v16692_v4 }
 0xc1e   :  { %11708 = vmatprep.subr.bf16.mxu0 %v16693_v43 }
 0xc21   :  { %11710 = vmatpush1.bf16.msra.mxu0 %v16694_v63 }
 0xc22   :  { %11712 = vmatprep.subr.bf16.mxu0 %v16695_v40 }
 0xc25   :  { %11714 = vmatpush1.bf16.msra.mxu0 %v16803_v16 }
 0xc26   :  { %11716 = vmatprep.subr.bf16.mxu0 %v16805_v2 }
 0xc29   :  { %11718 = vmatpush1.bf16.msra.mxu0 %v16807_v45 }
 0xc2a   :  { %11720 = vmatprep.subr.bf16.mxu0 %v16858_v38 }
 0xc2d   :  { %11722 = vmatpush1.bf16.msra.mxu0 %v16859_v25 }
 0xc2e   :  { %11724 = vmatprep.subr.bf16.mxu0 %v16860_v49 }
 0xc30   :  { %6362 = vmatmul.mubr.f32.vlgmr.msra.gmra.mrb[6].mxu0 %v5884_v20  ;;  %v16870_v20 = vld [vmem:[#allocation47_spill] sm:$0xff] }
 0xc31   :  { %11726 = vmatpush1.bf16.msra.mxu0 %v16861_v42  ;;  %6528 = vmatprep.mubr.f32.mxu0 %v16434_v22  ;;  %v16872_v42 = vld [vmem:[#allocation50_spill] sm:$0xff] }
 0xc32   :  { %11728 = vmatprep.subr.bf16.mxu0 %v16862_v47  ;;  %v16873_v47 = vld [vmem:[#allocation52_spill] sm:$0xff] }
 0xc35   :  { %11730 = vmatpush1.bf16.msra.mxu0 %v16863_v55  ;;  %v16874_v55 = vld [vmem:[#allocation53_spill] sm:$0xff] }
 0xc36   :  { %11732 = vmatprep.subr.bf16.mxu0 %v16864_v9  ;;  %v16875_v9 = vld [vmem:[#allocation56_spill] sm:$0xff] }
 0xc39   :  { %11734 = vmatpush1.bf16.msra.mxu0 %v16865_v59 }
 0xc3a   :  { %11736 = vmatprep.subr.bf16.mxu0 %v16866_v0 }
 0xc3d   :  { %11738 = vmatpush1.bf16.msra.mxu0 %v16867_v34 }
 0xc3e   :  { %11740 = vmatprep.subr.bf16.mxu0 %v16868_v37 }
 0xc41   :  { %11742 = vmatpush1.bf16.msra.mxu0 %v16869_v15 }
 0xc42   :  { %11744 = vmatprep.subr.bf16.mxu0 %v16870_v20 }
 0xc45   :  { %11746 = vmatpush1.bf16.msra.mxu0 %v16871_v7  ;;  %v16878_v7 = vld [vmem:[#allocation20_spill] sm:$0xff] }
 0xc46   :  { %11748 = vmatprep.subr.bf16.mxu0 %v16872_v42 }
 0xc49   :  { %11750 = vmatpush1.bf16.msra.mxu0 %v16873_v47 }
 0xc4a   :  { %11752 = vmatprep.subr.bf16.mxu0 %v16874_v55  ;;  %v16877_v55 = vld [vmem:[#allocation62_spill] sm:$0xff] }
 0xc4d   :  { %11754 = vmatpush1.bf16.msra.mxu0 %v16875_v9 }
 0xc4e   :  { %11756 = vmatprep.subr.bf16.mxu0 %v16685_v56 }
 0xc50   :  { %6530 = vmatmul.mubr.f32.vlgmr.msra.gmra.mrb[6].mxu0 %v15087_v8 }
 0xc51   :  { %11758 = vmatpush1.bf16.msra.mxu0 %v16686_v6  ;;  %6632 = vmatprep.mubr.f32.mxu0 %v16434_v22 }
 0xc52   :  { %11760 = vmatprep.subr.bf16.mxu0 %v16687_v27 }
 0xc55   :  { %11762 = vmatpush1.bf16.msra.mxu0 %v16688_v39 }
 0xc56   :  { %11764 = vmatprep.subr.bf16.mxu0 %v16689_v24 }
 0xc59   :  { %11766 = vmatpush1.bf16.msra.mxu0 %v16690_v28 }
 0xc5a   :  { %11768 = vmatprep.subr.bf16.mxu0 %v16691_v52 }
 0xc5d   :  { %11770 = vmatpush1.bf16.msra.mxu0 %v16692_v4 }
 0xc5e   :  { %11772 = vmatprep.subr.bf16.mxu0 %v16693_v43 }
 0xc61   :  { %11774 = vmatpush1.bf16.msra.mxu0 %v16694_v63 }
 0xc62   :  { %11776 = vmatprep.subr.bf16.mxu0 %v16695_v40 }
 0xc65   :  { %11778 = vmatpush1.bf16.msra.mxu0 %v16803_v16 }
 0xc66   :  { %11780 = vmatprep.subr.bf16.mxu0 %v16805_v2 }
 0xc69   :  { %11782 = vmatpush1.bf16.msra.mxu0 %v16807_v45 }
 0xc6a   :  { %11784 = vmatprep.subr.bf16.mxu0 %v16858_v38 }
 0xc6d   :  { %11786 = vmatpush1.bf16.msra.mxu0 %v16859_v25 }
 0xc6e   :  { %11788 = vmatprep.subr.bf16.mxu0 %v16685_v56 }
 0xc70   :  { %6634 = vmatmul.mubr.f32.vlgmr.msra.gmra.mrb[6].mxu0 %v15087_v8  ;;  %v16876_v8 = vld [vmem:[#allocation54_spill] sm:$0xff] }
 0xc71   :  { %11790 = vmatpush1.bf16.msra.mxu0 %v16686_v6  ;;  %6760 = vmatprep.mubr.f32.mxu0 %v16434_v22 }
 0xc72   :  { %11792 = vmatprep.subr.bf16.mxu0 %v16687_v27 }
 0xc75   :  { %11794 = vmatpush1.bf16.msra.mxu0 %v16688_v39 }
 0xc76   :  { %11796 = vmatprep.subr.bf16.mxu0 %v16689_v24 }
 0xc79   :  { %11798 = vmatpush1.bf16.msra.mxu0 %v16690_v28 }
 0xc7a   :  { %11800 = vmatprep.subr.bf16.mxu0 %v16691_v52 }
 0xc7d   :  { %11802 = vmatpush1.bf16.msra.mxu0 %v16692_v4 }
 0xc7e   :  { %11804 = vmatprep.subr.bf16.mxu0 %v16693_v43 }
 0xc81   :  { %11806 = vmatpush1.bf16.msra.mxu0 %v16694_v63 }
 0xc82   :  { %11808 = vmatprep.subr.bf16.mxu0 %v16695_v40 }
 0xc85   :  { %11810 = vmatpush1.bf16.msra.mxu0 %v16803_v16 }
 0xc86   :  { %11812 = vmatprep.subr.bf16.mxu0 %v16805_v2 }
 0xc89   :  { %11814 = vmatpush1.bf16.msra.mxu0 %v16807_v45 }
 0xc8a   :  { %11816 = vmatprep.subr.bf16.mxu0 %v16858_v38 }
 0xc8d   :  { %11818 = vmatpush1.bf16.msra.mxu0 %v16859_v25 }
 0xc8e   :  { %11820 = vmatprep.subr.bf16.mxu0 %v16876_v8 }
 0xd43   :  { %v6635_v9 = vpop.f32.mrb[6].mxu0 }
 0xd44   :  { %v12465_v47 = vadd.f32 %v6635_v9, %v16877_v55  ;;  %v6637_v42 = vpop.f32.mrb[7].mxu0 }
 0xd45   :  { %v12466_v20 = vadd.f32 %v6637_v42, %v16878_v7  ;;  %v16881_v7 = vld [vmem:[#allocation32_spill] sm:$0xff] }
 0xd46   :  { %v9811_v15 = vmul.f32 -1.442695, %v12465_v47 }
 0xd47   :  { %v9812_v37 = vmul.f32 -1.442695, %v12466_v20 }
 0xd48   :  { %12734 = vpow2.f32 %v9811_v15 }
 0xd49   :  { %12736 = vpow2.f32 %v9812_v37 }
 0xd4a   :  { %12738 = vtanh.f32 %v12466_v20 }
 0xd52   :  { %v12735_v34 = vpop.eup %12734 }
 0xd53   :  { %v12737_v0 = vpop.eup %12736  ;;  %v6645_v59 = vadd.f32 1.0, %v12735_v34 }
 0xd54   :  { %v6652_v49 = vadd.f32 1.0, %v12737_v0  ;;  %v12739_v25 = vpop.eup %12738 }
 0xd55   :  { %12740 = vrcp.f32 %v6645_v59  ;;  %v6656_v55 = vsel %vm1402_vm8, %v12739_v25, %v15081_v48 }
 0xd56   :  { %12742 = vrcp.f32 %v6652_v49 }
 0xd5f   :  { %v12741_v38 = vpop.eup %12740 }
 0xd60   :  { %v12743_v9 = vpop.eup %12742  ;;  %v6657_v8 = vmul.f32 %v12741_v38, %v6656_v55  ;;  %v16883_v55 = vld [vmem:[#allocation35_spill] sm:$0xff] }
 0xd61   :  { %v6655_v42 = vsel %vm1402_vm8, %v12739_v25, %v12743_v9  ;;  %v16880_v25 = vld [vmem:[#allocation82_spill] sm:$0xff]  ;;  %v16884_v9 = vld [vmem:[#allocation37_spill] sm:$0xff] }
 0xd62   :  { %6658 = vrot.lane.b32.xlu1 %v6657_v8, %s12899_s0 }
 0xdd4   :  { %v6659_v47 = vpop.permute.xlu1 %6658 }
 0xdd5   :  { %v15203_v37 = vadd.f32 %v6659_v47, %v6657_v8  ;;  %v16882_v8 = vld [vmem:[#allocation34_spill] sm:$0xff]  ;;  %v16886_v47 = vld [vmem:[#allocation40_spill] sm:$0xff] }
 0xdd7   :  { %12744 = vtanh.f32 %v15203_v37 }
 0xde1   :  { %v12745_v59 = vpop.eup %12744 }
 0xde2   :  { %v6662_v49 = vmul.f32 %v12745_v59, %v6655_v42  ;;  %v16885_v42 = vld [vmem:[#allocation38_spill] sm:$0xff]  ;;  %v16887_v59 = vld [vmem:[#allocation41_spill] sm:$0xff] }
 0xde4   :  { %v15206_v0 = vand.u32 4294901760, %v6662_v49  ;;  %v15209_v34 = vadd.f32 %v6662_v49, %v15085_v53  ;;  %v16879_v53 = vld [vmem:[#allocation81_spill] sm:$0xff] }
 0xde6   :  { %v6762_v48 = vsub.f32 %v6662_v49, %v15206_v0  ;;  %v16888_v49 = vld [vmem:[#allocation42_spill] sm:$0xff] }
 0xde8   :  { %v6763_v38 = vand.u32 4294901760, %v6762_v48 }
 0xdea   :  { %v6764_v15 = vsub.f32 %v6762_v48, %v6763_v38 }
 0xdec   :  { %v6765_v20 = vand.u32 4294901760, %v6764_v15  ;;  %v16890_v15 = vld [vmem:[#allocation46_spill] sm:$0xff] }
 0xdee   :  { %6766 = vmatmul.mubr.f32.vlgmr.msra.gmra.mrb[8].mxu0 %v6765_v20  ;;  %v16892_v20 = vld [vmem:[#allocation49_spill] sm:$0xff] }
 0xdef   :  { %11822 = vmatpush1.bf16.msra.mxu0 %v16786_v14  ;;  %6996 = vmatprep.mubr.f32.mxu0 %v16434_v22 }
 0xdf0   :  { %11824 = vmatprep.subr.bf16.mxu0 %v16787_v21 }
 0xdf3   :  { %11826 = vmatpush1.bf16.msra.mxu0 %v16704_v10 }
 0xdf4   :  { %11828 = vmatprep.subr.bf16.mxu0 %v16705_v51 }
 0xdf7   :  { %11830 = vmatpush1.bf16.msra.mxu0 %v16706_v19 }
 0xdf8   :  { %11832 = vmatprep.subr.bf16.mxu0 %v16707_v13 }
 0xdfb   :  { %11834 = vmatpush1.bf16.msra.mxu0 %v16708_v60 }
 0xdfc   :  { %11836 = vmatprep.subr.bf16.mxu0 %v16709_v32 }
 0xdff   :  { %11838 = vmatpush1.bf16.msra.mxu0 %v16710_v61 }
 0xe00   :  { %11840 = vmatprep.subr.bf16.mxu0 %v16711_v5 }
 0xe03   :  { %11842 = vmatpush1.bf16.msra.mxu0 %v16712_v58 }
 0xe04   :  { %11844 = vmatprep.subr.bf16.mxu0 %v16713_v57 }
 0xe07   :  { %11846 = vmatpush1.bf16.msra.mxu0 %v16714_v23 }
 0xe08   :  { %11848 = vmatprep.subr.bf16.mxu0 %v14123_v17 }
 0xe0b   :  { %11850 = vmatpush1.bf16.msra.mxu0 %v14131_v3 }
 0xe0c   :  { %11852 = vmatprep.subr.bf16.mxu0 %v14117_v35 }
 0xe0e   :  { %6998 = vmatmul.mubr.f32.vlgmr.msra.gmra.mrb[8].mxu0 %v15206_v0 }
 0xe0f   :  { %11854 = vmatpush1.bf16.msra.mxu0 %v14127_v29  ;;  %7132 = vmatprep.mubr.f32.mxu0 %v16434_v22 }
 0xe10   :  { %11856 = vmatprep.subr.bf16.mxu0 %v14140_v36 }
 0xe13   :  { %11858 = vmatpush1.bf16.msra.mxu0 %v16800_v62 }
 0xe14   :  { %11860 = vmatprep.subr.bf16.mxu0 %v16801_v44 }
 0xe17   :  { %11862 = vmatpush1.bf16.msra.mxu0 %v14167_v50 }
 0xe18   :  { %11864 = vmatprep.subr.bf16.mxu0 %v14178_v41 }
 0xe1b   :  { %11866 = vmatpush1.bf16.msra.mxu0 %v14186_v54 }
 0xe1c   :  { %11868 = vmatprep.subr.bf16.mxu0 %v16788_v18 }
 0xe1f   :  { %11870 = vmatpush1.bf16.msra.mxu0 %v16802_v46 }
 0xe20   :  { %11872 = vmatprep.subr.bf16.mxu0 %v16804_v33 }
 0xe23   :  { %11874 = vmatpush1.bf16.msra.mxu0 %v16806_v11 }
 0xe24   :  { %11876 = vmatprep.subr.bf16.mxu0 %v16808_v31 }
 0xe27   :  { %11878 = vmatpush1.bf16.msra.mxu0 %v16810_v12 }
 0xe28   :  { %11880 = vmatprep.subr.bf16.mxu0 %v16812_v30 }
 0xe2b   :  { %11882 = vmatpush1.bf16.msra.mxu0 %v16813_v1 }
 0xe2c   :  { %11884 = vmatprep.subr.bf16.mxu0 %v16685_v56 }
 0xe2e   :  { %7135 = vmatmul.mubr.f32.vlgmr.msra.gmra.mrb[8].mxu0 %v6762_v48  ;;  %v16889_v48 = vld [vmem:[#allocation44_spill] sm:$0xff] }
 0xe2f   :  { %11886 = vmatpush1.bf16.msra.mxu0 %v16686_v6  ;;  %7237 = vmatprep.mubr.f32.mxu0 %v16434_v22 }
 0xe30   :  { %11888 = vmatprep.subr.bf16.mxu0 %v16687_v27 }
 0xe33   :  { %11890 = vmatpush1.bf16.msra.mxu0 %v16688_v39 }
 0xe34   :  { %11892 = vmatprep.subr.bf16.mxu0 %v16689_v24 }
 0xe37   :  { %11894 = vmatpush1.bf16.msra.mxu0 %v16690_v28 }
 0xe38   :  { %11896 = vmatprep.subr.bf16.mxu0 %v16691_v52 }
 0xe3b   :  { %11898 = vmatpush1.bf16.msra.mxu0 %v16692_v4 }
 0xe3c   :  { %11900 = vmatprep.subr.bf16.mxu0 %v16693_v43 }
 0xe3f   :  { %11902 = vmatpush1.bf16.msra.mxu0 %v16694_v63 }
 0xe40   :  { %11904 = vmatprep.subr.bf16.mxu0 %v16695_v40 }
 0xe43   :  { %11906 = vmatpush1.bf16.msra.mxu0 %v16803_v16 }
 0xe44   :  { %11908 = vmatprep.subr.bf16.mxu0 %v16805_v2 }
 0xe47   :  { %11910 = vmatpush1.bf16.msra.mxu0 %v16807_v45 }
 0xe48   :  { %11912 = vmatprep.subr.bf16.mxu0 %v16879_v53 }
 0xe4b   :  { %11914 = vmatpush1.bf16.msra.mxu0 %v16880_v25 }
 0xe4c   :  { %11916 = vmatprep.subr.bf16.mxu0 %v16881_v7 }
 0xe4e   :  { %7241 = vmatmul.mubr.f32.vlgmr.msra.gmra.mrb[8].mxu0 %v6763_v38  ;;  %v16891_v38 = vld [vmem:[#allocation47_spill] sm:$0xff] }
 0xe4f   :  { %11918 = vmatpush1.bf16.msra.mxu0 %v16882_v8  ;;  %7407 = vmatprep.mubr.f32.mxu0 %v16434_v22  ;;  %v16893_v8 = vld [vmem:[#allocation50_spill] sm:$0xff] }
 0xe50   :  { %11920 = vmatprep.subr.bf16.mxu0 %v16883_v55  ;;  %v16894_v55 = vld [vmem:[#allocation52_spill] sm:$0xff] }
 0xe53   :  { %11922 = vmatpush1.bf16.msra.mxu0 %v16884_v9  ;;  %v16895_v9 = vld [vmem:[#allocation53_spill] sm:$0xff] }
 0xe54   :  { %11924 = vmatprep.subr.bf16.mxu0 %v16885_v42  ;;  %v16896_v42 = vld [vmem:[#allocation56_spill] sm:$0xff] }
 0xe57   :  { %11926 = vmatpush1.bf16.msra.mxu0 %v16886_v47 }
 0xe58   :  { %11928 = vmatprep.subr.bf16.mxu0 %v16887_v59 }
 0xe5b   :  { %11930 = vmatpush1.bf16.msra.mxu0 %v16888_v49 }
 0xe5c   :  { %11932 = vmatprep.subr.bf16.mxu0 %v16889_v48 }
 0xe5f   :  { %11934 = vmatpush1.bf16.msra.mxu0 %v16890_v15 }
 0xe60   :  { %11936 = vmatprep.subr.bf16.mxu0 %v16891_v38 }
 0xe63   :  { %11938 = vmatpush1.bf16.msra.mxu0 %v16892_v20  ;;  %v16899_v20 = vld [vmem:[#allocation58_spill] sm:$0xff] }
 0xe64   :  { %11940 = vmatprep.subr.bf16.mxu0 %v16893_v8 }
 0xe67   :  { %11942 = vmatpush1.bf16.msra.mxu0 %v16894_v55 }
 0xe68   :  { %11944 = vmatprep.subr.bf16.mxu0 %v16895_v9  ;;  %v16898_v9 = vld [vmem:[#allocation22_spill] sm:$0xff] }
 0xe6b   :  { %11946 = vmatpush1.bf16.msra.mxu0 %v16896_v42 }
 0xe6c   :  { %11948 = vmatprep.subr.bf16.mxu0 %v16685_v56 }
 0xe6e   :  { %7409 = vmatmul.mubr.f32.vlgmr.msra.gmra.mrb[8].mxu0 %v15206_v0 }
 0xe6f   :  { %11950 = vmatpush1.bf16.msra.mxu0 %v16686_v6  ;;  %7511 = vmatprep.mubr.f32.mxu0 %v16434_v22 }
 0xe70   :  { %11952 = vmatprep.subr.bf16.mxu0 %v16687_v27 }
 0xe73   :  { %11954 = vmatpush1.bf16.msra.mxu0 %v16688_v39 }
 0xe74   :  { %11956 = vmatprep.subr.bf16.mxu0 %v16689_v24 }
 0xe77   :  { %11958 = vmatpush1.bf16.msra.mxu0 %v16690_v28 }
 0xe78   :  { %11960 = vmatprep.subr.bf16.mxu0 %v16691_v52 }
 0xe7b   :  { %11962 = vmatpush1.bf16.msra.mxu0 %v16692_v4 }
 0xe7c   :  { %11964 = vmatprep.subr.bf16.mxu0 %v16693_v43 }
 0xe7f   :  { %11966 = vmatpush1.bf16.msra.mxu0 %v16694_v63 }
 0xe80   :  { %11968 = vmatprep.subr.bf16.mxu0 %v16695_v40 }
 0xe83   :  { %11970 = vmatpush1.bf16.msra.mxu0 %v16803_v16 }
 0xe84   :  { %11972 = vmatprep.subr.bf16.mxu0 %v16805_v2 }
 0xe87   :  { %11974 = vmatpush1.bf16.msra.mxu0 %v16807_v45 }
 0xe88   :  { %11976 = vmatprep.subr.bf16.mxu0 %v16879_v53 }
 0xe8b   :  { %11978 = vmatpush1.bf16.msra.mxu0 %v16880_v25 }
 0xe8c   :  { %11980 = vmatprep.subr.bf16.mxu0 %v16685_v56 }
 0xe8e   :  { %7513 = vmatmul.mubr.f32.vlgmr.msra.gmra.mrb[8].mxu0 %v15206_v0  ;;  %v16897_v0 = vld [vmem:[#allocation54_spill] sm:$0xff] }
 0xe8f   :  { %11982 = vmatpush1.bf16.msra.mxu0 %v16686_v6  ;;  %7639 = vmatprep.mubr.f32.mxu0 %v16434_v22 }
 0xe90   :  { %11984 = vmatprep.subr.bf16.mxu0 %v16687_v27 }
 0xe93   :  { %11986 = vmatpush1.bf16.msra.mxu0 %v16688_v39 }
 0xe94   :  { %11988 = vmatprep.subr.bf16.mxu0 %v16689_v24 }
 0xe97   :  { %11990 = vmatpush1.bf16.msra.mxu0 %v16690_v28 }
 0xe98   :  { %11992 = vmatprep.subr.bf16.mxu0 %v16691_v52 }
 0xe9b   :  { %11994 = vmatpush1.bf16.msra.mxu0 %v16692_v4 }
 0xe9c   :  { %11996 = vmatprep.subr.bf16.mxu0 %v16693_v43 }
 0xe9f   :  { %11998 = vmatpush1.bf16.msra.mxu0 %v16694_v63 }
 0xea0   :  { %12000 = vmatprep.subr.bf16.mxu0 %v16695_v40 }
 0xea3   :  { %12002 = vmatpush1.bf16.msra.mxu0 %v16803_v16 }
 0xea4   :  { %12004 = vmatprep.subr.bf16.mxu0 %v16805_v2 }
 0xea7   :  { %12006 = vmatpush1.bf16.msra.mxu0 %v16807_v45 }
 0xea8   :  { %12008 = vmatprep.subr.bf16.mxu0 %v16879_v53 }
 0xeab   :  { %12010 = vmatpush1.bf16.msra.mxu0 %v16880_v25 }
 0xeac   :  { %12012 = vmatprep.subr.bf16.mxu0 %v16897_v0 }
 0xf61   :  { %v7514_v42 = vpop.f32.mrb[8].mxu0 }
 0xf62   :  { %v12467_v55 = vadd.f32 %v7514_v42, %v16898_v9  ;;  %v7516_v8 = vpop.f32.mrb[9].mxu0 }
 0xf63   :  { %v12468_v38 = vadd.f32 %v7516_v8, %v16899_v20 }
 0xf64   :  { %v9813_v15 = vmul.f32 -1.442695, %v12467_v55 }
 0xf65   :  { %v9814_v48 = vmul.f32 -1.442695, %v12468_v38 }
 0xf66   :  { %12746 = vpow2.f32 %v9813_v15 }
 0xf67   :  { %12748 = vpow2.f32 %v9814_v48 }
 0xf68   :  { %12750 = vtanh.f32 %v12468_v38 }
 0xf70   :  { %v12747_v49 = vpop.eup %12746 }
 0xf71   :  { %v12749_v59 = vpop.eup %12748  ;;  %v7524_v47 = vadd.f32 1.0, %v12747_v49 }
 0xf72   :  { %v7531_v7 = vadd.f32 1.0, %v12749_v59  ;;  %v12751_v25 = vpop.eup %12750 }
 0xf73   :  { %12752 = vrcp.f32 %v7524_v47  ;;  %v7535_v9 = vsel %vm1402_vm8, %v12751_v25, %v15203_v37 }
 0xf74   :  { %12754 = vrcp.f32 %v7531_v7 }
 0xf7d   :  { %v12753_v53 = vpop.eup %12752 }
 0xf7e   :  { %v12755_v42 = vpop.eup %12754  ;;  %v7536_v0 = vmul.f32 %v12753_v53, %v7535_v9 }
 0xf7f   :  { %v7534_v8 = vsel %vm1402_vm8, %v12751_v25, %v12755_v42 }
 0xf80   :  { %7537 = vrot.lane.b32.xlu0 %v7536_v0, %s12899_s0 }
 0xff2   :  { %v7538_v55 = vpop.permute.xlu0 %7537 }
 0xff3   :  { %v15325_v48 = vadd.f32 %v7538_v55, %v7536_v0  ;;  %v8428_v0 = vld [vmem:[#allocation7 + $0x30] sm:$0xff] }
 0xff4   :  { %v8464_v55 = vand.u32 4294901760, %v8428_v0 }
 0xff5   :  { %12756 = vtanh.f32 %v15325_v48 }
 0xfff   :  { %v12757_v47 = vpop.eup %12756 }
0x1000   :  { %v7541_v7 = vmul.f32 %v12757_v47, %v7534_v8  ;;  %v8429_v8 = vld [vmem:[#allocation7 + $0x38] sm:$0xff] }
0x1001   :  { %v8467_v47 = vand.u32 4294901760, %v8429_v8 }
0x1002   :  { %v15328_v59 = vand.u32 4294901760, %v7541_v7  ;;  %v15331_v49 = vadd.f32 %v7541_v7, %v15209_v34  ;;  %v8427_v34 = vld [vmem:[#allocation7 + $0x28] sm:$0xff] }
0x1003   :  { %v8461_v9 = vand.u32 4294901760, %v8427_v34 }
0x1004   :  { %v7641_v37 = vsub.f32 %v7541_v7, %v15328_v59  ;;  %v15444_v7 = vpack.c.bf16 %v8467_v47, %v8464_v55 }
0x1005   :  { %v15469_v26 = vsub.f32 %v8427_v34, %v8461_v9 }
0x1006   :  { %v7642_v53 = vand.u32 4294901760, %v7641_v37 }
0x1008   :  { %v7643_v15 = vsub.f32 %v7641_v37, %v7642_v53 }
0x100a   :  { %v7644_v38 = vand.u32 4294901760, %v7643_v15 }
0x100c   :  { %7645 = vmatmul.mubr.f32.vlgmr.msra.gmra.mrb[10].mxu0 %v7644_v38 }
0x100d   :  { %12014 = vmatpush1.bf16.msra.mxu0 %v16786_v14  ;;  %7875 = vmatprep.mubr.f32.mxu0 %v16434_v22 }
0x100e   :  { %12016 = vmatprep.subr.bf16.mxu0 %v16787_v21  ;;  %v16918_v21 = vld [vmem:[#allocation25_spill] sm:$0xff] }
0x1011   :  { %12018 = vmatpush1.bf16.msra.mxu0 %v16704_v10  ;;  %v16904_v10 = vld [vmem:[#allocation35_spill] sm:$0xff] }
0x1012   :  { %12020 = vmatprep.subr.bf16.mxu0 %v16705_v51  ;;  %v16903_v51 = vld [vmem:[#allocation34_spill] sm:$0xff] }
0x1015   :  { %12022 = vmatpush1.bf16.msra.mxu0 %v16706_v19 }
0x1016   :  { %12024 = vmatprep.subr.bf16.mxu0 %v16707_v13 }
0x1019   :  { %12026 = vmatpush1.bf16.msra.mxu0 %v16708_v60  ;;  %v16916_v60 = vld [vmem:[#allocation53_spill] sm:$0xff] }
0x101a   :  { %12028 = vmatprep.subr.bf16.mxu0 %v16709_v32  ;;  %v16901_v32 = vld [vmem:[#allocation82_spill] sm:$0xff] }
0x101d   :  { %12030 = vmatpush1.bf16.msra.mxu0 %v16710_v61  ;;  %v16906_v61 = vld [vmem:[#allocation38_spill] sm:$0xff] }
0x101e   :  { %12032 = vmatprep.subr.bf16.mxu0 %v16711_v5  ;;  %v16902_v5 = vld [vmem:[#allocation32_spill] sm:$0xff] }
0x1021   :  { %12034 = vmatpush1.bf16.msra.mxu0 %v16712_v58  ;;  %v16917_v58 = vld [vmem:[#allocation56_spill] sm:$0xff] }
0x1022   :  { %12036 = vmatprep.subr.bf16.mxu0 %v16713_v57  ;;  %v16900_v57 = vld [vmem:[#allocation81_spill] sm:$0xff] }
0x1025   :  { %12038 = vmatpush1.bf16.msra.mxu0 %v16714_v23  ;;  %v16905_v23 = vld [vmem:[#allocation37_spill] sm:$0xff] }
0x1026   :  { %12040 = vmatprep.subr.bf16.mxu0 %v14123_v17  ;;  %v16907_v17 = vld [vmem:[#allocation40_spill] sm:$0xff] }
0x1029   :  { %12042 = vmatpush1.bf16.msra.mxu0 %v14131_v3  ;;  %v16911_v3 = vld [vmem:[#allocation46_spill] sm:$0xff] }
0x102a   :  { %12044 = vmatprep.subr.bf16.mxu0 %v14117_v35  ;;  %v16909_v35 = vld [vmem:[#allocation42_spill] sm:$0xff] }
0x102c   :  { %7877 = vmatmul.mubr.f32.vlgmr.msra.gmra.mrb[10].mxu0 %v15328_v59 }
0x102d   :  { %12046 = vmatpush1.bf16.msra.mxu0 %v14127_v29  ;;  %8011 = vmatprep.mubr.f32.mxu0 %v16434_v22  ;;  %v16910_v29 = vld [vmem:[#allocation44_spill] sm:$0xff] }
0x102e   :  { %12048 = vmatprep.subr.bf16.mxu0 %v14140_v36  ;;  %v16912_v36 = vld [vmem:[#allocation47_spill] sm:$0xff] }
0x1031   :  { %12050 = vmatpush1.bf16.msra.mxu0 %v16800_v62 }
0x1032   :  { %12052 = vmatprep.subr.bf16.mxu0 %v16801_v44  ;;  %v16919_v44 = vld [vmem:[#allocation27_spill] sm:$0xff] }
0x1035   :  { %12054 = vmatpush1.bf16.msra.mxu0 %v14167_v50  ;;  %v16913_v50 = vld [vmem:[#allocation49_spill] sm:$0xff] }
0x1036   :  { %12056 = vmatprep.subr.bf16.mxu0 %v14178_v41  ;;  %v16914_v41 = vld [vmem:[#allocation50_spill] sm:$0xff] }
0x1039   :  { %12058 = vmatpush1.bf16.msra.mxu0 %v14186_v54  ;;  %v16915_v54 = vld [vmem:[#allocation52_spill] sm:$0xff] }
0x103a   :  { %12060 = vmatprep.subr.bf16.mxu0 %v16788_v18 }
0x103d   :  { %12062 = vmatpush1.bf16.msra.mxu0 %v16802_v46 }
0x103e   :  { %12064 = vmatprep.subr.bf16.mxu0 %v16804_v33 }
0x1041   :  { %12066 = vmatpush1.bf16.msra.mxu0 %v16806_v11 }
0x1042   :  { %12068 = vmatprep.subr.bf16.mxu0 %v16808_v31  ;;  %v8426_v31 = vld [vmem:[#allocation7 + $0x20] sm:$0xff] }
0x1043   :  { %v8458_v20 = vand.u32 4294901760, %v8426_v31 }
0x1045   :  { %12070 = vmatpush1.bf16.msra.mxu0 %v16810_v12  ;;  %v16908_v12 = vld [vmem:[#allocation41_spill] sm:$0xff]  ;;  %v15440_v42 = vpack.c.bf16 %v8461_v9, %v8458_v20 }
0x1046   :  { %12072 = vmatprep.subr.bf16.mxu0 %v16812_v30 }
0x1049   :  { %12074 = vmatpush1.bf16.msra.mxu0 %v16813_v1 }
0x104a   :  { %12076 = vmatprep.subr.bf16.mxu0 %v16685_v56 }
0x104c   :  { %8014 = vmatmul.mubr.f32.vlgmr.msra.gmra.mrb[10].mxu0 %v7641_v37  ;;  %v8431_v37 = vld [vmem:[#allocation7 + $0x48] sm:$0xff] }
0x104d   :  { %12078 = vmatpush1.bf16.msra.mxu0 %v16686_v6  ;;  %8116 = vmatprep.mubr.f32.mxu0 %v16434_v22  ;;  %v8473_v38 = vand.u32 4294901760, %v8431_v37 }
0x104e   :  { %12080 = vmatprep.subr.bf16.mxu0 %v16687_v27 }
0x1051   :  { %12082 = vmatpush1.bf16.msra.mxu0 %v16688_v39 }
0x1052   :  { %12084 = vmatprep.subr.bf16.mxu0 %v16689_v24 }
0x1055   :  { %12086 = vmatpush1.bf16.msra.mxu0 %v16690_v28 }
0x1056   :  { %12088 = vmatprep.subr.bf16.mxu0 %v16691_v52 }
0x1059   :  { %12090 = vmatpush1.bf16.msra.mxu0 %v16692_v4 }
0x105a   :  { %12092 = vmatprep.subr.bf16.mxu0 %v16693_v43 }
0x105d   :  { %12094 = vmatpush1.bf16.msra.mxu0 %v16694_v63 }
0x105e   :  { %12096 = vmatprep.subr.bf16.mxu0 %v16695_v40 }
0x1061   :  { %12098 = vmatpush1.bf16.msra.mxu0 %v16803_v16 }
0x1062   :  { %12100 = vmatprep.subr.bf16.mxu0 %v16805_v2 }
0x1065   :  { %12102 = vmatpush1.bf16.msra.mxu0 %v16807_v45 }
0x1066   :  { %12104 = vmatprep.subr.bf16.mxu0 %v16900_v57 }
0x1069   :  { %12106 = vmatpush1.bf16.msra.mxu0 %v16901_v32 }
0x106a   :  { %12108 = vmatprep.subr.bf16.mxu0 %v16902_v5 }
0x106c   :  { %8120 = vmatmul.mubr.f32.vlgmr.msra.gmra.mrb[10].mxu0 %v7642_v53 }
0x106d   :  { %12110 = vmatpush1.bf16.msra.mxu0 %v16903_v51  ;;  %8286 = vmatprep.mubr.f32.mxu0 %v16434_v22  ;;  %v8432_v51 = vld [vmem:[#allocation7 + $0x50] sm:$0xff] }
0x106e   :  { %12112 = vmatprep.subr.bf16.mxu0 %v16904_v10  ;;  %v8433_v10 = vld [vmem:[#allocation7 + $0x58] sm:$0xff] }
0x1071   :  { %12114 = vmatpush1.bf16.msra.mxu0 %v16905_v23 }
0x1072   :  { %12116 = vmatprep.subr.bf16.mxu0 %v16906_v61 }
0x1075   :  { %12118 = vmatpush1.bf16.msra.mxu0 %v16907_v17  ;;  %v8476_v17 = vand.u32 4294901760, %v8432_v51 }
0x1076   :  { %12120 = vmatprep.subr.bf16.mxu0 %v16908_v12  ;;  %v8479_v12 = vand.u32 4294901760, %v8433_v10 }
0x1079   :  { %12122 = vmatpush1.bf16.msra.mxu0 %v16909_v35 }
0x107a   :  { %12124 = vmatprep.subr.bf16.mxu0 %v16910_v29  ;;  %v15463_v29 = vpack.c.bf16 %v8479_v12, %v8476_v17 }
0x107d   :  { %12126 = vmatpush1.bf16.msra.mxu0 %v16911_v3  ;;  %v8435_v3 = vld [vmem:[#allocation7 + $0x68] sm:$0xff] }
0x107e   :  { %12128 = vmatprep.subr.bf16.mxu0 %v16912_v36 }
0x1081   :  { %12130 = vmatpush1.bf16.msra.mxu0 %v16913_v50  ;;  %v8485_v50 = vand.u32 4294901760, %v8435_v3 }
0x1082   :  { %12132 = vmatprep.subr.bf16.mxu0 %v16914_v41  ;;  %v15467_v41 = vsub.f32 %v8426_v31, %v8458_v20 }
0x1085   :  { %12134 = vmatpush1.bf16.msra.mxu0 %v16915_v54  ;;  %v15471_v54 = vsub.f32 %v8428_v0, %v8464_v55  ;;  %v8567_v55 = vand.u32 4294901760, %v15467_v41 }
0x1086   :  { %12136 = vmatprep.subr.bf16.mxu0 %v16916_v60  ;;  %v15473_v60 = vsub.f32 %v8429_v8, %v8467_v47  ;;  %v8574_v47 = vand.u32 4294901760, %v15469_v26 }
0x1089   :  { %12138 = vmatpush1.bf16.msra.mxu0 %v16917_v58  ;;  %v8436_v58 = vld [vmem:[#allocation7 + $0x70] sm:$0xff] }
0x108a   :  { %12140 = vmatprep.subr.bf16.mxu0 %v16685_v56  ;;  %v8422_v56 = vld [vmem:[#allocation7] sm:$0xff] }
0x108c   :  { %8288 = vmatmul.mubr.f32.vlgmr.msra.gmra.mrb[10].mxu0 %v15328_v59 }
0x108d   :  { %12142 = vmatpush1.bf16.msra.mxu0 %v16686_v6  ;;  %8390 = vmatprep.mubr.f32.mxu0 %v16434_v22  ;;  %v8423_v6 = vld [vmem:[#allocation7 + $0x8] sm:$0xff] }
0x108e   :  { %12144 = vmatprep.subr.bf16.mxu0 %v16687_v27  ;;  %v8424_v27 = vld [vmem:[#allocation7 + $0x10] sm:$0xff] }
0x1091   :  { %12146 = vmatpush1.bf16.msra.mxu0 %v16688_v39  ;;  %v12900_v39 = vmov 0.0|0.0  }
0x1092   :  { %12148 = vmatprep.subr.bf16.mxu0 %v16689_v24  ;;  %12171 = vmatprep.subr.bf16.mxu1 %v12900_v39  ;;  %v8446_v24 = vand.u32 4294901760, %v8422_v56 }
0x1095   :  { %12150 = vmatpush1.bf16.msra.mxu0 %v16690_v28  ;;  %v8425_v28 = vld [vmem:[#allocation7 + $0x18] sm:$0xff] }
0x1096   :  { %12152 = vmatprep.subr.bf16.mxu0 %v16691_v52  ;;  %v8452_v52 = vand.u32 4294901760, %v8424_v27 }
0x1098   :  { %v15428_v13 = vsub.f32 %v8424_v27, %v8452_v52  ;;  %v15477_v27 = vsub.f32 %v8431_v37, %v8473_v38  ;;  %v8568_v37 = vsub.f32 %v15467_v41, %v8567_v55 }
0x1099   :  { %12154 = vmatpush1.bf16.msra.mxu0 %v16692_v4  ;;  %v8455_v4 = vand.u32 4294901760, %v8425_v28 }
0x109a   :  { %12156 = vmatprep.subr.bf16.mxu0 %v16693_v43  ;;  %v8553_v31 = vand.u32 4294901760, %v15428_v13 }
0x109b   :  { %v15430_v1 = vsub.f32 %v8425_v28, %v8455_v4  ;;  %v15433_v30 = vpack.c.bf16 %v8455_v4, %v8452_v52  ;;  %v15487_v4 = vsub.f32 %v8435_v3, %v8485_v50  ;;  %v16376_v3 = vand.u32 4294901760, %v15477_v27 }
0x109c   :  { %v8554_v20 = vsub.f32 %v15428_v13, %v8553_v31 }
0x109d   :  { %12158 = vmatpush1.bf16.msra.mxu0 %v16694_v63  ;;  %v15424_v63 = vsub.f32 %v8422_v56, %v8446_v24  ;;  %v8437_v56 = vld [vmem:[#allocation7 + $0x78] sm:$0xff]  ;;  %v8560_v34 = vand.u32 4294901760, %v15430_v1 }
0x109e   :  { %12160 = vmatprep.subr.bf16.mxu0 %v16695_v40  ;;  %v8449_v40 = vand.u32 4294901760, %v8423_v6  ;;  %v8555_v0 = vand.u32 4294901760, %v8554_v20 }
0x109f   :  { %v8561_v9 = vsub.f32 %v15430_v1, %v8560_v34 }
0x10a0   :  { %v15422_v43 = vpack.c.bf16 %v8449_v40, %v8446_v24  ;;  %v15426_v19 = vsub.f32 %v8423_v6, %v8449_v40  ;;  %v15479_v24 = vsub.f32 %v8432_v51, %v8476_v17  ;;  %v15481_v40 = vsub.f32 %v8433_v10, %v8479_v12 }
0x10a1   :  { %12162 = vmatpush1.bf16.msra.mxu0 %v16803_v16  ;;  %v8562_v8 = vand.u32 4294901760, %v8561_v9 }
0x10a2   :  { %12164 = vmatprep.subr.bf16.mxu0 %v16805_v2  ;;  %12173 = vmatpush3.bf16.msra.mxu1 %v15422_v43 }
0x10a3   :  { %12174 = vmatprep.subr.bf16.mxu1 %v12900_v39 }
0x10a5   :  { %12166 = vmatpush1.bf16.msra.mxu0 %v16807_v45 }
0x10a6   :  { %12168 = vmatprep.subr.bf16.mxu0 %v16900_v57  ;;  %12176 = vmatpush3.bf16.msra.mxu1 %v15433_v30 }
0x10a7   :  { %12177 = vmatprep.subr.bf16.mxu1 %v12900_v39 }
0x10a9   :  { %12170 = vmatpush1.bf16.msra.mxu0 %v16901_v32 }
0x10aa   :  { %12179 = vmatpush3.bf16.msra.mxu1 %v15440_v42 }
0x10ab   :  { %12180 = vmatprep.subr.bf16.mxu1 %v12900_v39 }
0x10ac   :  { %8392 = vmatmul.mubr.f32.vlgmr.msra.gmra.mrb[10].mxu0 %v15328_v59  ;;  %v8430_v59 = vld [vmem:[#allocation7 + $0x40] sm:$0xff] }
0x10ad   :  { %v8470_v15 = vand.u32 4294901760, %v8430_v59 }
0x10ae   :  { %12182 = vmatpush3.bf16.msra.mxu1 %v15444_v7 }
0x10af   :  { %12183 = vmatprep.subr.bf16.mxu1 %v12900_v39  ;;  %v15448_v57 = vpack.c.bf16 %v8473_v38, %v8470_v15  ;;  %v15475_v6 = vsub.f32 %v8430_v59, %v8470_v15  ;;  %v15521_v59 = vpack.c.bf16 %v8562_v8, %v8555_v0  ;;  %v8569_v15 = vand.u32 4294901760, %v8568_v37 }
0x10b0   :  { %v16372_v8 = vand.u32 4294901760, %v15487_v4 }
0x10b2   :  { %12185 = vmatpush3.bf16.msra.mxu1 %v15448_v57 }
0x10b3   :  { %12186 = vmatprep.subr.bf16.mxu1 %v12900_v39 }
0x10b6   :  { %12188 = vmatpush3.bf16.msra.mxu1 %v15463_v29 }
0x10b7   :  { %12189 = vmatprep.subr.bf16.mxu1 %v12900_v39 }
0x117f   :  { %v8393_v14 = vpop.f32.mrb[10].mxu0 }
0x1180   :  { %v12469_v18 = vadd.f32 %v8393_v14, %v16918_v21  ;;  %v8395_v62 = vpop.f32.mrb[11].mxu0  ;;  %v8488_v14 = vand.u32 4294901760, %v8436_v58  ;;  %v8491_v21 = vand.u32 4294901760, %v8437_v56 }
0x1181   :  { %v12470_v46 = vadd.f32 %v8395_v62, %v16919_v44  ;;  %v8546_v62 = vand.u32 4294901760, %v15426_v19 }
0x1182   :  { %v9815_v16 = vmul.f32 -1.442695, %v12469_v18  ;;  %v8539_v18 = vand.u32 4294901760, %v15424_v63  ;;  %v15492_v44 = vsub.f32 %v8436_v58, %v8488_v14  ;;  %v8603_v58 = vsub.f32 %v15477_v27, %v16376_v3 }
0x1183   :  { %v9816_v33 = vmul.f32 -1.442695, %v12470_v46 }
0x1184   :  { %12758 = vpow2.f32 %v9815_v16  ;;  %v15499_v16 = vsub.f32 %v8437_v56, %v8491_v21 }
0x1185   :  { %12760 = vpow2.f32 %v9816_v33  ;;  %v8540_v33 = vsub.f32 %v15424_v63, %v8539_v18 }
0x1186   :  { %12762 = vtanh.f32 %v12470_v46  ;;  %v15497_v46 = vpack.c.bf16 %v8491_v21, %v8488_v14  ;;  %v8604_v14 = vand.u32 4294901760, %v8603_v58  ;;  %v16375_v21 = vand.u32 4294901760, %v15479_v24 }
0x118e   :  { %v12759_v2 = vpop.eup %12758 }
0x118f   :  { %v12761_v11 = vpop.eup %12760  ;;  %v8403_v45 = vadd.f32 1.0, %v12759_v2  ;;  %v8547_v2 = vsub.f32 %v15426_v19, %v8546_v62 }
0x1190   :  { %v8410_v25 = vadd.f32 1.0, %v12761_v11  ;;  %v12763_v53 = vpop.eup %12762  ;;  %v8541_v11 = vand.u32 4294901760, %v8540_v33  ;;  %v16374_v33 = vand.u32 4294901760, %v15481_v40 }
0x1191   :  { %12764 = vrcp.f32 %v8403_v45  ;;  %v8414_v5 = vsel %vm1402_vm8, %v12763_v53, %v15325_v48  ;;  %v8434_v48 = vld [vmem:[#allocation7 + $0x60] sm:$0xff]  ;;  %v8548_v45 = vand.u32 4294901760, %v8547_v2 }
0x1192   :  { %12766 = vrcp.f32 %v8410_v25  ;;  %v8482_v36 = vand.u32 4294901760, %v8434_v48 }
0x1193   :  { %v15511_v25 = vpack.c.bf16 %v8548_v45, %v8541_v11  ;;  %v8610_v11 = vsub.f32 %v15479_v24, %v16375_v21  ;;  %v8617_v45 = vsub.f32 %v15481_v40, %v16374_v33 }
0x1194   :  { %v15483_v28 = vpack.c.bf16 %v8485_v50, %v8482_v36  ;;  %v15485_v52 = vsub.f32 %v8434_v48, %v8482_v36  ;;  %v8595_v48 = vand.u32 4294901760, %v15475_v6 }
0x1195   :  { %v8611_v20 = vand.u32 4294901760, %v8610_v11  ;;  %v8618_v9 = vand.u32 4294901760, %v8617_v45  ;;  %v12220_v45 = vpack.c.bf16 %v15426_v19, %v15424_v63  ;;  %v12274_v63 = vpack.c.bf16 %v8574_v47, %v8567_v55 }
0x1196   :  { %12191 = vmatpush3.bf16.msra.mxu1 %v15483_v28  ;;  %v8596_v50 = vsub.f32 %v15475_v6, %v8595_v48  ;;  %v16373_v0 = vand.u32 4294901760, %v15485_v52 }
0x1197   :  { %12192 = vmatprep.subr.bf16.mxu1 %v12900_v39  ;;  %v12211_v37 = vpack.c.bf16 %v8618_v9, %v8611_v20  ;;  %v12223_v20 = vpack.c.bf16 %v15430_v1, %v15428_v13  ;;  %v12226_v9 = vpack.c.bf16 %v15469_v26, %v15467_v41  ;;  %v16920_v13 = vand.u32 4294901760, %v15477_v27 }
0x1198   :  { %v8597_v56 = vand.u32 4294901760, %v8596_v50  ;;  %v16921_v41 = vand.u32 4294901760, %v15479_v24 }
0x1199   :  { %v12280_v1 = vpack.c.bf16 %v16920_v13, %v8595_v48  ;;  %v9100_v48 = vld [vmem:[#allocation8 + $0x68] sm:$0xff] }
0x119a   :  { %12194 = vmatpush3.bf16.msra.mxu1 %v15497_v46  ;;  %v12208_v2 = vpack.c.bf16 %v8604_v14, %v8597_v56 }
0x119b   :  { %v12765_v32 = vpop.eup %12764  ;;  %12195 = vmatprep.subr.bf16.mxu1 %v12900_v39 }
0x119c   :  { %v12767_v23 = vpop.eup %12766  ;;  %v15453_v61 = vmul.f32 %v12765_v32, %v8414_v5  ;;  %v8581_v32 = vand.u32 4294901760, %v15471_v54  ;;  %v8588_v5 = vand.u32 4294901760, %v15473_v60 }
0x119d   :  { %v15458_v35 = vsel %vm1402_vm8, %v12763_v53, %v12767_v23  ;;  %v8575_v53 = vsub.f32 %v15469_v26, %v8574_v47  ;;  %v16922_v26 = vand.u32 4294901760, %v15481_v40 }
0x119e   :  { %8416 = vrot.lane.b32.xlu1 %v15453_v61, %s12899_s0  ;;  %v8582_v10 = vsub.f32 %v15471_v54, %v8581_v32  ;;  %v8589_v23 = vsub.f32 %v15473_v60, %v8588_v5  ;;  %v12277_v19 = vpack.c.bf16 %v8588_v5, %v8581_v32  ;;  %v9099_v5 = vld [vmem:[#allocation8 + $0x60] sm:$0xff] }
0x119f   :  { %v8576_v38 = vand.u32 4294901760, %v8575_v53  ;;  %v8624_v53 = vsub.f32 %v15485_v52, %v16373_v0 }
0x11a0   :  { %v8583_v17 = vand.u32 4294901760, %v8582_v10  ;;  %v8590_v12 = vand.u32 4294901760, %v8589_v23  ;;  %v16371_v23 = vand.u32 4294901760, %v15492_v44 }
0x11a1   :  { %v12202_v51 = vpack.c.bf16 %v8576_v38, %v8569_v15  ;;  %v8631_v15 = vsub.f32 %v15487_v4, %v16372_v8  ;;  %v8625_v38 = vand.u32 4294901760, %v8624_v53  ;;  %v12229_v53 = vpack.c.bf16 %v15473_v60, %v15471_v54 }
0x11a2   :  { %v12205_v36 = vpack.c.bf16 %v8590_v12, %v8583_v17  ;;  %v16370_v17 = vand.u32 4294901760, %v15499_v16  ;;  %v8638_v50 = vsub.f32 %v15492_v44, %v16371_v23  ;;  %v16923_v54 = vand.u32 4294901760, %v15485_v52 }
0x11a3   :  { %v8632_v10 = vand.u32 4294901760, %v8631_v15  ;;  %v12232_v15 = vpack.c.bf16 %v15477_v27, %v15475_v6  ;;  %v16924_v60 = vand.u32 4294901760, %v15487_v4  ;;  %v16925_v6 = vand.u32 4294901760, %v15492_v44 }
0x11a4   :  { %v8645_v58 = vsub.f32 %v15499_v16, %v16370_v17  ;;  %v8639_v56 = vand.u32 4294901760, %v8638_v50  ;;  %v12241_v50 = vpack.c.bf16 %v15499_v16, %v15492_v44  ;;  %v16926_v27 = vand.u32 4294901760, %v15499_v16  ;;  %v9097_v16 = vld [vmem:[#allocation8 + $0x50] sm:$0xff] }
0x11a5   :  { %v12214_v12 = vpack.c.bf16 %v8632_v10, %v8625_v38  ;;  %v12235_v38 = vpack.c.bf16 %v15481_v40, %v15479_v24  ;;  %v12238_v10 = vpack.c.bf16 %v15487_v4, %v15485_v52  ;;  %v9141_v55 = vand.u32 4294901760, %v9097_v16 }
0x11a6   :  { %v8646_v14 = vand.u32 4294901760, %v8645_v58 }
0x11a8   :  { %v12217_v11 = vpack.c.bf16 %v8646_v14, %v8639_v56 }
0x1210   :  { %v8417_v58 = vpop.permute.xlu1 %8416 }
0x1211   :  { %v8418_v56 = vadd.f32 %v8417_v58, %v15453_v61  ;;  %v15612_v61 = vld [vmem:[#allocation8 + $0x8] sm:$0xff] }
0x1213   :  { %12768 = vtanh.f32 %v8418_v56  ;;  %v15663_v56 = vld [vmem:[#allocation8 + $0x30] sm:$0xff] }
0x1214   :  { %v16933_v52 = vand.u32 4294901760, %v15663_v56 }
0x121d   :  { %v12769_v14 = vpop.eup %12768 }
0x121e   :  { %v8420_v17 = vmul.f32 %v12769_v14, %v15458_v35  ;;  %v15665_v14 = vld [vmem:[#allocation8 + $0x38] sm:$0xff] }
0x121f   :  { %v16934_v4 = vand.u32 4294901760, %v15665_v14 }
0x1220   :  { %v8421_v23 = vadd.f32 %v8420_v17, %v15331_v49  ;;  %v15610_v49 = vld [vmem:[#allocation8] sm:$0xff] }
0x1221   :  { %v16382_v35 = vand.u32 4294901760, %v15610_v49  ;;  %v15646_v17 = vld [vmem:[#allocation8 + $0x20] sm:$0xff]  ;;  %v15827_v44 = vpack.c.bf16 %v16934_v4, %v16933_v52 }
0x1222   :  { %v15588_v8 = vand.u32 4294901760, %v8421_v23  ;;  %v16931_v24 = vand.u32 4294901760, %v15646_v17 }
0x1224   :  { %v15591_v0 = vsub.f32 %v8421_v23, %v15588_v8 }
0x1226   :  { %v8528_v33 = vand.u32 4294901760, %v15591_v0 }
0x1228   :  { %v8529_v21 = vsub.f32 %v15591_v0, %v8528_v33 }
0x122a   :  { %v8530_v3 = vand.u32 4294901760, %v8529_v21 }
0x122c   :  { %10056 = vmatmul.mubr.f32.vlgmr.msra.gmra.mrb[16].mxu1 %v8530_v3  ;;  %v15626_v3 = vsub.f32 %v15610_v49, %v16382_v35 }
0x122d   :  { %12197 = vmatpush3.bf16.msra.mxu1 %v15511_v25  ;;  %10090 = vmatprep.mubr.msk.f32.mxu1 %vm12901_vm9, %v16434_v22  ;;  %v16381_v25 = vand.u32 4294901760, %v15612_v61 }
0x122e   :  { %12198 = vmatprep.subr.bf16.mxu1 %v12900_v39 }
0x1231   :  { %12200 = vmatpush3.bf16.msra.mxu1 %v15521_v59  ;;  %v15619_v59 = vld [vmem:[#allocation8 + $0x10] sm:$0xff] }
0x1232   :  { %12201 = vmatprep.subr.bf16.mxu1 %v12900_v39  ;;  %v16380_v21 = vand.u32 4294901760, %v15619_v59 }
0x1235   :  { %12203 = vmatpush3.bf16.msra.mxu1 %v12202_v51  ;;  %v15621_v51 = vld [vmem:[#allocation8 + $0x18] sm:$0xff] }
0x1236   :  { %12204 = vmatprep.subr.bf16.mxu1 %v12900_v39 }
0x1239   :  { %12206 = vmatpush3.bf16.msra.mxu1 %v12205_v36  ;;  %v15631_v36 = vsub.f32 %v15612_v61, %v16381_v25  ;;  %v15685_v25 = vld [vmem:[#allocation8 + $0x48] sm:$0xff] }
0x123a   :  { %12207 = vmatprep.subr.bf16.mxu1 %v12900_v39 }
0x123d   :  { %12209 = vmatpush3.bf16.msra.mxu1 %v12208_v2  ;;  %v16377_v2 = vand.u32 4294901760, %v15621_v51 }
0x123e   :  { %12210 = vmatprep.subr.bf16.mxu1 %v12900_v39 }
0x123f   :  { %v15644_v23 = vsub.f32 %v15621_v51, %v16377_v2  ;;  %v16383_v2 = vand.u32 4294901760, %v15663_v56 }
0x1241   :  { %12212 = vmatpush3.bf16.msra.mxu1 %v12211_v37  ;;  %v15638_v37 = vsub.f32 %v15619_v59, %v16380_v21  ;;  %v15683_v21 = vld [vmem:[#allocation8 + $0x40] sm:$0xff]  ;;  %v9225_v13 = vand.u32 4294901760, %v15644_v23 }
0x1242   :  { %12213 = vmatprep.subr.bf16.mxu1 %v12900_v39  ;;  %v9135_v35 = vand.u32 4294901760, %v15683_v21 }
0x1245   :  { %12215 = vmatpush3.bf16.msra.mxu1 %v12214_v12  ;;  %v15648_v12 = vld [vmem:[#allocation8 + $0x28] sm:$0xff] }
0x1246   :  { %12216 = vmatprep.subr.bf16.mxu1 %v12900_v39  ;;  %v16932_v40 = vand.u32 4294901760, %v15648_v12 }
0x1249   :  { %12218 = vmatpush3.bf16.msra.mxu1 %v12217_v11  ;;  %v16378_v11 = vand.u32 4294901760, %v15646_v17 }
0x124a   :  { %12219 = vmatprep.subr.bf16.mxu1 %v12900_v39 }
0x124c   :  { %10091 = vmatmul.mubr.f32.vlgmr.msra.gmra.mrb[16].mxu1 %v15588_v8 }
0x124d   :  { %12221 = vmatpush3.bf16.msra.mxu1 %v12220_v45  ;;  %10125 = vmatprep.mubr.msk.f32.mxu1 %vm12901_vm9, %v16434_v22  ;;  %v16379_v45 = vand.u32 4294901760, %v15648_v12 }
0x124e   :  { %12222 = vmatprep.subr.bf16.mxu1 %v12900_v39 }
0x124f   :  { %v15660_v58 = vsub.f32 %v15648_v12, %v16379_v45 }
0x1251   :  { %12224 = vmatpush3.bf16.msra.mxu1 %v12223_v20  ;;  %v15655_v20 = vsub.f32 %v15646_v17, %v16378_v11  ;;  %v15675_v11 = vsub.f32 %v15663_v56, %v16383_v2  ;;  %v15695_v2 = vsub.f32 %v15683_v21, %v9135_v35  ;;  %v15858_v17 = vsub.f32 %v9097_v16, %v9141_v55 }
0x1252   :  { %12225 = vmatprep.subr.bf16.mxu1 %v12900_v39 }
0x1255   :  { %12227 = vmatpush3.bf16.msra.mxu1 %v12226_v9  ;;  %v16384_v9 = vand.u32 4294901760, %v15665_v14 }
0x1256   :  { %12228 = vmatprep.subr.bf16.mxu1 %v12900_v39 }
0x1257   :  { %v15680_v45 = vsub.f32 %v15665_v14, %v16384_v9 }
0x1259   :  { %12230 = vmatpush3.bf16.msra.mxu1 %v12229_v53  ;;  %v9138_v53 = vand.u32 4294901760, %v15685_v25 }
0x125a   :  { %12231 = vmatprep.subr.bf16.mxu1 %v12900_v39 }
0x125b   :  { %v15700_v9 = vsub.f32 %v15685_v25, %v9138_v53  ;;  %v9211_v25 = vand.u32 4294901760, %v15631_v36 }
0x125d   :  { %12233 = vmatpush3.bf16.msra.mxu1 %v12232_v15  ;;  %v12268_v15 = vpack.c.bf16 %v8546_v62, %v8539_v18  ;;  %v12283_v18 = vpack.c.bf16 %v16922_v26, %v16921_v41  ;;  %v12286_v62 = vpack.c.bf16 %v16924_v60, %v16923_v54  ;;  %v9212_v21 = vsub.f32 %v15631_v36, %v9211_v25 }
0x125e   :  { %12234 = vmatprep.subr.bf16.mxu1 %v12900_v39  ;;  %v9226_v26 = vsub.f32 %v15644_v23, %v9225_v13  ;;  %v9239_v54 = vand.u32 4294901760, %v15660_v58 }
0x1261   :  { %12236 = vmatpush3.bf16.msra.mxu1 %v12235_v38  ;;  %v12271_v38 = vpack.c.bf16 %v8560_v34, %v8553_v31  ;;  %v12289_v31 = vpack.c.bf16 %v16926_v27, %v16925_v6  ;;  %v9098_v34 = vld [vmem:[#allocation8 + $0x58] sm:$0xff]  ;;  %v9240_v27 = vsub.f32 %v15660_v58, %v9239_v54 }
0x1262   :  { %12237 = vmatprep.subr.bf16.mxu1 %v12900_v39  ;;  %v9144_v47 = vand.u32 4294901760, %v9098_v34 }
0x1264   :  { %v15840_v32 = vpack.c.bf16 %v9144_v47, %v9141_v55  ;;  %v15860_v12 = vsub.f32 %v9098_v34, %v9144_v47  ;;  %v9260_v34 = vand.u32 4294901760, %v15695_v2  ;;  %v9267_v55 = vand.u32 4294901760, %v15700_v9 }
0x1265   :  { %12239 = vmatpush3.bf16.msra.mxu1 %v12238_v10  ;;  %v9101_v10 = vld [vmem:[#allocation8 + $0x70] sm:$0xff] }
0x1266   :  { %12240 = vmatprep.subr.bf16.mxu1 %v12900_v39 }
0x1269   :  { %12242 = vmatpush3.bf16.msra.mxu1 %v12241_v50  ;;  %v9102_v50 = vld [vmem:[#allocation8 + $0x78] sm:$0xff] }
0x126a   :  { %12243 = vmatprep.subr.bf16.mxu1 %v12900_v39 }
0x126c   :  { %10126 = vmatmul.mubr.f32.vlgmr.msra.gmra.mrb[16].mxu1 %v15591_v0  ;;  %v9150_v0 = vand.u32 4294901760, %v9100_v48 }
0x126d   :  { %12245 = vmatpush3.bf16.msra.mxu1 %v15422_v43  ;;  %10160 = vmatprep.mubr.msk.f32.mxu1 %vm12901_vm9, %v16434_v22 }
0x126e   :  { %12246 = vmatprep.subr.bf16.mxu1 %v12900_v39  ;;  %v15864_v14 = vsub.f32 %v9100_v48, %v9150_v0  ;;  %v9268_v48 = vsub.f32 %v15700_v9, %v9267_v55 }
0x1271   :  { %12248 = vmatpush3.bf16.msra.mxu1 %v15433_v30 }
0x1272   :  { %12249 = vmatprep.subr.bf16.mxu1 %v12900_v39 }
0x1275   :  { %12251 = vmatpush3.bf16.msra.mxu1 %v15440_v42 }
0x1276   :  { %12252 = vmatprep.subr.bf16.mxu1 %v12900_v39 }
0x1279   :  { %12254 = vmatpush3.bf16.msra.mxu1 %v15444_v7 }
0x127a   :  { %12255 = vmatprep.subr.bf16.mxu1 %v12900_v39 }
0x127d   :  { %12257 = vmatpush3.bf16.msra.mxu1 %v15448_v57 }
0x127e   :  { %12258 = vmatprep.subr.bf16.mxu1 %v12900_v39 }
0x1281   :  { %12260 = vmatpush3.bf16.msra.mxu1 %v15463_v29 }
0x1282   :  { %12261 = vmatprep.subr.bf16.mxu1 %v12900_v39 }
0x1285   :  { %12263 = vmatpush3.bf16.msra.mxu1 %v15483_v28 }
0x1286   :  { %12264 = vmatprep.subr.bf16.mxu1 %v12900_v39 }
0x1289   :  { %12266 = vmatpush3.bf16.msra.mxu1 %v15497_v46 }
0x128a   :  { %12267 = vmatprep.subr.bf16.mxu1 %v12900_v39 }
0x128c   :  { %10161 = vmatmul.mubr.f32.vlgmr.msra.gmra.mrb[16].mxu1 %v8528_v33  ;;  %v9147_v33 = vand.u32 4294901760, %v9099_v5 }
0x128d   :  { %12269 = vmatpush3.bf16.msra.mxu1 %v12268_v15  ;;  %10195 = vmatprep.mubr.msk.f32.mxu1 %vm12901_vm9, %v16434_v22 }
0x128e   :  { %12270 = vmatprep.subr.bf16.mxu1 %v12900_v39  ;;  %v15862_v56 = vsub.f32 %v9099_v5, %v9147_v33  ;;  %v9261_v5 = vsub.f32 %v15695_v2, %v9260_v34 }
0x1291   :  { %12272 = vmatpush3.bf16.msra.mxu1 %v12271_v38 }
0x1292   :  { %12273 = vmatprep.subr.bf16.mxu1 %v12900_v39 }
0x1295   :  { %12275 = vmatpush3.bf16.msra.mxu1 %v12274_v63  ;;  %v9213_v63 = vand.u32 4294901760, %v9212_v21 }
0x1296   :  { %12276 = vmatprep.subr.bf16.mxu1 %v12900_v39 }
0x1299   :  { %12278 = vmatpush3.bf16.msra.mxu1 %v12277_v19  ;;  %v9218_v19 = vand.u32 4294901760, %v15638_v37 }
0x129a   :  { %12279 = vmatprep.subr.bf16.mxu1 %v12900_v39 }
0x129b   :  { %v9219_v41 = vsub.f32 %v15638_v37, %v9218_v19 }
0x129d   :  { %12281 = vmatpush3.bf16.msra.mxu1 %v12280_v1  ;;  %v9220_v60 = vand.u32 4294901760, %v9219_v41  ;;  %v16387_v41 = vand.u32 4294901760, %v15864_v14 }
0x129e   :  { %12282 = vmatprep.subr.bf16.mxu1 %v12900_v39 }
0x12a1   :  { %12284 = vmatpush3.bf16.msra.mxu1 %v12283_v18  ;;  %v9232_v18 = vand.u32 4294901760, %v15655_v20 }
0x12a2   :  { %12285 = vmatprep.subr.bf16.mxu1 %v12900_v39 }
0x12a3   :  { %v9233_v6 = vsub.f32 %v15655_v20, %v9232_v18 }
0x12a5   :  { %12287 = vmatpush3.bf16.msra.mxu1 %v12286_v62  ;;  %v9227_v62 = vand.u32 4294901760, %v9226_v26 }
0x12a6   :  { %12288 = vmatprep.subr.bf16.mxu1 %v12900_v39 }
0x12a9   :  { %12290 = vmatpush3.bf16.msra.mxu1 %v12289_v31  ;;  %v12343_v31 = vpack.c.bf16 %v9227_v62, %v9220_v60  ;;  %v9296_v62 = vsub.f32 %v15864_v14, %v16387_v41 }
0x12aa   :  { %12291 = vmatprep.subr.bf16.mxu1 %v12900_v39 }
0x12ac   :  { %10196 = vmatmul.mubr.f32.vlgmr.msra.gmra.mrb[16].mxu1 %v15588_v8 }
0x12ad   :  { %12293 = vmatpush3.bf16.msra.mxu1 %v15422_v43  ;;  %10230 = vmatprep.mubr.msk.f32.mxu1 %vm12901_vm9, %v16434_v22  ;;  %v16927_v43 = vand.u32 4294901760, %v15610_v49  ;;  %v9153_v49 = vand.u32 4294901760, %v9101_v10 }
0x12ae   :  { %12294 = vmatprep.subr.bf16.mxu1 %v12900_v39 }
0x12b1   :  { %12296 = vmatpush3.bf16.msra.mxu1 %v15433_v30  ;;  %v16928_v30 = vand.u32 4294901760, %v15612_v61  ;;  %v9156_v61 = vand.u32 4294901760, %v9102_v50 }
0x12b2   :  { %12297 = vmatprep.subr.bf16.mxu1 %v12900_v39 }
0x12b3   :  { %v15869_v15 = vsub.f32 %v9102_v50, %v9156_v61  ;;  %v9281_v50 = vand.u32 4294901760, %v15860_v12 }
0x12b5   :  { %12299 = vmatpush3.bf16.msra.mxu1 %v15440_v42  ;;  %v15800_v42 = vpack.c.bf16 %v16928_v30, %v16927_v43  ;;  %v9234_v43 = vand.u32 4294901760, %v9233_v6  ;;  %v9241_v30 = vand.u32 4294901760, %v9240_v27  ;;  %v9297_v27 = vand.u32 4294901760, %v9296_v62 }
0x12b6   :  { %12300 = vmatprep.subr.bf16.mxu1 %v12900_v39 }
0x12b9   :  { %12302 = vmatpush3.bf16.msra.mxu1 %v15444_v7  ;;  %v16929_v7 = vand.u32 4294901760, %v15619_v59  ;;  %v15850_v59 = vpack.c.bf16 %v9156_v61, %v9153_v49 }
0x12ba   :  { %12303 = vmatprep.subr.bf16.mxu1 %v12900_v39 }
0x12bd   :  { %12305 = vmatpush3.bf16.msra.mxu1 %v15448_v57  ;;  %v16930_v57 = vand.u32 4294901760, %v15621_v51 }
0x12be   :  { %12306 = vmatprep.subr.bf16.mxu1 %v12900_v39 }
0x12c1   :  { %12308 = vmatpush3.bf16.msra.mxu1 %v15463_v29  ;;  %v15809_v29 = vpack.c.bf16 %v16930_v57, %v16929_v7  ;;  %v9246_v7 = vand.u32 4294901760, %v15675_v11  ;;  %v9253_v57 = vand.u32 4294901760, %v15680_v45 }
0x12c2   :  { %12309 = vmatprep.subr.bf16.mxu1 %v12900_v39 }
0x12c3   :  { %v9254_v52 = vsub.f32 %v15680_v45, %v9253_v57 }
0x12c5   :  { %12311 = vmatpush3.bf16.msra.mxu1 %v15483_v28  ;;  %v15819_v28 = vpack.c.bf16 %v16932_v40, %v16931_v24  ;;  %v12346_v24 = vpack.c.bf16 %v9241_v30, %v9234_v43  ;;  %v9247_v40 = vsub.f32 %v15675_v11, %v9246_v7  ;;  %v9255_v16 = vand.u32 4294901760, %v9254_v52 }
0x12c6   :  { %12312 = vmatprep.subr.bf16.mxu1 %v12900_v39  ;;  %v16385_v30 = vand.u32 4294901760, %v15869_v15 }
0x12c7   :  { %v9248_v4 = vand.u32 4294901760, %v9247_v40 }
0x12c9   :  { %12314 = vmatpush3.bf16.msra.mxu1 %v15497_v46  ;;  %v15835_v46 = vpack.c.bf16 %v9138_v53, %v9135_v35  ;;  %v9204_v35 = vand.u32 4294901760, %v15626_v3  ;;  %v15867_v53 = vsub.f32 %v9101_v10, %v9153_v49  ;;  %v12349_v47 = vpack.c.bf16 %v9255_v16, %v9248_v4 }
0x12ca   :  { %12315 = vmatprep.subr.bf16.mxu1 %v12900_v39  ;;  %v9274_v10 = vand.u32 4294901760, %v15858_v17  ;;  %v9310_v4 = vsub.f32 %v15869_v15, %v16385_v30 }
0x12cb   :  { %v9205_v51 = vsub.f32 %v15626_v3, %v9204_v35  ;;  %v16386_v43 = vand.u32 4294901760, %v15867_v53  ;;  %v12385_v62 = vpack.c.bf16 %v15869_v15, %v15867_v53 }
0x12cc   :  { %10231 = vmatmul.mubr.f32.vlgmr.msra.gmra.mrb[16].mxu1 %v15588_v8  ;;  %v15844_v8 = vpack.c.bf16 %v9150_v0, %v9147_v33  ;;  %v9262_v33 = vand.u32 4294901760, %v9261_v5  ;;  %v9269_v0 = vand.u32 4294901760, %v9268_v48  ;;  %v9275_v61 = vsub.f32 %v15858_v17, %v9274_v10 }
0x12cd   :  { %12317 = vmatpush3.bf16.msra.mxu1 %v15800_v42  ;;  %10265 = vmatprep.mubr.msk.f32.mxu1 %vm12901_vm9, %v16434_v22  ;;  %v9206_v38 = vand.u32 4294901760, %v9205_v51  ;;  %v9282_v51 = vsub.f32 %v15860_v12, %v9281_v50  ;;  %v9303_v52 = vsub.f32 %v15867_v53, %v16386_v43  ;;  %v9311_v5 = vand.u32 4294901760, %v9310_v4 }
0x12ce   :  { %12318 = vmatprep.subr.bf16.mxu1 %v12900_v39  ;;  %v12352_v49 = vpack.c.bf16 %v9269_v0, %v9262_v33  ;;  %v9276_v21 = vand.u32 4294901760, %v9275_v61  ;;  %v12364_v33 = vpack.c.bf16 %v15631_v36, %v15626_v3  ;;  %v12367_v0 = vpack.c.bf16 %v15644_v23, %v15638_v37 }
0x12cf   :  { %v15874_v1 = vpack.c.bf16 %v9213_v63, %v9206_v38  ;;  %v9283_v38 = vand.u32 4294901760, %v9282_v51  ;;  %v16388_v63 = vand.u32 4294901760, %v15862_v56  ;;  %v9304_v16 = vand.u32 4294901760, %v9303_v52 }
0x12d0   :  { %v12370_v61 = vpack.c.bf16 %v15660_v58, %v15655_v20  ;;  %v12373_v51 = vpack.c.bf16 %v15680_v45, %v15675_v11  ;;  %v12418_v3 = vpack.c.bf16 %v9239_v54, %v9232_v18  ;;  %v12421_v36 = vpack.c.bf16 %v9253_v57, %v9246_v7 }
0x12d1   :  { %12320 = vmatpush3.bf16.msra.mxu1 %v15809_v29  ;;  %v12355_v26 = vpack.c.bf16 %v9283_v38, %v9276_v21  ;;  %v9289_v60 = vsub.f32 %v15862_v56, %v16388_v63  ;;  %v12361_v48 = vpack.c.bf16 %v9311_v5, %v9304_v16  ;;  %v12376_v21 = vpack.c.bf16 %v15700_v9, %v15695_v2 }
0x12d2   :  { %12321 = vmatprep.subr.bf16.mxu1 %v12900_v39  ;;  %v12379_v38 = vpack.c.bf16 %v15860_v12, %v15858_v17  ;;  %v12424_v37 = vpack.c.bf16 %v9267_v55, %v9260_v34  ;;  %v12427_v23 = vpack.c.bf16 %v9281_v50, %v9274_v10  ;;  %v16935_v11 = vand.u32 4294901760, %v15862_v56 }
0x12d3   :  { %v9290_v6 = vand.u32 4294901760, %v9289_v60  ;;  %v12382_v60 = vpack.c.bf16 %v15864_v14, %v15862_v56  ;;  %v16936_v45 = vand.u32 4294901760, %v15864_v14  ;;  %v16937_v2 = vand.u32 4294901760, %v15867_v53 }
0x12d4   :  { %v16938_v58 = vand.u32 4294901760, %v15869_v15 }
0x12d5   :  { %12323 = vmatpush3.bf16.msra.mxu1 %v15819_v28  ;;  %v12358_v40 = vpack.c.bf16 %v9297_v27, %v9290_v6  ;;  %v9817_v6 = vld [vmem:[%s16072_s4] ss:$0 sm:$0xff]  ;;  %v12430_v20 = vpack.c.bf16 %v16936_v45, %v16935_v11 }
0x12d6   :  { %12324 = vmatprep.subr.bf16.mxu1 %v12900_v39  ;;  %v12433_v9 = vpack.c.bf16 %v16938_v58, %v16937_v2 }
0x12d9   :  { %12326 = vmatpush3.bf16.msra.mxu1 %v15827_v44 }
0x12da   :  { %12327 = vmatprep.subr.bf16.mxu1 %v12900_v39 }
0x12dd   :  { %12329 = vmatpush3.bf16.msra.mxu1 %v15835_v46 }
0x12de   :  { %12330 = vmatprep.subr.bf16.mxu1 %v12900_v39 }
0x12e1   :  { %12332 = vmatpush3.bf16.msra.mxu1 %v15840_v32 }
0x12e2   :  { %12333 = vmatprep.subr.bf16.mxu1 %v12900_v39 }
0x12e5   :  { %12335 = vmatpush3.bf16.msra.mxu1 %v15844_v8 }
0x12e6   :  { %12336 = vmatprep.subr.bf16.mxu1 %v12900_v39 }
0x12e9   :  { %12338 = vmatpush3.bf16.msra.mxu1 %v15850_v59 }
0x12ea   :  { %12339 = vmatprep.subr.bf16.mxu1 %v12900_v39 }
0x139f   :  { %v9082_v27 = vpop.f32.mrb[16].mxu1 }
0x13a0   :  { %v12471_v52 = vadd.f32 %v9817_v6, %v9082_v27  ;;  %v10232_v4 = vpop.f32.mrb[17].mxu1 }
0x13a2   :  { %v9086_v16 = vmax.f32 %v12471_v52, 0.0 }
0x13a4   :  { %v15949_v5 = vand.u32 4294901760, %v9086_v16 }
0x13a6   :  { %v9192_v30 = vsub.f32 %v9086_v16, %v15949_v5 }
0x13a8   :  { %v9193_v43 = vand.u32 4294901760, %v9192_v30 }
0x13aa   :  { %v9194_v41 = vsub.f32 %v9192_v30, %v9193_v43 }
0x13ac   :  { %v9195_v63 = vand.u32 4294901760, %v9194_v41 }
0x13ae   :  { %10266 = vmatmul.mubr.f32.vlgmr.msra.gmra.mrb[18].mxu1 %v9195_v63 }
0x13af   :  { %12341 = vmatpush3.bf16.msra.mxu1 %v15874_v1  ;;  %10300 = vmatprep.mubr.msk.f32.mxu1 %vm12901_vm9, %v16434_v22  ;;  %v12412_v1 = vpack.c.bf16 %v9211_v25, %v9204_v35 }
0x13b0   :  { %12342 = vmatprep.subr.bf16.mxu1 %v12900_v39 }
0x13b3   :  { %12344 = vmatpush3.bf16.msra.mxu1 %v12343_v31  ;;  %v12415_v31 = vpack.c.bf16 %v9225_v13, %v9218_v19 }
0x13b4   :  { %12345 = vmatprep.subr.bf16.mxu1 %v12900_v39 }
0x13b7   :  { %12347 = vmatpush3.bf16.msra.mxu1 %v12346_v24 }
0x13b8   :  { %12348 = vmatprep.subr.bf16.mxu1 %v12900_v39 }
0x13bb   :  { %12350 = vmatpush3.bf16.msra.mxu1 %v12349_v47 }
0x13bc   :  { %12351 = vmatprep.subr.bf16.mxu1 %v12900_v39 }
0x13bf   :  { %12353 = vmatpush3.bf16.msra.mxu1 %v12352_v49 }
0x13c0   :  { %12354 = vmatprep.subr.bf16.mxu1 %v12900_v39 }
0x13c3   :  { %12356 = vmatpush3.bf16.msra.mxu1 %v12355_v26 }
0x13c4   :  { %12357 = vmatprep.subr.bf16.mxu1 %v12900_v39 }
0x13c7   :  { %12359 = vmatpush3.bf16.msra.mxu1 %v12358_v40 }
0x13c8   :  { %12360 = vmatprep.subr.bf16.mxu1 %v12900_v39 }
0x13cb   :  { %12362 = vmatpush3.bf16.msra.mxu1 %v12361_v48 }
0x13cc   :  { %12363 = vmatprep.subr.bf16.mxu1 %v12900_v39 }
0x13ce   :  { %10301 = vmatmul.mubr.f32.vlgmr.msra.gmra.mrb[18].mxu1 %v15949_v5 }
0x13cf   :  { %12365 = vmatpush3.bf16.msra.mxu1 %v12364_v33  ;;  %10335 = vmatprep.mubr.msk.f32.mxu1 %vm12901_vm9, %v16434_v22 }
0x13d0   :  { %12366 = vmatprep.subr.bf16.mxu1 %v12900_v39 }
0x13d3   :  { %12368 = vmatpush3.bf16.msra.mxu1 %v12367_v0 }
0x13d4   :  { %12369 = vmatprep.subr.bf16.mxu1 %v12900_v39 }
0x13d7   :  { %12371 = vmatpush3.bf16.msra.mxu1 %v12370_v61 }
0x13d8   :  { %12372 = vmatprep.subr.bf16.mxu1 %v12900_v39 }
0x13db   :  { %12374 = vmatpush3.bf16.msra.mxu1 %v12373_v51 }
0x13dc   :  { %12375 = vmatprep.subr.bf16.mxu1 %v12900_v39 }
0x13df   :  { %12377 = vmatpush3.bf16.msra.mxu1 %v12376_v21 }
0x13e0   :  { %12378 = vmatprep.subr.bf16.mxu1 %v12900_v39 }
0x13e3   :  { %12380 = vmatpush3.bf16.msra.mxu1 %v12379_v38 }
0x13e4   :  { %12381 = vmatprep.subr.bf16.mxu1 %v12900_v39 }
0x13e7   :  { %12383 = vmatpush3.bf16.msra.mxu1 %v12382_v60 }
0x13e8   :  { %12384 = vmatprep.subr.bf16.mxu1 %v12900_v39 }
0x13eb   :  { %12386 = vmatpush3.bf16.msra.mxu1 %v12385_v62 }
0x13ec   :  { %12387 = vmatprep.subr.bf16.mxu1 %v12900_v39 }
0x13ee   :  { %10336 = vmatmul.mubr.f32.vlgmr.msra.gmra.mrb[18].mxu1 %v9192_v30 }
0x13ef   :  { %12389 = vmatpush3.bf16.msra.mxu1 %v15800_v42  ;;  %10370 = vmatprep.mubr.msk.f32.mxu1 %vm12901_vm9, %v16434_v22 }
0x13f0   :  { %12390 = vmatprep.subr.bf16.mxu1 %v12900_v39 }
0x13f3   :  { %12392 = vmatpush3.bf16.msra.mxu1 %v15809_v29 }
0x13f4   :  { %12393 = vmatprep.subr.bf16.mxu1 %v12900_v39 }
0x13f7   :  { %12395 = vmatpush3.bf16.msra.mxu1 %v15819_v28 }
0x13f8   :  { %12396 = vmatprep.subr.bf16.mxu1 %v12900_v39 }
0x13fb   :  { %12398 = vmatpush3.bf16.msra.mxu1 %v15827_v44 }
0x13fc   :  { %12399 = vmatprep.subr.bf16.mxu1 %v12900_v39 }
0x13ff   :  { %12401 = vmatpush3.bf16.msra.mxu1 %v15835_v46 }
0x1400   :  { %12402 = vmatprep.subr.bf16.mxu1 %v12900_v39 }
0x1403   :  { %12404 = vmatpush3.bf16.msra.mxu1 %v15840_v32 }
0x1404   :  { %12405 = vmatprep.subr.bf16.mxu1 %v12900_v39 }
0x1407   :  { %12407 = vmatpush3.bf16.msra.mxu1 %v15844_v8 }
0x1408   :  { %12408 = vmatprep.subr.bf16.mxu1 %v12900_v39 }
0x140b   :  { %12410 = vmatpush3.bf16.msra.mxu1 %v15850_v59 }
0x140c   :  { %12411 = vmatprep.subr.bf16.mxu1 %v12900_v39 }
0x140e   :  { %10371 = vmatmul.mubr.f32.vlgmr.msra.gmra.mrb[18].mxu1 %v9193_v43 }
0x140f   :  { %12413 = vmatpush3.bf16.msra.mxu1 %v12412_v1  ;;  %10405 = vmatprep.mubr.msk.f32.mxu1 %vm12901_vm9, %v16434_v22 }
0x1410   :  { %12414 = vmatprep.subr.bf16.mxu1 %v12900_v39 }
0x1413   :  { %12416 = vmatpush3.bf16.msra.mxu1 %v12415_v31 }
0x1414   :  { %12417 = vmatprep.subr.bf16.mxu1 %v12900_v39 }
0x1417   :  { %12419 = vmatpush3.bf16.msra.mxu1 %v12418_v3 }
0x1418   :  { %12420 = vmatprep.subr.bf16.mxu1 %v12900_v39 }
0x141b   :  { %12422 = vmatpush3.bf16.msra.mxu1 %v12421_v36 }
0x141c   :  { %12423 = vmatprep.subr.bf16.mxu1 %v12900_v39 }
0x141f   :  { %12425 = vmatpush3.bf16.msra.mxu1 %v12424_v37 }
0x1420   :  { %12426 = vmatprep.subr.bf16.mxu1 %v12900_v39 }
0x1423   :  { %12428 = vmatpush3.bf16.msra.mxu1 %v12427_v23 }
0x1424   :  { %12429 = vmatprep.subr.bf16.mxu1 %v12900_v39 }
0x1427   :  { %12431 = vmatpush3.bf16.msra.mxu1 %v12430_v20 }
0x1428   :  { %12432 = vmatprep.subr.bf16.mxu1 %v12900_v39 }
0x142b   :  { %12434 = vmatpush3.bf16.msra.mxu1 %v12433_v9 }
0x142c   :  { %12435 = vmatprep.subr.bf16.mxu1 %v12900_v39 }
0x142e   :  { %10406 = vmatmul.mubr.f32.vlgmr.msra.gmra.mrb[18].mxu1 %v15949_v5 }
0x142f   :  { %12437 = vmatpush3.bf16.msra.mxu1 %v15800_v42  ;;  %10440 = vmatprep.mubr.msk.f32.mxu1 %vm12901_vm9, %v16434_v22  ;;  %v9818_v22 = vld [vmem:[%s16074_s6] ss:$0 sm:$0xff] }
0x1430   :  { %12438 = vmatprep.subr.bf16.mxu1 %v12900_v39 }
0x1433   :  { %12440 = vmatpush3.bf16.msra.mxu1 %v15809_v29 }
0x1434   :  { %12441 = vmatprep.subr.bf16.mxu1 %v12900_v39 }
0x1437   :  { %12443 = vmatpush3.bf16.msra.mxu1 %v15819_v28 }
0x1438   :  { %12444 = vmatprep.subr.bf16.mxu1 %v12900_v39 }
0x143b   :  { %12446 = vmatpush3.bf16.msra.mxu1 %v15827_v44 }
0x143c   :  { %12447 = vmatprep.subr.bf16.mxu1 %v12900_v39 }
0x143f   :  { %12449 = vmatpush3.bf16.msra.mxu1 %v15835_v46 }
0x1440   :  { %12450 = vmatprep.subr.bf16.mxu1 %v12900_v39 }
0x1443   :  { %12452 = vmatpush3.bf16.msra.mxu1 %v15840_v32 }
0x1444   :  { %12453 = vmatprep.subr.bf16.mxu1 %v12900_v39 }
0x1447   :  { %12455 = vmatpush3.bf16.msra.mxu1 %v15844_v8 }
0x1448   :  { %12456 = vmatprep.subr.bf16.mxu1 %v12900_v39 }
0x144b   :  { %12458 = vmatpush3.bf16.msra.mxu1 %v15850_v59 }
0x144e   :  { %10441 = vmatmul.mubr.f32.vlgmr.msra.gmra.mrb[18].mxu1 %v15949_v5 }
0x1521   :  { %v9747_v42 = vpop.f32.mrb[18].mxu1 }
0x1522   :  { %v12472_v29 = vadd.f32 %v9818_v22, %v9747_v42  ;;  %v10442_v28 = vpop.f32.mrb[19].mxu1 }
0x1524   :  { %9751 = vst [vmem:[#allocation10] sm:$0xff] %v12472_v29 }
0x1525   :  { %12869 = shalt.err (!%p12866_p8)
}
0x1526   :  { %s12870_s2 = scalar_lea.hbm %s16075_s7, 128 }
0x1527   :  { %p12871_p9 = scmp.ne.s32.totalorder %s16075_s7, %s12870_s2  ;;  %p12874_p10 = scmp.lt.u32.totalorder %s12870_s2, %s16075_s7 }
0x1529   :  { %p12876_p11 = pnand %p12874_p10, %p12871_p9 }
0x152b   :  { %12879 = shalt.err (!%p12876_p11)
}
0x152c   :  { %9761 = dma.vmem_to_hbm [thread:$0]  %s9759_s21, 128, %s16075_s7, [#allocation4]  }
0x152d   :  { %12886 = dma.done.wait [#allocation4], 128  }
0x152e   :  { %12887 = vsyncadd [#allocation4], 4294967168 }
0x152f   :  { %9765 = vsyncpa [#allocation3], 1 }
0x1530   :  { %9766 = vsyncpa [#allocation6], 1 }
0x1531   :  { %9767 = vsyncpa [#allocation9], 1 }
0x1532   :  { %9768 = vsyncpa [#allocation4], 1 }

</bundles_post_ra>
